<compile_context>
chip_gen: v5e
topology: v5e:2x2
jax: 0.10.0
libtpu: 0.0.40
codegen_flags: <defaults>
</compile_context>

<pallas_src>
import functools

import jax
import jax.numpy as jnp
from jax import lax
from jax.experimental import pallas as pl
from jax.experimental.pallas import tpu as pltpu

LANE = 128


def _round_up(x, m):
    return (x + m - 1) // m * m


def _pick_row_tile(ho, target=8):
    for th in range(min(target, ho), 0, -1):
        if ho % th == 0:
            return th
    return ho


def _w_taps(band, count, stride):
    """Fuse the 3 horizontal taps along channels: (R, Wsrc, C) -> (R, count, 3C)."""
    cols = []
    for dj in range(3):
        if stride == 1:
            cols.append(band[:, dj:dj + count, :])
        else:
            cols.append(band[:, dj:dj + (count - 1) * stride + 1:stride, :])
    return jnp.concatenate(cols, axis=-1)


def _basic_block_kernel(stride, apply_relu, has_shortcut, Ho, TH, *refs):
    if has_shortcut:
        (xpad_ref, w1_ref, s1_ref, b1_ref, w2_ref, s2_ref, b2_ref, ws_ref,
         o_ref, c1_ref) = refs
    else:
        (xpad_ref, w1_ref, s1_ref, b1_ref, w2_ref, s2_ref, b2_ref,
         o_ref, c1_ref) = refs
        ws_ref = None

    _, _, Wo, Cmidp = o_ref.shape
    _, _, Wp, Cinp = xpad_ref.shape
    t = pl.program_id(1)

    # padded-input row corresponding to conv1 halo row (global row t*TH - 1), tap di=0
    base = t * (TH * stride)
    if (TH * stride) % 8 == 0:
        base = pl.multiple_of(base, 8)

    # ---- conv1 (3x3, stride=`stride`) over TH+2 rows (1-row halo each side) ----
    M1 = (TH + 2) * Wo
    ext1 = (TH + 1) * stride + 1                      # contiguous rows per tap row
    acc1 = jnp.zeros((M1, Cmidp), jnp.float32)
    for di in range(3):
        band = xpad_ref[0, pl.ds(base + di, ext1), :, :]       # (ext1, Wp, Cinp) bf16
        if stride > 1:
            band = band[::stride]                              # (TH+2, Wp, Cinp)
        taps = _w_taps(band, Wo, stride)                       # (TH+2, Wo, 3*Cinp)
        acc1 = acc1 + jnp.dot(taps.reshape(M1, 3 * Cinp), w1_ref[di],
                              preferred_element_type=jnp.float32)

    out1 = jnp.maximum(acc1 * s1_ref[...] + b1_ref[...], 0.0)  # BN1 + ReLU (f32)
    out1 = out1.reshape(TH + 2, Wo, Cmidp)

    # Halo rows that fall outside the image are conv2's zero padding -> zero them.
    row_g = lax.broadcasted_iota(jnp.int32, (TH + 2, 1, 1), 0) + (t * TH - 1)
    valid = ((row_g >= 0) & (row_g < Ho)).astype(jnp.float32)
    out1 = out1 * valid

    # ---- stage conv1 result (bf16) into the W-padded scratch --------------------
    # Only the 1-wide W border needs zeroing; interior rows are fully rewritten.
    zcol = jnp.zeros((TH + 2, 1, Cmidp), c1_ref.dtype)
    c1_ref[:, 0:1, :] = zcol
    c1_ref[:, Wo + 1:Wo + 2, :] = zcol
    c1_ref[:, 1:Wo + 1, :] = out1.astype(c1_ref.dtype)

    # ---- conv2 (3x3, stride=1) + BN2 --------------------------------------------
    M2 = TH * Wo
    acc2 = jnp.zeros((M2, Cmidp), jnp.float32)
    for di in range(3):
        band2 = c1_ref[di:di + TH, :, :]                       # (TH, Wo+2, Cmidp)
        taps2 = _w_taps(band2, Wo, 1)                          # (TH, Wo, 3*Cmidp)
        acc2 = acc2 + jnp.dot(taps2.reshape(M2, 3 * Cmidp), w2_ref[di],
                              preferred_element_type=jnp.float32)
    out2 = acc2 * s2_ref[...] + b2_ref[...]

    # ---- shortcut ----------------------------------------------------------------
    sc_start = base + stride + 1
    ext_sc = (TH - 1) * stride + 1
    sc = xpad_ref[0, pl.ds(sc_start, ext_sc), :, :]            # (ext_sc, Wp, Cinp)
    if stride > 1:
        sc = sc[::stride]
        sc = sc[:, 1:(Wo - 1) * stride + 2:stride, :]
    else:
        sc = sc[:, 1:Wo + 1, :]
    sc2d = sc.reshape(M2, Cinp)
    if has_shortcut:
        sc_out = jnp.dot(sc2d, ws_ref[...], preferred_element_type=jnp.float32)
    else:
        sc_out = sc2d.astype(jnp.float32)       # identity shortcut (Cinp == Cmidp)

    out = out2 + sc_out
    if apply_relu:
        out = jnp.maximum(out, 0.0)
    o_ref[0] = out.reshape(TH, Wo, Cmidp).astype(o_ref.dtype)


def basic_block_forward(x_nchw, params, *, stride=1, relu=True, row_tile=8):
    """NCHW in / NCHW out, matching the PyTorch module's forward."""
    w1, s1, b1, w2, s2, b2, ws = params          # ws is None -> identity shortcut
    N, Cin, H, W = x_nchw.shape
    Cmid = w1.shape[-1]
    Ho = (H + 2 - 3) // stride + 1
    Wo = (W + 2 - 3) // stride + 1
    has_shortcut = ws is not None
    if not has_shortcut:
        assert stride == 1 and Cin == Cmid

    Cinp = _round_up(Cin, LANE)
    Cmidp = _round_up(Cmid, LANE)
    TH = _pick_row_tile(Ho, row_tile)
    n_tiles = Ho // TH

    # NHWC, bf16, channels padded to lane width, H padded with halo, W padded by 1.
    hp = stride + 1
    x_nhwc = jnp.transpose(x_nchw, (0, 2, 3, 1)).astype(jnp.bfloat16)
    xpad = jnp.pad(x_nhwc, ((0, 0), (hp, hp), (1, 1), (0, Cinp - Cin)))
    Hpad, Wp = H + 2 * hp, W + 2

    def pad_w3(w, cin, cinp):        # (3,3,cin,cmid) -> (3, 3*cinp, Cmidp) bf16
        wpd = jnp.pad(w, ((0, 0), (0, 0), (0, cinp - cin), (0, Cmidp - Cmid)))
        return wpd.reshape(3, 3 * cinp, Cmidp).astype(jnp.bfloat16)

    def pad_vec(v):                  # (cmid,) -> (1, Cmidp) f32
        v = v.reshape(-1).astype(jnp.float32)
        return jnp.pad(v, (0, Cmidp - Cmid)).reshape(1, Cmidp)

    w1f = pad_w3(w1, Cin, Cinp)
    w2f = pad_w3(w2, Cmid, Cmidp)
    s1p, b1p, s2p, b2p = pad_vec(s1), pad_vec(b1), pad_vec(s2), pad_vec(b2)

    inputs = [xpad, w1f, s1p, b1p, w2f, s2p, b2p]

    def full_spec(a):
        nd = a.ndim
        return pl.BlockSpec(a.shape, lambda n, t, _nd=nd: (0,) * _nd)

    in_specs = [pl.BlockSpec((1, Hpad, Wp, Cinp), lambda n, t: (n, 0, 0, 0))]
    in_specs += [full_spec(a) for a in inputs[1:]]

    if has_shortcut:
        wsp = jnp.pad(ws, ((0, Cinp - Cin), (0, Cmidp - Cmid))).astype(jnp.bfloat16)
        inputs.append(wsp)
        in_specs.append(full_spec(wsp))

    kernel = functools.partial(_basic_block_kernel, stride, relu, has_shortcut,
                               Ho, TH)

    out = pl.pallas_call(
        kernel,
        out_shape=jax.ShapeDtypeStruct((N, Ho, Wo, Cmidp), jnp.float32),
        grid=(N, n_tiles),
        in_specs=in_specs,
        out_specs=pl.BlockSpec((1, TH, Wo, Cmidp), lambda n, t: (n, t, 0, 0)),
        scratch_shapes=[pltpu.VMEM((TH + 2, Wo + 2, Cmidp), jnp.bfloat16)],
        compiler_params=pltpu.CompilerParams(
            dimension_semantics=("parallel", "parallel"),
            vmem_limit_bytes=48 * 1024 * 1024),
    )(*inputs)

    out = out[..., :Cmid]
    return jnp.transpose(out, (0, 3, 1, 2))      # back to NCHW


# ----------------------------- reference & test --------------------------------
def _q(v):
    """bf16-round (the kernel feeds the MXU bf16 operands, f32 accumulation)."""
    return v.astype(jnp.bfloat16).astype(jnp.float32)


def ref_forward(x_nchw, params, *, stride=1, relu=True):
    w1, s1, b1, w2, s2, b2, ws = params
    Cin = x_nchw.shape[1]
    Cmid = w1.shape[-1]
    dn = ('NHWC', 'HWIO', 'NHWC')
    x = _q(jnp.transpose(x_nchw, (0, 2, 3, 1)).astype(jnp.float32))

    y1 = lax.conv_general_dilated(x, _q(w1), (stride, stride), ((1, 1), (1, 1)),
                                  dimension_numbers=dn)
    y1 = jnp.maximum(y1 * s1.reshape(1, 1, 1, -1) + b1.reshape(1, 1, 1, -1), 0.)
    y1 = _q(y1)                                   # kernel stages conv1 out in bf16
    y2 = lax.conv_general_dilated(y1, _q(w2), (1, 1), ((1, 1), (1, 1)),
                                  dimension_numbers=dn)
    y2 = y2 * s2.reshape(1, 1, 1, -1) + b2.reshape(1, 1, 1, -1)
    if ws is None:
        sc = x
    else:
        sc = lax.conv_general_dilated(x, _q(ws).reshape(1, 1, Cin, Cmid),
                                      (stride, stride), 'VALID',
                                      dimension_numbers=dn)
    out = y2 + sc
    if relu:
        out = jnp.maximum(out, 0.)
    return jnp.transpose(out, (0, 3, 1, 2))


def _fold_bn(gamma, beta, mean, var, eps=1e-5):
    scale = gamma / jnp.sqrt(var + eps)
    bias = beta - mean * scale
    return scale, bias


def _make_params(key, in_planes, planes, stride):
    ks = jax.random.split(key, 11)
    w1 = jax.random.normal(ks[0], (3, 3, in_planes, planes), jnp.float32) * 0.2
    w2 = jax.random.normal(ks[1], (3, 3, planes, planes), jnp.float32) * 0.2
    g1 = jax.random.uniform(ks[2], (planes,), minval=0.5, maxval=1.5)
    be1 = jax.random.normal(ks[3], (planes,)) * 0.1
    m1 = jax.random.normal(ks[4], (planes,)) * 0.1
    v1 = jax.random.uniform(ks[5], (planes,), minval=0.5, maxval=1.5)
    g2 = jax.random.uniform(ks[6], (planes,), minval=0.5, maxval=1.5)
    be2 = jax.random.normal(ks[7], (planes,)) * 0.1
    m2 = jax.random.normal(ks[8], (planes,)) * 0.1
    v2 = jax.random.uniform(ks[9], (planes,), minval=0.5, maxval=1.5)
    s1, b1 = _fold_bn(g1, be1, m1, v1)
    s2, b2 = _fold_bn(g2, be2, m2, v2)
    if stride != 1 or in_planes != planes:
        ws = jax.random.normal(ks[10], (in_planes, planes), jnp.float32) * 0.2
    else:
        ws = None                                  # identity shortcut
    return (w1, s1, b1, w2, s2, b2, ws)


if __name__ == "__main__":
    key = jax.random.PRNGKey(0)

    cases = [
        dict(N=2, in_planes=4, planes=8, H=16, W=16, stride=1, relu=True),   # 1x1 shortcut
        dict(N=2, in_planes=8, planes=8, H=16, W=16, stride=1, relu=False),  # identity shortcut
    ]
    for i, c in enumerate(cases):
        kx, kp = jax.random.split(jax.random.fold_in(key, i))
        x = jax.random.normal(kx, (c["N"], c["in_planes"], c["H"], c["W"]),
                              jnp.float32)
        params = _make_params(kp, c["in_planes"], c["planes"], c["stride"])

        out = basic_block_forward(x, params, stride=c["stride"], relu=c["relu"])
        out = jax.block_until_ready(out)

        ref = ref_forward(x, params, stride=c["stride"], relu=c["relu"])
        assert out.shape == ref.shape, (out.shape, ref.shape)
        err = float(jnp.max(jnp.abs(out - ref)))
        assert err < 5e-3, err    # bf16 MXU inputs, f32 accumulation

    print("KERNEL_OK")
</pallas_src>

<mosaic_0001>
module attributes {stable_mosaic.version = 11 : i64} {
  func.func @_basic_block_kernel(%arg0: i32, %arg1: i32, %arg2: memref<1x20x18x128xbf16, #tpu.memory_space<vmem>>, %arg3: memref<3x384x128xbf16, #tpu.memory_space<vmem>>, %arg4: memref<1x128xf32, #tpu.memory_space<vmem>>, %arg5: memref<1x128xf32, #tpu.memory_space<vmem>>, %arg6: memref<3x384x128xbf16, #tpu.memory_space<vmem>>, %arg7: memref<1x128xf32, #tpu.memory_space<vmem>>, %arg8: memref<1x128xf32, #tpu.memory_space<vmem>>, %arg9: memref<128x128xbf16, #tpu.memory_space<vmem>>, %arg10: memref<1x8x16x128xf32, #tpu.memory_space<vmem>>, %arg11: memref<10x18x128xbf16, #tpu.memory_space<vmem>>) attributes {dimension_semantics = [#tpu.dimension_semantics<parallel>, #tpu.dimension_semantics<parallel>], iteration_bounds = array<i64: 2, 2>, scalar_prefetch = 0 : i64, scratch_operands = 1 : i64, tpu.core_type = #tpu.core_type<tc>, window_params = [{transform_indices = @transform_0, window_bounds = array<i64: 1, 20, 18, 128>}, {pipeline_mode = #tpu.pipeline_mode<synchronous>, transform_indices = @transform_1, window_bounds = array<i64: 3, 384, 128>}, {pipeline_mode = #tpu.pipeline_mode<synchronous>, transform_indices = @transform_2, window_bounds = array<i64: 1, 128>}, {pipeline_mode = #tpu.pipeline_mode<synchronous>, transform_indices = @transform_3, window_bounds = array<i64: 1, 128>}, {pipeline_mode = #tpu.pipeline_mode<synchronous>, transform_indices = @transform_4, window_bounds = array<i64: 3, 384, 128>}, {pipeline_mode = #tpu.pipeline_mode<synchronous>, transform_indices = @transform_5, window_bounds = array<i64: 1, 128>}, {pipeline_mode = #tpu.pipeline_mode<synchronous>, transform_indices = @transform_6, window_bounds = array<i64: 1, 128>}, {pipeline_mode = #tpu.pipeline_mode<synchronous>, transform_indices = @transform_7, window_bounds = array<i64: 128, 128>}, {transform_indices = @transform_8, window_bounds = array<i64: 1, 8, 16, 128>}]} {
    %c8_i32 = arith.constant 8 : i32
    %0 = arith.muli %arg1, %c8_i32 : i32
    %1 = tpu.assume_multiple %0, 8 : i32
    %cst = arith.constant 0.000000e+00 : f32
    %2 = vector.broadcast %cst : f32 to vector<160x128xf32>
    %c0_i32 = arith.constant 0 : i32
    %3 = arith.addi %1, %c0_i32 : i32
    %c0 = arith.constant 0 : index
    %4 = arith.index_cast %3 : i32 to index
    %c0_0 = arith.constant 0 : index
    %c0_1 = arith.constant 0 : index
    %5 = vector.load %arg2[%c0, %4, %c0_0, %c0_1] : memref<1x20x18x128xbf16, #tpu.memory_space<vmem>>, vector<1x10x18x128xbf16>
    %6 = vector.shape_cast %5 : vector<1x10x18x128xbf16> to vector<10x18x128xbf16>
    %7 = vector.extract_strided_slice %6 {offsets = [0, 0, 0], sizes = [10, 16, 128], strides = [1, 1, 1]} : vector<10x18x128xbf16> to vector<10x16x128xbf16>
    %8 = vector.extract_strided_slice %6 {offsets = [0, 1, 0], sizes = [10, 16, 128], strides = [1, 1, 1]} : vector<10x18x128xbf16> to vector<10x16x128xbf16>
    %9 = vector.extract_strided_slice %6 {offsets = [0, 2, 0], sizes = [10, 16, 128], strides = [1, 1, 1]} : vector<10x18x128xbf16> to vector<10x16x128xbf16>
    %10 = tpu.concatenate %7, %8, %9 in 2 : vector<10x16x128xbf16>, vector<10x16x128xbf16>, vector<10x16x128xbf16> -> vector<10x16x384xbf16>
    %11 = vector.shape_cast %10 : vector<10x16x384xbf16> to vector<160x384xbf16>
    %c0_2 = arith.constant 0 : index
    %c0_3 = arith.constant 0 : index
    %c0_4 = arith.constant 0 : index
    %12 = vector.load %arg3[%c0_2, %c0_3, %c0_4] : memref<3x384x128xbf16, #tpu.memory_space<vmem>>, vector<1x384x128xbf16>
    %13 = vector.shape_cast %12 : vector<1x384x128xbf16> to vector<384x128xbf16>
    %cst_5 = arith.constant dense<0.000000e+00> : vector<160x128xf32>
    %14 = tpu.matmul %11, %13, %cst_5 {dimension_numbers = #tpu.dot_dimension_numbers<[1], [0], [0], [1], [0, 0, 1, 1], [], []>} : vector<160x384xbf16>, vector<384x128xbf16>, vector<160x128xf32> -> vector<160x128xf32>
    %15 = arith.addf %2, %14 : vector<160x128xf32>
    %c1_i32 = arith.constant 1 : i32
    %16 = arith.addi %1, %c1_i32 : i32
    %c0_6 = arith.constant 0 : index
    %17 = arith.index_cast %16 : i32 to index
    %c0_7 = arith.constant 0 : index
    %c0_8 = arith.constant 0 : index
    %18 = vector.load %arg2[%c0_6, %17, %c0_7, %c0_8] : memref<1x20x18x128xbf16, #tpu.memory_space<vmem>>, vector<1x10x18x128xbf16>
    %19 = vector.shape_cast %18 : vector<1x10x18x128xbf16> to vector<10x18x128xbf16>
    %20 = vector.extract_strided_slice %19 {offsets = [0, 0, 0], sizes = [10, 16, 128], strides = [1, 1, 1]} : vector<10x18x128xbf16> to vector<10x16x128xbf16>
    %21 = vector.extract_strided_slice %19 {offsets = [0, 1, 0], sizes = [10, 16, 128], strides = [1, 1, 1]} : vector<10x18x128xbf16> to vector<10x16x128xbf16>
    %22 = vector.extract_strided_slice %19 {offsets = [0, 2, 0], sizes = [10, 16, 128], strides = [1, 1, 1]} : vector<10x18x128xbf16> to vector<10x16x128xbf16>
    %23 = tpu.concatenate %20, %21, %22 in 2 : vector<10x16x128xbf16>, vector<10x16x128xbf16>, vector<10x16x128xbf16> -> vector<10x16x384xbf16>
    %24 = vector.shape_cast %23 : vector<10x16x384xbf16> to vector<160x384xbf16>
    %c1 = arith.constant 1 : index
    %c0_9 = arith.constant 0 : index
    %c0_10 = arith.constant 0 : index
    %25 = vector.load %arg3[%c1, %c0_9, %c0_10] : memref<3x384x128xbf16, #tpu.memory_space<vmem>>, vector<1x384x128xbf16>
    %26 = vector.shape_cast %25 : vector<1x384x128xbf16> to vector<384x128xbf16>
    %cst_11 = arith.constant dense<0.000000e+00> : vector<160x128xf32>
    %27 = tpu.matmul %24, %26, %cst_11 {dimension_numbers = #tpu.dot_dimension_numbers<[1], [0], [0], [1], [0, 0, 1, 1], [], []>} : vector<160x384xbf16>, vector<384x128xbf16>, vector<160x128xf32> -> vector<160x128xf32>
    %28 = arith.addf %15, %27 : vector<160x128xf32>
    %c2_i32 = arith.constant 2 : i32
    %29 = arith.addi %1, %c2_i32 : i32
    %c0_12 = arith.constant 0 : index
    %30 = arith.index_cast %29 : i32 to index
    %c0_13 = arith.constant 0 : index
    %c0_14 = arith.constant 0 : index
    %31 = vector.load %arg2[%c0_12, %30, %c0_13, %c0_14] : memref<1x20x18x128xbf16, #tpu.memory_space<vmem>>, vector<1x10x18x128xbf16>
    %32 = vector.shape_cast %31 : vector<1x10x18x128xbf16> to vector<10x18x128xbf16>
    %33 = vector.extract_strided_slice %32 {offsets = [0, 0, 0], sizes = [10, 16, 128], strides = [1, 1, 1]} : vector<10x18x128xbf16> to vector<10x16x128xbf16>
    %34 = vector.extract_strided_slice %32 {offsets = [0, 1, 0], sizes = [10, 16, 128], strides = [1, 1, 1]} : vector<10x18x128xbf16> to vector<10x16x128xbf16>
    %35 = vector.extract_strided_slice %32 {offsets = [0, 2, 0], sizes = [10, 16, 128], strides = [1, 1, 1]} : vector<10x18x128xbf16> to vector<10x16x128xbf16>
    %36 = tpu.concatenate %33, %34, %35 in 2 : vector<10x16x128xbf16>, vector<10x16x128xbf16>, vector<10x16x128xbf16> -> vector<10x16x384xbf16>
    %37 = vector.shape_cast %36 : vector<10x16x384xbf16> to vector<160x384xbf16>
    %c2 = arith.constant 2 : index
    %c0_15 = arith.constant 0 : index
    %c0_16 = arith.constant 0 : index
    %38 = vector.load %arg3[%c2, %c0_15, %c0_16] : memref<3x384x128xbf16, #tpu.memory_space<vmem>>, vector<1x384x128xbf16>
    %39 = vector.shape_cast %38 : vector<1x384x128xbf16> to vector<384x128xbf16>
    %cst_17 = arith.constant dense<0.000000e+00> : vector<160x128xf32>
    %40 = tpu.matmul %37, %39, %cst_17 {dimension_numbers = #tpu.dot_dimension_numbers<[1], [0], [0], [1], [0, 0, 1, 1], [], []>} : vector<160x384xbf16>, vector<384x128xbf16>, vector<160x128xf32> -> vector<160x128xf32>
    %41 = arith.addf %28, %40 : vector<160x128xf32>
    %c0_18 = arith.constant 0 : index
    %c0_19 = arith.constant 0 : index
    %42 = vector.load %arg4[%c0_18, %c0_19] : memref<1x128xf32, #tpu.memory_space<vmem>>, vector<1x128xf32>
    %43 = vector.broadcast %42 : vector<1x128xf32> to vector<160x128xf32>
    %44 = arith.mulf %41, %43 : vector<160x128xf32>
    %c0_20 = arith.constant 0 : index
    %c0_21 = arith.constant 0 : index
    %45 = vector.load %arg5[%c0_20, %c0_21] : memref<1x128xf32, #tpu.memory_space<vmem>>, vector<1x128xf32>
    %46 = vector.broadcast %45 : vector<1x128xf32> to vector<160x128xf32>
    %47 = arith.addf %44, %46 : vector<160x128xf32>
    %cst_22 = arith.constant 0.000000e+00 : f32
    %48 = vector.broadcast %cst_22 : f32 to vector<160x128xf32>
    %49 = arith.maximumf %47, %48 : vector<160x128xf32>
    %50 = vector.shape_cast %49 : vector<160x128xf32> to vector<10x16x128xf32>
    %51 = tpu.iota {dimensions = array<i32: 0>} : vector<10x1x1xi32>
    %c8_i32_23 = arith.constant 8 : i32
    %52 = arith.muli %arg1, %c8_i32_23 : i32
    %c1_i32_24 = arith.constant 1 : i32
    %53 = arith.subi %52, %c1_i32_24 : i32
    %54 = vector.broadcast %53 : i32 to vector<10x1x1xi32>
    %55 = arith.addi %51, %54 : vector<10x1x1xi32>
    %c0_i32_25 = arith.constant 0 : i32
    %56 = vector.broadcast %c0_i32_25 : i32 to vector<10x1x1xi32>
    %57 = arith.cmpi sge, %55, %56 : vector<10x1x1xi32>
    %c16_i32 = arith.constant 16 : i32
    %58 = vector.broadcast %c16_i32 : i32 to vector<10x1x1xi32>
    %59 = arith.cmpi slt, %55, %58 : vector<10x1x1xi32>
    %60 = arith.andi %57, %59 : vector<10x1x1xi1>
    %61 = arith.extui %60 : vector<10x1x1xi1> to vector<10x1x1xi32>
    %62 = arith.sitofp %61 : vector<10x1x1xi32> to vector<10x1x1xf32>
    %63 = vector.broadcast %62 : vector<10x1x1xf32> to vector<10x16x128xf32>
    %64 = arith.mulf %50, %63 : vector<10x16x128xf32>
    %cst_26 = arith.constant 0.000000e+00 : bf16
    %65 = vector.broadcast %cst_26 : bf16 to vector<10x1x128xbf16>
    %c0_27 = arith.constant 0 : index
    %c0_28 = arith.constant 0 : index
    %c0_29 = arith.constant 0 : index
    %66 = vector.load %arg11[%c0_27, %c0_28, %c0_29] : memref<10x18x128xbf16, #tpu.memory_space<vmem>>, vector<10x1x128xbf16>
    tpu.vector_store %arg11[%c0_27, %c0_28, %c0_29], %65 {strides = array<i32>} : memref<10x18x128xbf16, #tpu.memory_space<vmem>>, vector<10x1x128xbf16>,
    %c0_30 = arith.constant 0 : index
    %c17 = arith.constant 17 : index
    %c0_31 = arith.constant 0 : index
    %67 = vector.load %arg11[%c0_30, %c17, %c0_31] : memref<10x18x128xbf16, #tpu.memory_space<vmem>>, vector<10x1x128xbf16>
    tpu.vector_store %arg11[%c0_30, %c17, %c0_31], %65 {strides = array<i32>} : memref<10x18x128xbf16, #tpu.memory_space<vmem>>, vector<10x1x128xbf16>,
    %68 = arith.truncf %64 : vector<10x16x128xf32> to vector<10x16x128xbf16>
    %c0_32 = arith.constant 0 : index
    %c1_33 = arith.constant 1 : index
    %c0_34 = arith.constant 0 : index
    %69 = vector.load %arg11[%c0_32, %c1_33, %c0_34] : memref<10x18x128xbf16, #tpu.memory_space<vmem>>, vector<10x16x128xbf16>
    tpu.vector_store %arg11[%c0_32, %c1_33, %c0_34], %68 {strides = array<i32>} : memref<10x18x128xbf16, #tpu.memory_space<vmem>>, vector<10x16x128xbf16>,
    %cst_35 = arith.constant 0.000000e+00 : f32
    %70 = vector.broadcast %cst_35 : f32 to vector<128x128xf32>
    %c0_36 = arith.constant 0 : index
    %c0_37 = arith.constant 0 : index
    %c0_38 = arith.constant 0 : index
    %71 = vector.load %arg11[%c0_36, %c0_37, %c0_38] : memref<10x18x128xbf16, #tpu.memory_space<vmem>>, vector<8x18x128xbf16>
    %72 = vector.extract_strided_slice %71 {offsets = [0, 0, 0], sizes = [8, 16, 128], strides = [1, 1, 1]} : vector<8x18x128xbf16> to vector<8x16x128xbf16>
    %73 = vector.extract_strided_slice %71 {offsets = [0, 1, 0], sizes = [8, 16, 128], strides = [1, 1, 1]} : vector<8x18x128xbf16> to vector<8x16x128xbf16>
    %74 = vector.extract_strided_slice %71 {offsets = [0, 2, 0], sizes = [8, 16, 128], strides = [1, 1, 1]} : vector<8x18x128xbf16> to vector<8x16x128xbf16>
    %75 = tpu.concatenate %72, %73, %74 in 2 : vector<8x16x128xbf16>, vector<8x16x128xbf16>, vector<8x16x128xbf16> -> vector<8x16x384xbf16>
    %76 = vector.shape_cast %75 : vector<8x16x384xbf16> to vector<128x384xbf16>
    %c0_39 = arith.constant 0 : index
    %c0_40 = arith.constant 0 : index
    %c0_41 = arith.constant 0 : index
    %77 = vector.load %arg6[%c0_39, %c0_40, %c0_41] : memref<3x384x128xbf16, #tpu.memory_space<vmem>>, vector<1x384x128xbf16>
    %78 = vector.shape_cast %77 : vector<1x384x128xbf16> to vector<384x128xbf16>
    %cst_42 = arith.constant dense<0.000000e+00> : vector<128x128xf32>
    %79 = tpu.matmul %76, %78, %cst_42 {dimension_numbers = #tpu.dot_dimension_numbers<[1], [0], [0], [1], [0, 0, 1, 1], [], []>} : vector<128x384xbf16>, vector<384x128xbf16>, vector<128x128xf32> -> vector<128x128xf32>
    %80 = arith.addf %70, %79 : vector<128x128xf32>
    %c1_43 = arith.constant 1 : index
    %c0_44 = arith.constant 0 : index
    %c0_45 = arith.constant 0 : index
    %81 = vector.load %arg11[%c1_43, %c0_44, %c0_45] : memref<10x18x128xbf16, #tpu.memory_space<vmem>>, vector<8x18x128xbf16>
    %82 = vector.extract_strided_slice %81 {offsets = [0, 0, 0], sizes = [8, 16, 128], strides = [1, 1, 1]} : vector<8x18x128xbf16> to vector<8x16x128xbf16>
    %83 = vector.extract_strided_slice %81 {offsets = [0, 1, 0], sizes = [8, 16, 128], strides = [1, 1, 1]} : vector<8x18x128xbf16> to vector<8x16x128xbf16>
    %84 = vector.extract_strided_slice %81 {offsets = [0, 2, 0], sizes = [8, 16, 128], strides = [1, 1, 1]} : vector<8x18x128xbf16> to vector<8x16x128xbf16>
    %85 = tpu.concatenate %82, %83, %84 in 2 : vector<8x16x128xbf16>, vector<8x16x128xbf16>, vector<8x16x128xbf16> -> vector<8x16x384xbf16>
    %86 = vector.shape_cast %85 : vector<8x16x384xbf16> to vector<128x384xbf16>
    %c1_46 = arith.constant 1 : index
    %c0_47 = arith.constant 0 : index
    %c0_48 = arith.constant 0 : index
    %87 = vector.load %arg6[%c1_46, %c0_47, %c0_48] : memref<3x384x128xbf16, #tpu.memory_space<vmem>>, vector<1x384x128xbf16>
    %88 = vector.shape_cast %87 : vector<1x384x128xbf16> to vector<384x128xbf16>
    %cst_49 = arith.constant dense<0.000000e+00> : vector<128x128xf32>
    %89 = tpu.matmul %86, %88, %cst_49 {dimension_numbers = #tpu.dot_dimension_numbers<[1], [0], [0], [1], [0, 0, 1, 1], [], []>} : vector<128x384xbf16>, vector<384x128xbf16>, vector<128x128xf32> -> vector<128x128xf32>
    %90 = arith.addf %80, %89 : vector<128x128xf32>
    %c2_50 = arith.constant 2 : index
    %c0_51 = arith.constant 0 : index
    %c0_52 = arith.constant 0 : index
    %91 = vector.load %arg11[%c2_50, %c0_51, %c0_52] : memref<10x18x128xbf16, #tpu.memory_space<vmem>>, vector<8x18x128xbf16>
    %92 = vector.extract_strided_slice %91 {offsets = [0, 0, 0], sizes = [8, 16, 128], strides = [1, 1, 1]} : vector<8x18x128xbf16> to vector<8x16x128xbf16>
    %93 = vector.extract_strided_slice %91 {offsets = [0, 1, 0], sizes = [8, 16, 128], strides = [1, 1, 1]} : vector<8x18x128xbf16> to vector<8x16x128xbf16>
    %94 = vector.extract_strided_slice %91 {offsets = [0, 2, 0], sizes = [8, 16, 128], strides = [1, 1, 1]} : vector<8x18x128xbf16> to vector<8x16x128xbf16>
    %95 = tpu.concatenate %92, %93, %94 in 2 : vector<8x16x128xbf16>, vector<8x16x128xbf16>, vector<8x16x128xbf16> -> vector<8x16x384xbf16>
    %96 = vector.shape_cast %95 : vector<8x16x384xbf16> to vector<128x384xbf16>
    %c2_53 = arith.constant 2 : index
    %c0_54 = arith.constant 0 : index
    %c0_55 = arith.constant 0 : index
    %97 = vector.load %arg6[%c2_53, %c0_54, %c0_55] : memref<3x384x128xbf16, #tpu.memory_space<vmem>>, vector<1x384x128xbf16>
    %98 = vector.shape_cast %97 : vector<1x384x128xbf16> to vector<384x128xbf16>
    %cst_56 = arith.constant dense<0.000000e+00> : vector<128x128xf32>
    %99 = tpu.matmul %96, %98, %cst_56 {dimension_numbers = #tpu.dot_dimension_numbers<[1], [0], [0], [1], [0, 0, 1, 1], [], []>} : vector<128x384xbf16>, vector<384x128xbf16>, vector<128x128xf32> -> vector<128x128xf32>
    %100 = arith.addf %90, %99 : vector<128x128xf32>
    %c0_57 = arith.constant 0 : index
    %c0_58 = arith.constant 0 : index
    %101 = vector.load %arg7[%c0_57, %c0_58] : memref<1x128xf32, #tpu.memory_space<vmem>>, vector<1x128xf32>
    %102 = vector.broadcast %101 : vector<1x128xf32> to vector<128x128xf32>
    %103 = arith.mulf %100, %102 : vector<128x128xf32>
    %c0_59 = arith.constant 0 : index
    %c0_60 = arith.constant 0 : index
    %104 = vector.load %arg8[%c0_59, %c0_60] : memref<1x128xf32, #tpu.memory_space<vmem>>, vector<1x128xf32>
    %105 = vector.broadcast %104 : vector<1x128xf32> to vector<128x128xf32>
    %106 = arith.addf %103, %105 : vector<128x128xf32>
    %c1_i32_61 = arith.constant 1 : i32
    %107 = arith.addi %1, %c1_i32_61 : i32
    %c1_i32_62 = arith.constant 1 : i32
    %108 = arith.addi %107, %c1_i32_62 : i32
    %c0_63 = arith.constant 0 : index
    %109 = arith.index_cast %108 : i32 to index
    %c0_64 = arith.constant 0 : index
    %c0_65 = arith.constant 0 : index
    %110 = vector.load %arg2[%c0_63, %109, %c0_64, %c0_65] : memref<1x20x18x128xbf16, #tpu.memory_space<vmem>>, vector<1x8x18x128xbf16>
    %111 = vector.shape_cast %110 : vector<1x8x18x128xbf16> to vector<8x18x128xbf16>
    %112 = vector.extract_strided_slice %111 {offsets = [0, 1, 0], sizes = [8, 16, 128], strides = [1, 1, 1]} : vector<8x18x128xbf16> to vector<8x16x128xbf16>
    %113 = vector.shape_cast %112 : vector<8x16x128xbf16> to vector<128x128xbf16>
    %c0_66 = arith.constant 0 : index
    %c0_67 = arith.constant 0 : index
    %114 = vector.load %arg9[%c0_66, %c0_67] : memref<128x128xbf16, #tpu.memory_space<vmem>>, vector<128x128xbf16>
    %cst_68 = arith.constant dense<0.000000e+00> : vector<128x128xf32>
    %115 = tpu.matmul %113, %114, %cst_68 {dimension_numbers = #tpu.dot_dimension_numbers<[1], [0], [0], [1], [0, 0, 1, 1], [], []>} : vector<128x128xbf16>, vector<128x128xbf16>, vector<128x128xf32> -> vector<128x128xf32>
    %116 = arith.addf %106, %115 : vector<128x128xf32>
    %cst_69 = arith.constant 0.000000e+00 : f32
    %117 = vector.broadcast %cst_69 : f32 to vector<128x128xf32>
    %118 = arith.maximumf %116, %117 : vector<128x128xf32>
    %119 = vector.shape_cast %118 : vector<128x128xf32> to vector<8x16x128xf32>
    %c0_70 = arith.constant 0 : index
    %c0_71 = arith.constant 0 : index
    %c0_72 = arith.constant 0 : index
    %c0_73 = arith.constant 0 : index
    %120 = vector.load %arg10[%c0_70, %c0_71, %c0_72, %c0_73] : memref<1x8x16x128xf32, #tpu.memory_space<vmem>>, vector<1x8x16x128xf32>
    %121 = vector.shape_cast %120 : vector<1x8x16x128xf32> to vector<8x16x128xf32>
    %122 = vector.shape_cast %119 : vector<8x16x128xf32> to vector<1x8x16x128xf32>
    tpu.vector_store %arg10[%c0_70, %c0_71, %c0_72, %c0_73], %122 {strides = array<i32>} : memref<1x8x16x128xf32, #tpu.memory_space<vmem>>, vector<1x8x16x128xf32>,
    return
  }
  func.func @transform_0(%arg0: i32, %arg1: i32) -> (i32, i32, i32, i32) {
    %c0_i32 = arith.constant 0 : i32
    %c0_i32_0 = arith.constant 0 : i32
    %c0_i32_1 = arith.constant 0 : i32
    %c0_i32_2 = arith.constant 0 : i32
    return %arg0, %c0_i32, %c0_i32_0, %c0_i32_1 : i32, i32, i32, i32
  }
  func.func @transform_1(%arg0: i32, %arg1: i32) -> (i32, i32, i32) {
    %c0_i32 = arith.constant 0 : i32
    %c0_i32_0 = arith.constant 0 : i32
    %c0_i32_1 = arith.constant 0 : i32
    %c0_i32_2 = arith.constant 0 : i32
    return %c0_i32, %c0_i32_0, %c0_i32_1 : i32, i32, i32
  }
  func.func @transform_2(%arg0: i32, %arg1: i32) -> (i32, i32) {
    %c0_i32 = arith.constant 0 : i32
    %c0_i32_0 = arith.constant 0 : i32
    %c0_i32_1 = arith.constant 0 : i32
    return %c0_i32, %c0_i32_0 : i32, i32
  }
  func.func @transform_3(%arg0: i32, %arg1: i32) -> (i32, i32) {
    %c0_i32 = arith.constant 0 : i32
    %c0_i32_0 = arith.constant 0 : i32
    %c0_i32_1 = arith.constant 0 : i32
    return %c0_i32, %c0_i32_0 : i32, i32
  }
  func.func @transform_4(%arg0: i32, %arg1: i32) -> (i32, i32, i32) {
    %c0_i32 = arith.constant 0 : i32
    %c0_i32_0 = arith.constant 0 : i32
    %c0_i32_1 = arith.constant 0 : i32
    %c0_i32_2 = arith.constant 0 : i32
    return %c0_i32, %c0_i32_0, %c0_i32_1 : i32, i32, i32
  }
  func.func @transform_5(%arg0: i32, %arg1: i32) -> (i32, i32) {
    %c0_i32 = arith.constant 0 : i32
    %c0_i32_0 = arith.constant 0 : i32
    %c0_i32_1 = arith.constant 0 : i32
    return %c0_i32, %c0_i32_0 : i32, i32
  }
  func.func @transform_6(%arg0: i32, %arg1: i32) -> (i32, i32) {
    %c0_i32 = arith.constant 0 : i32
    %c0_i32_0 = arith.constant 0 : i32
    %c0_i32_1 = arith.constant 0 : i32
    return %c0_i32, %c0_i32_0 : i32, i32
  }
  func.func @transform_7(%arg0: i32, %arg1: i32) -> (i32, i32) {
    %c0_i32 = arith.constant 0 : i32
    %c0_i32_0 = arith.constant 0 : i32
    %c0_i32_1 = arith.constant 0 : i32
    return %c0_i32, %c0_i32_0 : i32, i32
  }
  func.func @transform_8(%arg0: i32, %arg1: i32) -> (i32, i32, i32, i32) {
    %c0_i32 = arith.constant 0 : i32
    %c0_i32_0 = arith.constant 0 : i32
    %c0_i32_1 = arith.constant 0 : i32
    return %arg0, %arg1, %c0_i32, %c0_i32_0 : i32, i32, i32, i32
  }
}

</mosaic_0001>

<bundles_post_ra>
// kernel: tpu_custom_call.1
= control target key start
LH: loop header
LB: loop body
LE: loop exit
PB: predicated region body
PF: predicated region fallthrough
CT: control target
= control target key end

     0   :  { %s8511_s0 = inlined_call_operand.vmem [shape: bf16[2,20,18,128], index: 0, kind: input, shape index: {}]   ;;  %s8512_s1 = inlined_call_operand.vmem [shape: bf16[3,384,128], index: 1, kind: input, shape index: {}]   ;;  %s8513_s2 = inlined_call_operand.vmem [shape: f32[1,128], index: 2, kind: input, shape index: {}]   ;;  %s8514_s3 = inlined_call_operand.vmem [shape: f32[1,128], index: 3, kind: input, shape index: {}]   ;;  %s8515_s4 = inlined_call_operand.hbm [shape: bf16[3,384,128], index: 4, kind: input, shape index: {}]   ;;  %s8516_s5 = inlined_call_operand.vmem [shape: f32[1,128], index: 5, kind: input, shape index: {}]   ;;  %s8517_s6 = inlined_call_operand.vmem [shape: f32[1,128], index: 6, kind: input, shape index: {}]   ;;  %s8518_s7 = inlined_call_operand.vmem [shape: bf16[128,128], index: 7, kind: input, shape index: {}]   ;;  %s8519_s8 = inlined_call_operand.hbm [shape: f32[2,16,16,128], index: 8, kind: output, shape index: {}]  }
   0x1   :  { %8525 = sst [smem:[#allocation17_spill]] %s8515_s4 }
   0x2   :  { %13 = vsyncpa [#allocation4], 0 }
   0x3   :  { %14 = vsyncpa [#allocation5], 0 }
   0x4   :  { %16 = vsyncpa [#allocation5 + $0x1], 0  ;;  %s6713_s27 = smov 0   ;;  %s6715_s28 = smov 0  }
   0x5   :  { %s6717_s29 = smov 0   ;;  %s6719_s30 = smov 0  }
   0x6   :  { %s6721_s9 = smov 0   ;;  %s6723_s10 = smov 0  }
   0x7   :  { %s6725_s11 = smov 0   ;;  %s6727_s12 = smov 0  }
   0x8 LB: > { %8526 = sst [smem:[#allocation9_spill]] %s6656_s11  ;;  %s5160_s13 = sadd.s32 4294967295, %s6660_s12   ;;  %s6660_s12 = sphi %s6727_s12, %s22_s12   ;;  %s6656_s11 = sphi %s6725_s11, %s8565_s11   ;;  %s6652_s10 = sphi %s6723_s10, %s8570_s10   ;;  %s6648_s9 = sphi %s6721_s9, %s8563_s9   ;;  %s6644_s30 = sphi %s6719_s30, %s8569_s30   ;;  %s6640_s29 = sphi %s6717_s29, %s8568_s29   ;;  %s6636_s28 = sphi %s6715_s28, %s8567_s28   ;;  %s6632_s27 = sphi %s6713_s27, %s8566_s27  }
   0x9   : > { %s5161_s14 = sadd.s32 4294967294, %s6660_s12   ;;  %s31_s15 = sadd.s32 1, %s6652_s10 }
   0xa   : > { %s34_s16 = sadd.s32 1, %s6656_s11  ;;  %p32_p0 = scmp.ge.s32.totalorder %s31_s15, 2 }
   0xb   : > { %s216_s17 = sadd.s32 1, %s6640_s29  ;;  %p226_p1 = scmp.ne.s32.totalorder %s6640_s29, %s6636_s28 }
   0xc   : > { %p227_p2 = scmp.eq.s32.totalorder %s5160_s13, 3  ;;  %s8572_s15 = smov (%p32_p0, %s31_s15), 0 }
   0xd   : > { %8527 = sst [smem:[#allocation10_spill]] %s8572_s15  ;;  %s8574_s16 = smov (!%p32_p0, %s34_s16), %s6656_s11 }
   0xe   : > { %s212_s18 = ssub.s32 %s6652_s10, %s8572_s15  ;;  %p6765_p3 = por %p227_p2, %p226_p1 }
   0xf   : > { %p36_p4 = scmp.ge.s32.totalorder %s8574_s16, 2  ;;  %p232_p5 = scmp.ne.s32.totalorder %s6636_s28, %s6632_s27 }
  0x10   : > { %p233_p6 = scmp.eq.s32.totalorder %s5161_s14, 3  ;;  %p5162_p7 = scmp.ge.s32.totalorder %s6660_s12, 1 }
  0x11   : > { %s8576_s16 = smov (%p36_p4, %s8574_s16), 0  ;;  %p240_p9 = scmp.lt.s32.totalorder %s6660_s12, 5 }
  0x12   : > { %8529 = sst [smem:[#allocation11_spill]] %s8576_s16  ;;  %p6774_p8 = por %p233_p6, %p232_p5 }
  0x13   : > { %s211_s21 = ssub.s32 %s6656_s11, %s8576_s16  ;;  %p6781_p10 = pnand %p5162_p7, %p240_p9 }
  0x14   : > { %s213_s22 = sor.u32 %s212_s18, %s211_s21  ;;  %p6785_p12 = scmp.eq.s32.totalorder %s5160_s13, 0 }
  0x15   : > { %p214_p11 = scmp.eq.s32.totalorder %s213_s22, 0  ;;  %p6437_p13 = pneg %p6781_p10 }
  0x16   : > { %s8533_s4 = sld [smem:[#allocation17_spill]]  ;;  %s6662_s18 = smov [#allocation3]  }
  0x17   : > { %s6795_s15 = scalar_select %p214_p11, %s6640_s29, %s216_s17  }
  0x18   : > { %s262_s21 = sshll.u32 %s6662_s18, 4  ;;  %p6438_p0 = pnand %p6785_p12, %p6437_p13  ;;  %s263_s21 = int_to_ptr.vmem [resolvable:$true] %s262_s21 }
  0x19   : > { %s6663_s22 = smov 64   ;;  %s6664_s13 = smov 4  }
  0x1a   : > { %295 = sbr.rel (%p6781_p10) target bundleno = 1082 (0x43a), region = 52 }
  0x1c   : > { %s260_s14 = sshll.u32 %s8533_s4, 4  ;;  %s261_s14 = int_to_ptr.hbm [resolvable:$true] %s260_s14 }
  0x1d   : > { %6440 = dma.hbm_to_vmem [thread:$0]  (!%p6438_p0), %s261_s14, 9216, %s263_s21, [#allocation4], %s6663_s22, %s6663_s22, %s6664_s13  }
  0x1f   : > { %6623 = dma.done.wait (%p6785_p12), [#allocation4], 9216  }
  0x20   : > { %6625 = vsyncadd (%p6785_p12), [#allocation4], 4294958080  ;;  %p330_p1 = scmp.lt.s32.totalorder %s6648_s9, 1  ;;  %v6250_v0 = vld [vmem:[%s8512_s1 + $0xf8] sm:$0xff]  ;;  %v6249_v4 = vld [vmem:[%s8512_s1 + $0xf0] sm:$0xff]  ;;  %vm592_vm1 = vcmask 1046528  }
  0x21   : > { %v6258_v1 = vld [vmem:[%s8512_s1 + $0x138] sm:$0xff]  ;;  %1168 = vmatpush.bf16.msra.mxu0 %v6250_v0  ;;  %v6257_v5 = vld [vmem:[%s8512_s1 + $0x130] sm:$0xff]  ;;  %v6248_v8 = vld [vmem:[%s8512_s1 + $0xe8] sm:$0xff]  ;;  %vm461_vm0 = vsmask.f32 7424  ;;  %vm2499_vm2 = vcmask 1040384  }
  0x22   : > { %s331_s17 = scalar_select %p330_p1, %s6648_s9, 1  ;;  %v6266_v2 = vld [vmem:[%s8512_s1 + $0x178] sm:$0xff]  ;;  %1227 = vmatpush.bf16.msra.mxu1 %v6258_v1  ;;  %v6265_v6 = vld [vmem:[%s8512_s1 + $0x170] sm:$0xff]  ;;  %v6256_v9 = vld [vmem:[%s8512_s1 + $0x128] sm:$0xff]  ;;  %vm2500_vm3 = vsmask.f32 256 }
  0x23   : > { %v6216_v3 = vld [vmem:[%s8512_s1 + $0x38] sm:$0xff]  ;;  %1286 = vmatpush.bf16.msra.mxu2 %v6266_v2  ;;  %v6215_v7 = vld [vmem:[%s8512_s1 + $0x30] sm:$0xff]  ;;  %v6264_v10 = vld [vmem:[%s8512_s1 + $0x168] sm:$0xff]  ;;  %vm2532_vm5 = vsmask.f32 7938  ;;  %s5169_s22 = sshll.u32 %s6644_s30, 3 }
  0x24   : > { %s6430_s13 = smul.u32 240, %s331_s17  ;;  %1489 = vmatpush.bf16.msra.mxu3 %v6216_v3  ;;  %v6214_v11 = vld [vmem:[%s8512_s1 + $0x28] sm:$0xff]  ;;  %v6247_v12 = vld [vmem:[%s8512_s1 + $0xe0] sm:$0xff]  ;;  %v6246_v17 = vld [vmem:[%s8512_s1 + $0xd8] sm:$0xff]  ;;  %s5740_s24 = sadd.s32 4294967295, %s5169_s22  ;;  %vm2786_vm10 = vcmask 1043456  }
  0x25   : > { %s6198_s17 = smul.u32 96, %s6644_s30  ;;  %1169 = vmatpush.bf16.msra.mxu0 %v6249_v4  ;;  %v6255_v13 = vld [vmem:[%s8512_s1 + $0x120] sm:$0xff]  ;;  %v6254_v18 = vld [vmem:[%s8512_s1 + $0x118] sm:$0xff]  ;;  %v6245_v23 = vld [vmem:[%s8512_s1 + $0xd0] sm:$0xff]  ;;  %vm2584_vm15 = vsmask.f32 4368 }
  0x26   : > { %s334_s4 = scalar_lea.vmem %s8511_s0, %s6430_s13  ;;  %1228 = vmatpush.bf16.msra.mxu1 %v6257_v5  ;;  %v6263_v14 = vld [vmem:[%s8512_s1 + $0x160] sm:$0xff]  ;;  %v6262_v21 = vld [vmem:[%s8512_s1 + $0x158] sm:$0xff]  ;;  %v6253_v24 = vld [vmem:[%s8512_s1 + $0x110] sm:$0xff]  ;;  %s6194_s14 = sshll.u32 %s6648_s9, 5 }
  0x27   : > { %1287 = vmatpush.bf16.msra.mxu2 %v6265_v6  ;;  %s6847_s13 = scalar_lea.vmem %s334_s4, %s6198_s17  ;;  %v6213_v15 = vld [vmem:[%s8512_s1 + $0x20] sm:$0xff]  ;;  %v6212_v22 = vld [vmem:[%s8512_s1 + $0x18] sm:$0xff]  ;;  %v6261_v27 = vld [vmem:[%s8512_s1 + $0x150] sm:$0xff]  ;;  %s327_s17 = sand.u32 1, %s6636_s28  }
  0x28   : > { %1490 = vmatpush.bf16.msra.mxu3 %v6215_v7  ;;  %v5216_v16 = vld [vmem:[%s6847_s13 + $0x14] sm:$0x1]  ;;  %v6233_v19 = vld [vmem:[%s6847_s13 + $0xc] sm:$0xff]  ;;  %v6243_v36 = vld [vmem:[%s8512_s1 + $0xc0] sm:$0xff]  ;;  %s5167_s4 = sshll.u32 %s327_s17, 7  ;;  %s5044_s16 = scalar_lea.sflag [#allocation5], %s327_s17 }
  0x29   : > { %1170 = vmatpush.bf16.msra.mxu0 %v6248_v8  ;;  %v785_v20 = vunpack.c.l.b16 %v5216_v16  ;;  %v808_v26 = vshll.u32 %v6233_v19, 16  ;;  %v6211_v28 = vld [vmem:[%s8512_s1 + $0x10] sm:$0xff]  ;;  %v6244_v29 = vld [vmem:[%s8512_s1 + $0xc8] sm:$0xff]  ;;  %v806_v31 = vshrl.u32 %v6233_v19, 16  ;;  %v6251_v37 = vld [vmem:[%s8512_s1 + $0x100] sm:$0xff]  ;;  %v935_v42 = vrot.slane %v6233_v19, 1 }
  0x2a   : > { %1229 = vmatpush.bf16.msra.mxu1 %v6256_v9  ;;  %v6252_v30 = vld [vmem:[%s8512_s1 + $0x108] sm:$0xff]  ;;  %v6259_v40 = vld [vmem:[%s8512_s1 + $0x140] sm:$0xff]  ;;  %v6224_v45 = vld [vmem:[%s8512_s1 + $0x78] sm:$0xff]  ;;  %s8318_s18 = scalar_lea.vmem [#allocation6], %s5167_s4 }
  0x2b   : > { %1288 = vmatpush.bf16.msra.mxu2 %v6264_v10  ;;  %v795_v25 = vpack.c.b16 %v785_v20, %v785_v20  ;;  %v810_v32 = vrot.slane %v808_v26, 1  ;;  %v6260_v34 = vld [vmem:[%s8512_s1 + $0x148] sm:$0xff]  ;;  %v6209_v41 = vld [vmem:[%s8512_s1] sm:$0xff]  ;;  %v6234_v48 = vld [vmem:[%s6847_s13 + $0x18] sm:$0xff] }
  0x2c   : > { %1491 = vmatpush.bf16.msra.mxu3 %v6214_v11  ;;  %v6210_v35 = vld [vmem:[%s8512_s1 + $0x8] sm:$0xff]  ;;  %v5219_v44 = vld [vmem:[%s6847_s13 + $0x20] sm:$0x1]  ;;  %v6223_v51 = vld [vmem:[%s8512_s1 + $0x70] sm:$0xff]  ;;  %v820_v53 = vshll.u32 %v6234_v48, 16  ;;  %v818_v55 = vshrl.u32 %v6234_v48, 16 }
  0x2d   : > { %1171 = vmatpush.bf16.msra.mxu0 %v6247_v12  ;;  %v813_v33 = vshll.u32 %v795_v25, 16  ;;  %v811_v38 = vor.u32 %v810_v32, %v806_v31  ;;  %v936_v43 = vrot.slane %v795_v25, 1  ;;  %v6917_v47 = vld [vmem:[%s6847_s13] sm:$0xff]  ;;  %v786_v49 = vunpack.c.l.b16 %v5219_v44  ;;  %v6222_v54 = vld [vmem:[%s8512_s1 + $0x68] sm:$0xff]  ;;  %v6942_v16 = vld [vmem:[%s6847_s13 + $0x18] sm:$0xff] }
  0x2e   : > { %1230 = vmatpush.bf16.msra.mxu1 %v6255_v13  ;;  %v822_v56 = vrot.slane %v820_v53, 1  ;;  %v938_v60 = vrot.slane %v6234_v48, 1  ;;  %v5222_v62 = vld [vmem:[%s6847_s13 + $0x2c] sm:$0x1]  ;;  %v6235_v1 = vld [vmem:[%s6847_s13 + $0x24] sm:$0xff]  ;;  %v6237_v32 = vld [vmem:[%s6847_s13 + $0x3c] sm:$0xff] }
  0x2f   : > { %1289 = vmatpush.bf16.msra.mxu2 %v6263_v14  ;;  %v815_v39 = vrot.slane %v813_v33, 1  ;;  %v937_v50 = vsel %vm592_vm1, %v935_v42, %v936_v43  ;;  %v796_v52 = vpack.c.b16 %v786_v49, %v786_v49  ;;  %v6931_v0 = vld [vmem:[%s6847_s13 + $0xc] sm:$0xff]  ;;  %v787_v2 = vunpack.c.l.b16 %v5222_v62  ;;  %v6221_v6 = vld [vmem:[%s8512_s1 + $0x60] sm:$0xff]  ;;  %v5225_v14 = vld [vmem:[%s6847_s13 + $0x38] sm:$0x1] }
  0x30   : > { %1492 = vmatpush.bf16.msra.mxu3 %v6213_v15  ;;  %v823_v58 = vor.u32 %v822_v56, %v818_v55  ;;  %v832_v5 = vshll.u32 %v6235_v1, 16  ;;  %v830_v7 = vshrl.u32 %v6235_v1, 16  ;;  %v941_v12 = vrot.slane %v6235_v1, 1  ;;  %v6950_v31 = vld [vmem:[%s6847_s13 + $0x24] sm:$0xff]  ;;  %v5234_v62 = vld [vmem:[%s6847_s13 + $0x5c] sm:$0x1]  ;;  %vm7471_vm4 = vmand %vm2499_vm2, %vm2500_vm3 }
  0x31   : > { %1172 = vmatpush.bf16.msra.mxu0 %v6246_v17  ;;  %v816_v46 = vsel %vm461_vm0, %v811_v38, %v815_v39  ;;  %v825_v57 = vshll.u32 %v796_v52, 16  ;;  %v939_v61 = vrot.slane %v796_v52, 1  ;;  %v797_v4 = vpack.c.b16 %v787_v2, %v787_v2  ;;  %v6236_v17 = vld [vmem:[%s6847_s13 + $0x30] sm:$0xff]  ;;  %v6238_v49 = vld [vmem:[%s6847_s13 + $0x48] sm:$0xff]  ;;  %vm7483_vm6 = vmand %vm2499_vm2, %vm2532_vm5 }
  0x32   : > { %1231 = vmatpush.bf16.msra.mxu1 %v6254_v18  ;;  %v834_v8 = vrot.slane %v832_v5, 1  ;;  %v788_v18 = vunpack.c.l.b16 %v5225_v14  ;;  %v854_v38 = vshrl.u32 %v6237_v32, 16  ;;  %v947_v43 = vrot.slane %v6237_v32, 1  ;;  %v6239_v2 = vld [vmem:[%s6847_s13 + $0x54] sm:$0xff]  ;;  %vm7559_vm11 = vmand %vm2786_vm10, %vm2532_vm5 }
  0x33   : > { %1290 = vmatpush.bf16.msra.mxu2 %v6262_v21  ;;  %v827_v59 = vrot.slane %v825_v57, 1  ;;  %v940_v3 = vsel %vm592_vm1, %v938_v60, %v939_v61  ;;  %v837_v9 = vshll.u32 %v797_v4, 16  ;;  %v942_v13 = vrot.slane %v797_v4, 1  ;;  %vm7578_vm2 = vmor %vm2500_vm3, %vm2584_vm15 }
  0x34   : > { %1493 = vmatpush.bf16.msra.mxu3 %v6212_v22  ;;  %v835_v10 = vor.u32 %v834_v8, %v830_v7  ;;  %v798_v20 = vpack.c.b16 %v788_v18, %v788_v18  ;;  %v844_v21 = vshll.u32 %v6236_v17, 16  ;;  %v842_v22 = vshrl.u32 %v6236_v17, 16  ;;  %v6218_v7 = vld [vmem:[%s8512_s1 + $0x48] sm:$0xff] }
  0x35   : > { %1173 = vmatpush.bf16.msra.mxu0 %v6245_v23  ;;  %v828_v63 = vsel %vm461_vm0, %v823_v58, %v827_v59  ;;  %v839_v11 = vrot.slane %v837_v9, 1  ;;  %v868_v53 = vshll.u32 %v6238_v49, 16  ;;  %v866_v55 = vshrl.u32 %v6238_v49, 16  ;;  %v6983_v18 = vld [vmem:[%s6847_s13 + $0x48] sm:$0xff] }
  0x36   : > { %1232 = vmatpush.bf16.msra.mxu1 %v6253_v24  ;;  %v846_v23 = vrot.slane %v844_v21, 1  ;;  %v849_v24 = vshll.u32 %v798_v20, 16  ;;  %v950_v60 = vrot.slane %v6238_v49, 1  ;;  %v878_v8 = vshrl.u32 %v6239_v2, 16 }
  0x37   : > { %1291 = vmatpush.bf16.msra.mxu2 %v6261_v27  ;;  %v840_v15 = vsel %vm461_vm0, %v835_v10, %v839_v11  ;;  %v944_v27 = vrot.slane %v6236_v17, 1  ;;  %v870_v56 = vrot.slane %v868_v53, 1  ;;  %v6292_v53 = vld [vmem:[%s8512_s1 + $0x1f8] sm:$0xff] }
  0x38   : > { %1494 = vmatpush.bf16.msra.mxu3 %v6211_v28  ;;  %v847_v25 = vor.u32 %v846_v23, %v842_v22  ;;  %v851_v26 = vrot.slane %v849_v24, 1  ;;  %v945_v28 = vrot.slane %v798_v20, 1  ;;  %v6232_v24 = vld [vmem:[%s8512_s1 + $0xb8] sm:$0xff] }
  0x39   : > { %1174 = vmatpush.bf16.msra.mxu0 %v6244_v29  ;;  %v5228_v29 = vld [vmem:[%s6847_s13 + $0x44] sm:$0x1]  ;;  %v871_v58 = vor.u32 %v870_v56, %v866_v55 }
  0x3a   : > { %1233 = vmatpush.bf16.msra.mxu1 %v6252_v30  ;;  %v852_v30 = vsel %vm461_vm0, %v847_v25, %v851_v26  ;;  %v789_v33 = vunpack.c.l.b16 %v5228_v29 }
  0x3b   : > { %1292 = vmatpush.bf16.msra.mxu2 %v6260_v34  ;;  %v946_v34 = vsel %vm592_vm1, %v944_v27, %v945_v28  ;;  %v6231_v28 = vld [vmem:[%s8512_s1 + $0xb0] sm:$0xff] }
  0x3c   : > { %1495 = vmatpush.bf16.msra.mxu3 %v6210_v35  ;;  %v799_v35 = vpack.c.b16 %v789_v33, %v789_v33 }
  0x3d   : > { %1175 = vmatpush.bf16.msra.mxu0 %v6243_v36  ;;  %v856_v36 = vshll.u32 %v6237_v32, 16 }
  0x3e   : > { %1234 = vmatpush.bf16.msra.mxu1 %v6251_v37  ;;  %v6220_v37 = vld [vmem:[%s8512_s1 + $0x58] sm:$0xff]  ;;  %v948_v44 = vrot.slane %v799_v35, 1 }
  0x3f   : > { %1293 = vmatpush.bf16.msra.mxu2 %v6259_v40  ;;  %v858_v39 = vrot.slane %v856_v36, 1  ;;  %v861_v40 = vshll.u32 %v799_v35, 16  ;;  %v6230_v35 = vld [vmem:[%s8512_s1 + $0xa8] sm:$0xff] }
  0x40   : > { %1496 = vmatpush.bf16.msra.mxu3 %v6209_v41  ;;  %1176 = vmatmul.bf16.vlgmr.msra.gmra.mxu0 %v6233_v19  ;;  %v943_v19 = vsel %vm592_vm1, %v941_v12, %v942_v13  ;;  %v953_v13 = vrot.slane %v6239_v2, 1 }
  0x41   : > { %1548 = vmatpush.bf16.msrb.mxu0 %v6224_v45  ;;  %1235 = vmatmul.bf16.vlgmr.msra.gmra.mxu1 %v816_v46  ;;  %v859_v41 = vor.u32 %v858_v39, %v854_v38  ;;  %v863_v42 = vrot.slane %v861_v40, 1  ;;  %v5231_v45 = vld [vmem:[%s6847_s13 + $0x50] sm:$0x1]  ;;  %v6217_v40 = vld [vmem:[%s8512_s1 + $0x40] sm:$0xff] }
  0x42   : > { %1294 = vmatmul.bf16.vlgmr.msra.gmra.mxu2 %v937_v50  ;;  %v790_v50 = vunpack.c.l.b16 %v5231_v45  ;;  %1607 = vmatpush.bf16.msrb.mxu1 %v6232_v24  ;;  %v6241_v38 = vld [vmem:[%s6847_s13 + $0x6c] sm:$0xff]  ;;  %v6228_v45 = vld [vmem:[%s8512_s1 + $0x98] sm:$0xff] }
  0x43   : > { %1497 = vmatmul.bf16.vlgmr.msra.gmra.mxu3 %v6917_v47  ;;  %v864_v46 = vsel %vm461_vm0, %v859_v41, %v863_v42  ;;  %v6229_v42 = vld [vmem:[%s8512_s1 + $0xa0] sm:$0xff]  ;;  %v959_v56 = vrot.slane %v6241_v38, 1 }
  0x44   : > { %v800_v52 = vpack.c.b16 %v790_v50, %v790_v50  ;;  %2212 = vmatpush.bf16.msrb.mxu3 %v6292_v53 }
  0x45   : > { %1549 = vmatpush.bf16.msrb.mxu0 %v6223_v51  ;;  %v949_v51 = vsel %vm592_vm1, %v947_v43, %v948_v44  ;;  %v904_v44 = vshll.u32 %v6241_v38, 16 }
  0x46   : > { %v873_v57 = vshll.u32 %v800_v52, 16  ;;  %v951_v61 = vrot.slane %v800_v52, 1  ;;  %1608 = vmatpush.bf16.msrb.mxu1 %v6231_v28  ;;  %v6284_v52 = vld [vmem:[%s8512_s1 + $0x1b8] sm:$0xff] }
  0x47   : > { %2153 = vmatpush.bf16.msrb.mxu2 %v6284_v52  ;;  %v6299_v52 = vld [vmem:[%s8512_s1 + $0x230] sm:$0xff] }
  0x48   : > { %v875_v59 = vrot.slane %v873_v57, 1  ;;  %v952_v4 = vsel %vm592_vm1, %v950_v60, %v951_v61 }
  0x49   : > { %1550 = vmatpush.bf16.msrb.mxu0 %v6222_v54  ;;  %v6219_v54 = vld [vmem:[%s8512_s1 + $0x50] sm:$0xff] }
  0x4a   : > { %1609 = vmatpush.bf16.msrb.mxu1 %v6230_v35  ;;  %v6283_v35 = vld [vmem:[%s8512_s1 + $0x1b0] sm:$0xff] }
  0x4b   : > { %2154 = vmatpush.bf16.msrb.mxu2 %v6283_v35 }
  0x4d   : > { %1551 = vmatpush.bf16.msrb.mxu0 %v6221_v6  ;;  %v880_v6 = vshll.u32 %v6239_v2, 16 }
  0x4e   : > { %1610 = vmatpush.bf16.msrb.mxu1 %v6229_v42 }
  0x4f   : > { %v882_v9 = vrot.slane %v880_v6, 1  ;;  %v6225_v6 = vld [vmem:[%s8512_s1 + $0x80] sm:$0xff] }
  0x50   : > { %1181 = vmatmul.bf16.gmra.mxu0 %v6234_v48  ;;  %v6961_v48 = vld [vmem:[%s6847_s13 + $0x30] sm:$0xff] }
  0x51   : > { %1240 = vmatmul.bf16.gmra.mxu1 %v828_v63  ;;  %1552 = vmatpush.bf16.msrb.mxu0 %v6220_v37  ;;  %v876_v63 = vsel %vm461_vm0, %v871_v58, %v875_v59  ;;  %v883_v11 = vor.u32 %v882_v9, %v878_v8  ;;  %v7000_v37 = vld [vmem:[%s6847_s13 + $0x54] sm:$0xff]  ;;  %v5243_v58 = vld [vmem:[%s6847_s13 + $0x80] sm:$0x1]  ;;  %v6226_v59 = vld [vmem:[%s8512_s1 + $0x88] sm:$0xff] }
  0x52   : > { %1299 = vmatmul.bf16.gmra.mxu2 %v940_v3  ;;  %v791_v3 = vunpack.c.l.b16 %v5234_v62  ;;  %1611 = vmatpush.bf16.msrb.mxu1 %v6228_v45 }
  0x53   : > { %1502 = vmatmul.bf16.gmra.mxu3 %v6931_v0 }
  0x54   : > { %v801_v5 = vpack.c.b16 %v791_v3, %v791_v3  ;;  %v794_v3 = vunpack.c.l.b16 %v5243_v58 }
  0x55   : > { %1553 = vmatpush.bf16.msrb.mxu0 %v6219_v54 }
  0x56   : > { %v885_v10 = vshll.u32 %v801_v5, 16  ;;  %v954_v14 = vrot.slane %v801_v5, 1  ;;  %v804_v8 = vpack.c.b16 %v794_v3, %v794_v3 }
  0x58   : > { %v887_v12 = vrot.slane %v885_v10, 1  ;;  %v955_v21 = vsel %vm592_vm1, %v953_v13, %v954_v14 }
  0x59   : > { %1554 = vmatpush.bf16.msrb.mxu0 %v6218_v7  ;;  %v6300_v7 = vld [vmem:[%s8512_s1 + $0x238] sm:$0xff] }
  0x5d   : > { %1555 = vmatpush.bf16.msrb.mxu0 %v6217_v40 }
  0x60   : > { %1186 = vmatmul.bf16.gmra.mxu0 %v6235_v1  ;;  %v6972_v1 = vld [vmem:[%s6847_s13 + $0x3c] sm:$0xff] }
  0x61   : > { %1245 = vmatmul.bf16.gmra.mxu1 %v840_v15  ;;  %v5237_v15 = vld [vmem:[%s6847_s13 + $0x68] sm:$0x1]  ;;  %2271 = vmatpush.bf16.msra.mxu0 %v6300_v7 }
  0x62   : > { %1304 = vmatmul.bf16.gmra.mxu2 %v943_v19  ;;  %v6240_v19 = vld [vmem:[%s6847_s13 + $0x60] sm:$0xff]  ;;  %v792_v20 = vunpack.c.l.b16 %v5237_v15  ;;  %v6290_v7 = vld [vmem:[%s8512_s1 + $0x1e8] sm:$0xff] }
  0x63   : > { %1507 = vmatmul.bf16.gmra.mxu3 %v6942_v16  ;;  %v892_v23 = vshll.u32 %v6240_v19, 16  ;;  %v890_v25 = vshrl.u32 %v6240_v19, 16 }
  0x64   : > { %v802_v22 = vpack.c.b16 %v792_v20, %v792_v20 }
  0x65   : > { %v894_v26 = vrot.slane %v892_v23, 1  ;;  %2272 = vmatpush.bf16.msra.mxu0 %v6299_v52 }
  0x66   : > { %v897_v27 = vshll.u32 %v802_v22, 16  ;;  %v957_v33 = vrot.slane %v802_v22, 1 }
  0x67   : > { %v895_v29 = vor.u32 %v894_v26, %v890_v25  ;;  %v963_v25 = vrot.slane %v804_v8, 1  ;;  %v343_v26 = vld [vmem:[%s6847_s13 + $0x8] sm:$0x1] }
  0x70   : > { %1191 = vmatmul.bf16.gmra.mxu0 %v6236_v17  ;;  %v888_v17 = vsel %vm461_vm0, %v883_v11, %v887_v12 }
  0x71   : > { %1250 = vmatmul.bf16.gmra.mxu1 %v852_v30  ;;  %v899_v30 = vrot.slane %v897_v27, 1 }
  0x72   : > { %1309 = vmatmul.bf16.gmra.mxu2 %v946_v34  ;;  %v5240_v34 = vld [vmem:[%s6847_s13 + $0x74] sm:$0x1] }
  0x73   : > { %1512 = vmatmul.bf16.gmra.mxu3 %v6950_v31  ;;  %v900_v36 = vsel %vm461_vm0, %v895_v29, %v899_v30  ;;  %v793_v39 = vunpack.c.l.b16 %v5240_v34  ;;  %v441_v34 = vunpack.c.l.b16 %v343_v26 }
  0x75   : > { %v803_v43 = vpack.c.b16 %v793_v39, %v793_v39  ;;  %v451_v40 = vpack.c.b16 %v441_v34, %v441_v34 }
  0x77   : > { %v909_v50 = vshll.u32 %v803_v43, 16  ;;  %v960_v57 = vrot.slane %v803_v43, 1  ;;  %v594_v58 = vrot.slane %v451_v40, 1 }
  0x79   : > { %v911_v55 = vrot.slane %v909_v50, 1  ;;  %v961_v5 = vsel %vm592_vm1, %v959_v56, %v960_v57  ;;  %v593_v57 = vrot.slane %v6917_v47, 1 }
  0x80   : > { %1196 = vmatmul.bf16.gmra.mxu0 %v6237_v32  ;;  %v956_v32 = vrot.slane %v6240_v19, 1 }
  0x81   : > { %1255 = vmatmul.bf16.gmra.mxu1 %v864_v46  ;;  %v902_v46 = vshrl.u32 %v6241_v38, 16 }
  0x82   : > { %1314 = vmatmul.bf16.gmra.mxu2 %v949_v51  ;;  %v958_v41 = vsel %vm592_vm1, %v956_v32, %v957_v33  ;;  %v6227_v51 = vld [vmem:[%s8512_s1 + $0x90] sm:$0xff] }
  0x83   : > { %1517 = vmatmul.bf16.gmra.mxu3 %v6961_v48  ;;  %1612 = vmatpush.bf16.msrb.mxu1 %v6227_v51  ;;  %v7051_v33 = vld [vmem:[%s6847_s13 + $0x6c] sm:$0xff]  ;;  %v470_v51 = vshll.u32 %v451_v40, 16 }
  0x85   : > { %v472_v56 = vrot.slane %v470_v51, 1  ;;  %v487_v51 = vshrl.u32 %v6942_v16, 16 }
  0x87   : > { %1613 = vmatpush.bf16.msrb.mxu1 %v6226_v59  ;;  %v346_v59 = vld [vmem:[%s6847_s13 + $0x14] sm:$0x1] }
  0x8b   : > { %1614 = vmatpush.bf16.msrb.mxu1 %v6225_v6 }
  0x90   : > { %1201 = vmatmul.bf16.gmra.mxu0 %v6238_v49  ;;  %v906_v49 = vrot.slane %v904_v44, 1 }
  0x91   : > { %1260 = vmatmul.bf16.gmra.mxu1 %v876_v63  ;;  %v7029_v63 = vld [vmem:[%s6847_s13 + $0x60] sm:$0xff] }
  0x92   : > { %1319 = vmatmul.bf16.gmra.mxu2 %v952_v4  ;;  %v907_v54 = vor.u32 %v906_v49, %v902_v46  ;;  %v463_v49 = vshrl.u32 %v6917_v47, 16 }
  0x93   : > { %1522 = vmatmul.bf16.gmra.mxu3 %v6972_v1 }
  0x94   : > { %v912_v62 = vsel %vm461_vm0, %v907_v54, %v911_v55 }
  0xa0   : > { %1206 = vmatmul.bf16.gmra.mxu0 %v6239_v2  ;;  %v6242_v2 = vld [vmem:[%s6847_s13 + $0x78] sm:$0xff] }
  0xa1   : > { %1265 = vmatmul.bf16.gmra.mxu1 %v888_v17  ;;  %v916_v9 = vshll.u32 %v6242_v2, 16  ;;  %v914_v15 = vshrl.u32 %v6242_v2, 16  ;;  %v962_v24 = vrot.slane %v6242_v2, 1 }
  0xa2   : > { %1324 = vmatmul.bf16.gmra.mxu2 %v955_v21 }
  0xa3   : > { %1527 = vmatmul.bf16.gmra.mxu3 %v6983_v18  ;;  %v918_v17 = vrot.slane %v916_v9, 1  ;;  %v964_v39 = vsel %vm592_vm1, %v962_v24, %v963_v25  ;;  %v477_v9 = vshll.u32 %v6931_v0, 16  ;;  %v6298_v24 = vld [vmem:[%s8512_s1 + $0x228] sm:$0xff] }
  0xa4   : > { %2273 = vmatpush.bf16.msra.mxu0 %v6298_v24 }
  0xa5   : > { %v919_v22 = vor.u32 %v918_v17, %v914_v15  ;;  %v475_v15 = vshrl.u32 %v6931_v0, 16  ;;  %v479_v17 = vrot.slane %v477_v9, 1 }
  0xa7   : > { %v480_v25 = vor.u32 %v479_v17, %v475_v15 }
  0xb0   : > { %1211 = vmatmul.bf16.gmra.mxu0 %v6240_v19  ;;  %v921_v19 = vshll.u32 %v804_v8, 16 }
  0xb1   : > { %1270 = vmatmul.bf16.gmra.mxu1 %v900_v36  ;;  %v6291_v36 = vld [vmem:[%s8512_s1 + $0x1f0] sm:$0xff] }
  0xb2   : > { %1329 = vmatmul.bf16.gmra.mxu2 %v958_v41  ;;  %v923_v23 = vrot.slane %v921_v19, 1  ;;  %2213 = vmatpush.bf16.msrb.mxu3 %v6291_v36  ;;  %v465_v41 = vshll.u32 %v6917_v47, 16  ;;  %v6282_v47 = vld [vmem:[%s8512_s1 + $0x1a8] sm:$0xff] }
  0xb3   : > { %1532 = vmatmul.bf16.gmra.mxu3 %v7000_v37  ;;  %2155 = vmatpush.bf16.msrb.mxu2 %v6282_v47 }
  0xb4   : > { %v924_v32 = vsel %vm461_vm0, %v919_v22, %v923_v23  ;;  %v467_v50 = vrot.slane %v465_v41, 1 }
  0xb6   : > { %v468_v55 = vor.u32 %v467_v50, %v463_v49  ;;  %2214 = vmatpush.bf16.msrb.mxu3 %v6290_v7 }
  0xb8   : > { %v473_v3 = vsel %vm461_vm0, %v468_v55, %v472_v56  ;;  %v6281_v56 = vld [vmem:[%s8512_s1 + $0x1a0] sm:$0xff] }
  0xb9   : > { %2156 = vmatpush.bf16.msrb.mxu2 %v6281_v56 }
  0xbd   : > { %v1177_v60 = vpop.f32.mrf.mxu0 }
  0xbe   : > { %v1236_v61 = vpop.f32.mrf.mxu1 }
  0xbf   : > { %v1237_v4 = vadd.f32 %v1236_v61, %v1177_v60 }
  0xc0   : > { %1216 = vmatmul.bf16.gmra.mxu0 %v6241_v38 }
  0xc1   : > { %1275 = vmatmul.bf16.gmra.mxu1 %v912_v62 }
  0xc2   : > { %1334 = vmatmul.bf16.gmra.mxu2 %v961_v5  ;;  %v442_v5 = vunpack.c.l.b16 %v346_v59 }
  0xc3   : > { %1537 = vmatmul.bf16.gmra.mxu3 %v7029_v63 }
  0xc4   : > { %v452_v8 = vpack.c.b16 %v442_v5, %v442_v5  ;;  %v352_v5 = vld [vmem:[%s6847_s13 + $0x2c] sm:$0x1] }
  0xc5   : > { %v1295_v10 = vpop.f32.mrf.mxu2  ;;  %v1179_v13 = vpop.f32.mrf.mxu0 }
  0xc6   : > { %v1498_v11 = vpop.f32.mrf.mxu3  ;;  %v1296_v12 = vadd.f32 %v1295_v10, %v1237_v4  ;;  %v1238_v14 = vpop.f32.mrf.mxu1  ;;  %v595_v4 = vsel %vm592_vm1, %v593_v57, %v594_v58  ;;  %v482_v19 = vshll.u32 %v452_v8, 16  ;;  %v6289_v57 = vld [vmem:[%s8512_s1 + $0x1e0] sm:$0xff] }
  0xc7   : > { %v7040_v20 = vadd.f32 %v1238_v14, %v1179_v13  ;;  %2215 = vmatpush.bf16.msrb.mxu3 %v6289_v57  ;;  %v513_v57 = vshll.u32 %v6961_v48, 16 }
  0xc8   : > { %v7042_v21 = vadd.f32 %v1498_v11, %v1296_v12  ;;  %v484_v26 = vrot.slane %v482_v19, 1 }
  0xcd   : > { %v7045_v27 = vpop.f32.mrf.mxu2  ;;  %v1182_v29 = vpop.f32.mrf.mxu0 }
  0xce   : > { %v7047_v28 = vpop.f32.mrf.mxu3  ;;  %v1241_v30 = vpop.f32.mrf.mxu1 }
  0xcf   : > { %v1242_v38 = vadd.f32 %v1241_v30, %v1182_v29  ;;  %v596_v29 = vrot.slane %v6931_v0, 1  ;;  %v597_v30 = vrot.slane %v452_v8, 1  ;;  %v489_v0 = vshll.u32 %v6942_v16, 16 }
  0xd0   : > { %1221 = vmatmul.bf16.gmra.mxu0 %v6242_v2 }
  0xd1   : > { %1280 = vmatmul.bf16.gmra.mxu1 %v924_v32  ;;  %v349_v32 = vld [vmem:[%s6847_s13 + $0x20] sm:$0x1]  ;;  %v598_v40 = vsel %vm592_vm1, %v596_v29, %v597_v30  ;;  %v491_v52 = vrot.slane %v489_v0, 1  ;;  %v355_v0 = vld [vmem:[%s6847_s13 + $0x38] sm:$0x1] }
  0xd2   : > { %1339 = vmatmul.bf16.gmra.mxu2 %v964_v39  ;;  %v485_v39 = vsel %vm461_vm0, %v480_v25, %v484_v26  ;;  %v443_v41 = vunpack.c.l.b16 %v349_v32  ;;  %v499_v26 = vshrl.u32 %v6950_v31, 16 }
  0xd3   : > { %1542 = vmatmul.bf16.gmra.mxu3 %v7051_v33 }
  0xd5   : > { %v1300_v42 = vpop.f32.mrf.mxu2  ;;  %v1184_v45 = vpop.f32.mrf.mxu0 }
  0xd6   : > { %v1503_v43 = vpop.f32.mrf.mxu3  ;;  %v1301_v44 = vadd.f32 %v1300_v42, %v1242_v38  ;;  %v1243_v46 = vpop.f32.mrf.mxu1 }
  0xd7   : > { %v7066_v53 = vadd.f32 %v1243_v46, %v1184_v45 }
  0xd8   : > { %v7068_v54 = vadd.f32 %v1503_v43, %v1301_v44  ;;  %v453_v43 = vpack.c.b16 %v443_v41, %v443_v41 }
  0xda   : > { %v494_v55 = vshll.u32 %v453_v43, 16 }
  0xdd   : > { %v7072_v60 = vpop.f32.mrf.mxu2  ;;  %v1187_v62 = vpop.f32.mrf.mxu0 }
  0xde   : > { %v7074_v61 = vpop.f32.mrf.mxu3  ;;  %v1246_v2 = vpop.f32.mrf.mxu1 }
  0xdf   : > { %v1247_v6 = vadd.f32 %v1246_v2, %v1187_v62  ;;  %v492_v62 = vor.u32 %v491_v52, %v487_v51  ;;  %v496_v2 = vrot.slane %v494_v55, 1  ;;  %v445_v52 = vunpack.c.l.b16 %v355_v0 }
  0xe0   : > { %1556 = vmatmul.bf16.vlgmr.msrb.gmra.mxu0 %v473_v3  ;;  %v599_v3 = vrot.slane %v6942_v16, 1 }
  0xe1   : > { %1615 = vmatmul.bf16.vlgmr.msrb.gmra.mxu1 %v595_v4  ;;  %v600_v4 = vrot.slane %v453_v43, 1  ;;  %v497_v9 = vsel %vm461_vm0, %v492_v62, %v496_v2  ;;  %v455_v56 = vpack.c.b16 %v445_v52, %v445_v52 }
  0xe5   : > { %v1305_v10 = vpop.f32.mrf.mxu2  ;;  %v1189_v13 = vpop.f32.mrf.mxu0 }
  0xe6   : > { %v1508_v11 = vpop.f32.mrf.mxu3  ;;  %v1306_v12 = vadd.f32 %v1305_v10, %v1247_v6  ;;  %v1248_v14 = vpop.f32.mrf.mxu1  ;;  %v601_v10 = vsel %vm592_vm1, %v599_v3, %v600_v4 }
  0xe7   : > { %v7086_v22 = vadd.f32 %v1248_v14, %v1189_v13  ;;  %v501_v14 = vshll.u32 %v6950_v31, 16 }
  0xe8   : > { %v7088_v23 = vadd.f32 %v1508_v11, %v1306_v12  ;;  %v444_v11 = vunpack.c.l.b16 %v352_v5  ;;  %v6297_v12 = vld [vmem:[%s8512_s1 + $0x220] sm:$0xff] }
  0xe9   : > { %2274 = vmatpush.bf16.msra.mxu0 %v6297_v12  ;;  %v503_v29 = vrot.slane %v501_v14, 1  ;;  %v606_v14 = vrot.slane %v455_v56, 1 }
  0xea   : > { %v454_v16 = vpack.c.b16 %v444_v11, %v444_v11 }
  0xec   : > { %v506_v30 = vshll.u32 %v454_v16, 16  ;;  %v603_v43 = vrot.slane %v454_v16, 1  ;;  %v605_v16 = vrot.slane %v6961_v48, 1 }
  0xed   : > { %v7095_v34 = vpop.f32.mrf.mxu2  ;;  %v1192_v36 = vpop.f32.mrf.mxu0 }
  0xee   : > { %v7097_v35 = vpop.f32.mrf.mxu3  ;;  %v1251_v38 = vpop.f32.mrf.mxu1  ;;  %v508_v41 = vrot.slane %v506_v30, 1 }
  0xef   : > { %v1252_v42 = vadd.f32 %v1251_v38, %v1192_v36  ;;  %v6280_v38 = vld [vmem:[%s8512_s1 + $0x198] sm:$0xff] }
  0xf0   : > { %1561 = vmatmul.bf16.gmra.mxu0 %v485_v39  ;;  %v6288_v39 = vld [vmem:[%s8512_s1 + $0x1d8] sm:$0xff]  ;;  %2157 = vmatpush.bf16.msrb.mxu2 %v6280_v38  ;;  %v6279_v38 = vld [vmem:[%s8512_s1 + $0x190] sm:$0xff] }
  0xf1   : > { %1620 = vmatmul.bf16.gmra.mxu1 %v598_v40  ;;  %v504_v40 = vor.u32 %v503_v29, %v499_v26  ;;  %2216 = vmatpush.bf16.msrb.mxu3 %v6288_v39  ;;  %v607_v29 = vsel %vm592_vm1, %v605_v16, %v606_v14 }
  0xf4   : > { %2158 = vmatpush.bf16.msrb.mxu2 %v6279_v38 }
  0xf5   : > { %v1310_v44 = vpop.f32.mrf.mxu2  ;;  %v1194_v49 = vpop.f32.mrf.mxu0 }
  0xf6   : > { %v1513_v45 = vpop.f32.mrf.mxu3  ;;  %v1311_v46 = vadd.f32 %v1310_v44, %v1252_v42  ;;  %v1253_v50 = vpop.f32.mrf.mxu1  ;;  %v602_v42 = vrot.slane %v6950_v31, 1  ;;  %v6296_v31 = vld [vmem:[%s8512_s1 + $0x218] sm:$0xff] }
  0xf7   : > { %v7109_v58 = vadd.f32 %v1253_v50, %v1194_v49  ;;  %v509_v50 = vsel %vm461_vm0, %v504_v40, %v508_v41  ;;  %2275 = vmatpush.bf16.msra.mxu0 %v6296_v31  ;;  %v525_v41 = vshll.u32 %v6972_v1, 16 }
  0xf8   : > { %v7111_v59 = vadd.f32 %v1513_v45, %v1311_v46  ;;  %v604_v51 = vsel %vm592_vm1, %v602_v42, %v603_v43 }
  0xfd   : > { %v7115_v6 = vpop.f32.mrf.mxu2  ;;  %v1197_v7 = vpop.f32.mrf.mxu0 }
  0xfe   : > { %v7117_v47 = vpop.f32.mrf.mxu3  ;;  %v1256_v8 = vpop.f32.mrf.mxu1 }
  0xff   : > { %v1257_v13 = vadd.f32 %v1256_v8, %v1197_v7  ;;  %v511_v7 = vshrl.u32 %v6961_v48, 16  ;;  %v515_v8 = vrot.slane %v513_v57, 1  ;;  %v6287_v48 = vld [vmem:[%s8512_s1 + $0x1d0] sm:$0xff] }
 0x100   : > { %1566 = vmatmul.bf16.gmra.mxu0 %v497_v9  ;;  %v518_v9 = vshll.u32 %v455_v56, 16  ;;  %2217 = vmatpush.bf16.msrb.mxu3 %v6287_v48 }
 0x101   : > { %1625 = vmatmul.bf16.gmra.mxu1 %v601_v10  ;;  %v516_v12 = vor.u32 %v515_v8, %v511_v7 }
 0x105   : > { %v1315_v15 = vpop.f32.mrf.mxu2  ;;  %v1199_v24 = vpop.f32.mrf.mxu0 }
 0x106   : > { %v1518_v17 = vpop.f32.mrf.mxu3  ;;  %v1316_v19 = vadd.f32 %v1315_v15, %v1257_v13  ;;  %v1258_v25 = vpop.f32.mrf.mxu1  ;;  %v520_v13 = vrot.slane %v518_v9, 1  ;;  %v358_v15 = vld [vmem:[%s6847_s13 + $0x44] sm:$0x1] }
 0x107   : > { %v7126_v32 = vadd.f32 %v1258_v25, %v1199_v24  ;;  %v446_v30 = vunpack.c.l.b16 %v358_v15  ;;  %v6286_v15 = vld [vmem:[%s8512_s1 + $0x1c8] sm:$0xff] }
 0x108   : > { %v7128_v36 = vadd.f32 %v1518_v17, %v1316_v19  ;;  %v521_v26 = vsel %vm461_vm0, %v516_v12, %v520_v13  ;;  %2218 = vmatpush.bf16.msrb.mxu3 %v6286_v15  ;;  %v547_v15 = vshrl.u32 %v7000_v37, 16 }
 0x109   : > { %v456_v40 = vpack.c.b16 %v446_v30, %v446_v30 }
 0x10b   : > { %v530_v52 = vshll.u32 %v456_v40, 16 }
 0x10d   : > { %v7138_v44 = vpop.f32.mrf.mxu2  ;;  %v1202_v46 = vpop.f32.mrf.mxu0 }
 0x10e   : > { %v7140_v45 = vpop.f32.mrf.mxu3  ;;  %v1261_v49 = vpop.f32.mrf.mxu1 }
 0x10f   : > { %v1262_v55 = vadd.f32 %v1261_v49, %v1202_v46 }
 0x110   : > { %1571 = vmatmul.bf16.gmra.mxu0 %v509_v50  ;;  %v523_v50 = vshrl.u32 %v6972_v1, 16 }
 0x111   : > { %1630 = vmatmul.bf16.gmra.mxu1 %v604_v51  ;;  %v527_v51 = vrot.slane %v525_v41, 1 }
 0x113   : > { %v528_v57 = vor.u32 %v527_v51, %v523_v50  ;;  %v611_v50 = vrot.slane %v6983_v18, 1 }
 0x115   : > { %v1320_v62 = vpop.f32.mrf.mxu2  ;;  %v1204_v4 = vpop.f32.mrf.mxu0 }
 0x116   : > { %v1523_v2 = vpop.f32.mrf.mxu3  ;;  %v1321_v3 = vadd.f32 %v1320_v62, %v1262_v55  ;;  %v1263_v5 = vpop.f32.mrf.mxu1  ;;  %v6295_v55 = vld [vmem:[%s8512_s1 + $0x210] sm:$0xff]  ;;  %v532_v62 = vrot.slane %v530_v52, 1  ;;  %v364_v52 = vld [vmem:[%s6847_s13 + $0x5c] sm:$0x1] }
 0x117   : > { %v7149_v10 = vadd.f32 %v1263_v5, %v1204_v4  ;;  %2276 = vmatpush.bf16.msra.mxu0 %v6295_v55  ;;  %v361_v4 = vld [vmem:[%s6847_s13 + $0x50] sm:$0x1] }
 0x118   : > { %v7151_v11 = vadd.f32 %v1523_v2, %v1321_v3  ;;  %v608_v2 = vrot.slane %v6972_v1, 1  ;;  %v609_v3 = vrot.slane %v456_v40, 1  ;;  %v533_v12 = vsel %vm461_vm0, %v528_v57, %v532_v62  ;;  %v6278_v1 = vld [vmem:[%s8512_s1 + $0x188] sm:$0xff] }
 0x119   : > { %v447_v16 = vunpack.c.l.b16 %v361_v4  ;;  %2159 = vmatpush.bf16.msrb.mxu2 %v6278_v1  ;;  %v448_v62 = vunpack.c.l.b16 %v364_v52 }
 0x11a   : > { %v610_v13 = vsel %vm592_vm1, %v608_v2, %v609_v3 }
 0x11d   : > { %v7155_v17 = vpop.f32.mrf.mxu2  ;;  %v1207_v24 = vpop.f32.mrf.mxu0 }
 0x11e   : > { %v7157_v19 = vpop.f32.mrf.mxu3  ;;  %v1266_v25 = vpop.f32.mrf.mxu1 }
 0x11f   : > { %v1267_v39 = vadd.f32 %v1266_v25, %v1207_v24  ;;  %v457_v24 = vpack.c.b16 %v447_v16, %v447_v16  ;;  %v537_v25 = vshll.u32 %v6983_v18, 16  ;;  %v6285_v16 = vld [vmem:[%s8512_s1 + $0x1c0] sm:$0xff] }
 0x120   : > { %1576 = vmatmul.bf16.gmra.mxu0 %v521_v26  ;;  %2219 = vmatpush.bf16.msrb.mxu3 %v6285_v16 }
 0x121   : > { %1635 = vmatmul.bf16.gmra.mxu1 %v607_v29  ;;  %v539_v40 = vrot.slane %v537_v25, 1  ;;  %v542_v41 = vshll.u32 %v457_v24, 16  ;;  %v612_v51 = vrot.slane %v457_v24, 1 }
 0x125   : > { %v1325_v42 = vpop.f32.mrf.mxu2  ;;  %v1209_v46 = vpop.f32.mrf.mxu0 }
 0x126   : > { %v1528_v43 = vpop.f32.mrf.mxu3  ;;  %v1326_v0 = vadd.f32 %v1325_v42, %v1267_v39  ;;  %v1268_v49 = vpop.f32.mrf.mxu1  ;;  %v535_v39 = vshrl.u32 %v6983_v18, 16  ;;  %v549_v18 = vshll.u32 %v7000_v37, 16 }
 0x127   : > { %v7172_v31 = vadd.f32 %v1268_v49, %v1209_v46  ;;  %v544_v49 = vrot.slane %v542_v41, 1  ;;  %v6293_v41 = vld [vmem:[%s8512_s1 + $0x200] sm:$0xff] }
 0x128   : > { %v7174_v56 = vadd.f32 %v1528_v43, %v1326_v0  ;;  %v6294_v0 = vld [vmem:[%s8512_s1 + $0x208] sm:$0xff]  ;;  %v540_v46 = vor.u32 %v539_v40, %v535_v39  ;;  %v551_v24 = vrot.slane %v549_v18, 1 }
 0x129   : > { %2277 = vmatpush.bf16.msra.mxu0 %v6294_v0  ;;  %v7226_v0 = vld [vmem:[%s6847_s13 + $0x18] sm:$0xff] }
 0x12a   : > { %v545_v4 = vsel %vm461_vm0, %v540_v46, %v544_v49  ;;  %v552_v39 = vor.u32 %v551_v24, %v547_v15  ;;  %v614_v49 = vrot.slane %v7000_v37, 1 }
 0x12d   : > { %v7178_v5 = vpop.f32.mrf.mxu2  ;;  %v1212_v8 = vpop.f32.mrf.mxu0  ;;  %2278 = vmatpush.bf16.msra.mxu0 %v6293_v41 }
 0x12e   : > { %v7180_v7 = vpop.f32.mrf.mxu3  ;;  %v1271_v9 = vpop.f32.mrf.mxu1 }
 0x12f   : > { %v1272_v14 = vadd.f32 %v1271_v9, %v1212_v8  ;;  %v613_v8 = vsel %vm592_vm1, %v611_v50, %v612_v51  ;;  %v367_v51 = vld [vmem:[%s6847_s13 + $0x68] sm:$0x1] }
 0x130   : > { %1581 = vmatmul.bf16.gmra.mxu0 %v533_v12  ;;  %v458_v12 = vpack.c.b16 %v448_v62, %v448_v62  ;;  %v1793_v62 = vshll.u32 %v7226_v0, 16 }
 0x131   : > { %1640 = vmatmul.bf16.gmra.mxu1 %v610_v13  ;;  %v6277_v13 = vld [vmem:[%s8512_s1 + $0x180] sm:$0xff] }
 0x132   : > { %2160 = vmatpush.bf16.msrb.mxu2 %v6277_v13  ;;  %v554_v25 = vshll.u32 %v458_v12, 16  ;;  %v615_v50 = vrot.slane %v458_v12, 1  ;;  %v449_v12 = vunpack.c.l.b16 %v367_v51  ;;  %v1795_v13 = vrot.slane %v1793_v62, 1  ;;  %v5531_v62 = vld [vmem:[%s6847_s13 + $0x2c] sm:$0x1] }
 0x134   : > { %v556_v40 = vrot.slane %v554_v25, 1  ;;  %v616_v37 = vsel %vm592_vm1, %v614_v49, %v615_v50  ;;  %v459_v24 = vpack.c.b16 %v449_v12, %v449_v12  ;;  %v561_v25 = vshll.u32 %v7029_v63, 16 }
 0x135   : > { %v1330_v26 = vpop.f32.mrf.mxu2  ;;  %v1214_v38 = vpop.f32.mrf.mxu0  ;;  %2161 = vmatmul.bf16.vlgmr.msrb.gmra.mxu2 %v7226_v0 }
 0x136   : > { %v1533_v29 = vpop.f32.mrf.mxu3  ;;  %v1331_v30 = vadd.f32 %v1330_v26, %v1272_v14  ;;  %v1273_v48 = vpop.f32.mrf.mxu1  ;;  %v563_v49 = vrot.slane %v561_v25, 1  ;;  %v566_v50 = vshll.u32 %v459_v24, 16  ;;  %v618_v12 = vrot.slane %v459_v24, 1 }
 0x137   : > { %v7192_v42 = vadd.f32 %v1273_v48, %v1214_v38  ;;  %v5528_v48 = vld [vmem:[%s6847_s13 + $0x20] sm:$0x1] }
 0x138   : > { %v7194_v43 = vadd.f32 %v1533_v29, %v1331_v30  ;;  %v1770_v46 = vunpack.c.l.b16 %v5528_v48 }
 0x13a   : > { %v7231_v52 = vpack.c.b16 %v1770_v46, %v1770_v46  ;;  %v559_v46 = vshrl.u32 %v7029_v63, 16 }
 0x13c   : > { %v1798_v16 = vshll.u32 %v7231_v52, 16 }
 0x13d   : > { %v7201_v55 = vpop.f32.mrf.mxu2  ;;  %v1217_v2 = vpop.f32.mrf.mxu0 }
 0x13e   : > { %v7203_v57 = vpop.f32.mrf.mxu3  ;;  %v1276_v3 = vpop.f32.mrf.mxu1  ;;  %v1800_v15 = vrot.slane %v1798_v16, 1 }
 0x13f   : > { %v1277_v9 = vadd.f32 %v1276_v3, %v1217_v2 }
 0x140   : > { %1586 = vmatmul.bf16.gmra.mxu0 %v545_v4  ;;  %v557_v4 = vsel %vm461_vm0, %v552_v39, %v556_v40 }
 0x141   : > { %1645 = vmatmul.bf16.gmra.mxu1 %v613_v8  ;;  %v1791_v8 = vshrl.u32 %v7226_v0, 16 }
 0x145   : > { %v1335_v14 = vpop.f32.mrf.mxu2  ;;  %v7215_v29 = vpop.f32.mrf.mxu0 }
 0x146   : > { %v1538_v1 = vpop.f32.mrf.mxu3  ;;  %v1336_v26 = vadd.f32 %v1335_v14, %v1277_v9  ;;  %v7217_v30 = vpop.f32.mrf.mxu1 }
 0x148   : > { %v7219_v38 = vadd.f32 %v1538_v1, %v1336_v26  ;;  %v1796_v1 = vor.u32 %v1795_v13, %v1791_v8  ;;  %v1771_v8 = vunpack.c.l.b16 %v5531_v62  ;;  %v370_v13 = vld [vmem:[%s6847_s13 + $0x74] sm:$0x1] }
 0x14a   : > { %v1801_v26 = vsel %vm461_vm0, %v1796_v1, %v1800_v15  ;;  %v7256_v16 = vpack.c.b16 %v1771_v8, %v1771_v8  ;;  %v573_v8 = vshll.u32 %v7051_v33, 16 }
 0x14b   : > { %2220 = vmatmul.bf16.vlgmr.msrb.gmra.mxu3 %v1801_v26 }
 0x14c   : > { %v1810_v25 = vshll.u32 %v7256_v16, 16 }
 0x14d   : > { %v7234_v2 = vpop.f32.mrf.mxu2  ;;  %v1222_v9 = vpop.f32.mrf.mxu0 }
 0x14e   : > { %v7236_v3 = vpop.f32.mrf.mxu3  ;;  %v1281_v18 = vpop.f32.mrf.mxu1 }
 0x14f   : > { %v1282_v14 = vadd.f32 %v1281_v18, %v1222_v9  ;;  %v564_v9 = vor.u32 %v563_v49, %v559_v46  ;;  %v568_v18 = vrot.slane %v566_v50, 1  ;;  %v1812_v46 = vrot.slane %v1810_v25, 1 }
 0x150   : > { %1591 = vmatmul.bf16.gmra.mxu0 %v557_v4  ;;  %v7251_v4 = vld [vmem:[%s6847_s13 + $0x24] sm:$0xff]  ;;  %v1298_v49 = vadd.f32 %v7045_v27, %v7040_v20  ;;  %v620_v25 = vrot.slane %v7051_v33, 1 }
 0x151   : > { %1650 = vmatmul.bf16.gmra.mxu1 %v616_v37  ;;  %v617_v37 = vrot.slane %v7029_v63, 1  ;;  %2166 = vmatmul.bf16.gmra.mxu2 %v7251_v4  ;;  %v1803_v1 = vshrl.u32 %v7251_v4, 16 }
 0x155   : > { %v1340_v48 = vpop.f32.mrf.mxu2  ;;  %v7244_v41 = vpop.f32.mrf.mxu0 }
 0x156   : > { %v1543_v39 = vpop.f32.mrf.mxu3  ;;  %v1341_v40 = vadd.f32 %v1340_v48, %v1282_v14  ;;  %v1805_v14 = vshll.u32 %v7251_v4, 16  ;;  %v569_v48 = vsel %vm461_vm0, %v564_v9, %v568_v18  ;;  %v1501_v9 = vadd.f32 %v7047_v28, %v1298_v49 }
 0x158   : > { %v7247_v51 = vadd.f32 %v1543_v39, %v1341_v40  ;;  %v1807_v15 = vrot.slane %v1805_v14, 1  ;;  %v619_v39 = vsel %vm592_vm1, %v617_v37, %v618_v12  ;;  %v450_v40 = vunpack.c.l.b16 %v370_v13  ;;  %v5534_v14 = vld [vmem:[%s6847_s13 + $0x38] sm:$0x1] }
 0x159   : > { %v575_v37 = vrot.slane %v573_v8, 1  ;;  %v1772_v20 = vunpack.c.l.b16 %v5534_v14  ;;  %v5537_v14 = vld [vmem:[%s6847_s13 + $0x44] sm:$0x1] }
 0x15a   : > { %v1808_v24 = vor.u32 %v1807_v15, %v1803_v1  ;;  %v460_v62 = vpack.c.b16 %v450_v40, %v450_v40  ;;  %v7276_v1 = vld [vmem:[%s6847_s13 + $0x30] sm:$0xff] }
 0x15b   : > { %v1817_v28 = vshll.u32 %v7276_v1, 16 }
 0x15c   : > { %v1813_v50 = vsel %vm461_vm0, %v1808_v24, %v1812_v46  ;;  %v578_v12 = vshll.u32 %v460_v62, 16 }
 0x15d   : > { %v1557_v26 = vpop.f32.mrf.mxu0  ;;  %2225 = vmatmul.bf16.gmra.mxu3 %v1813_v50  ;;  %v1819_v40 = vrot.slane %v1817_v28, 1 }
 0x15e   : > { %v7264_v63 = vadd.f32 %v1557_v26, %v7042_v21  ;;  %v571_v21 = vshrl.u32 %v7051_v33, 16  ;;  %v580_v15 = vrot.slane %v578_v12, 1  ;;  %v621_v26 = vrot.slane %v460_v62, 1 }
 0x160   : > { %1596 = vmatmul.bf16.gmra.mxu0 %v569_v48  ;;  %v576_v27 = vor.u32 %v575_v37, %v571_v21  ;;  %v7280_v48 = vpack.c.b16 %v1772_v20, %v1772_v20  ;;  %v622_v50 = vsel %vm592_vm1, %v620_v25, %v621_v26  ;;  %v6356_v20 = vld [vmem:[#allocation3 + $0x138] sm:$0xff]  ;;  %v1921_v25 = vrot.slane %v7231_v52, 1 }
 0x161   : > { %1655 = vmatmul.bf16.gmra.mxu1 %v619_v39  ;;  %2171 = vmatmul.bf16.gmra.mxu2 %v7276_v1  ;;  %v1815_v39 = vshrl.u32 %v7276_v1, 16 }
 0x162   : > { %v1822_v24 = vshll.u32 %v7280_v48, 16  ;;  %v581_v49 = vsel %vm461_vm0, %v576_v27, %v580_v15  ;;  %v7298_v27 = vld [vmem:[%s6847_s13 + $0x3c] sm:$0xff]  ;;  %v1920_v15 = vrot.slane %v7226_v0, 1  ;;  %3613 = vmatpush.bf16.msra.mxu2 %v6356_v20 }
 0x163   : > { %v1820_v62 = vor.u32 %v1819_v40, %v1815_v39 }
 0x164   : > { %v1824_v8 = vrot.slane %v1822_v24, 1  ;;  %v1922_v40 = vsel %vm592_vm1, %v1920_v15, %v1921_v25 }
 0x165   : > { %v1559_v18 = vpop.f32.mrf.mxu0 }
 0x166   : > { %v7272_v13 = vadd.f32 %v1559_v18, %v1501_v9  ;;  %v1303_v9 = vadd.f32 %v7072_v60, %v7066_v53  ;;  %v1825_v18 = vsel %vm461_vm0, %v1820_v62, %v1824_v8  ;;  %v1829_v60 = vshll.u32 %v7298_v27, 16  ;;  %v6364_v62 = vld [vmem:[#allocation3 + $0x178] sm:$0xff] }
 0x167   : > { %3662 = vmatpush.bf16.msra.mxu3 %v6364_v62 }
 0x168   : > { %v1506_v21 = vadd.f32 %v7074_v61, %v1303_v9  ;;  %v1827_v61 = vshrl.u32 %v7298_v27, 16  ;;  %v1831_v26 = vrot.slane %v1829_v60, 1 }
 0x16a   : > { %v1832_v52 = vor.u32 %v1831_v26, %v1827_v61  ;;  %v1313_v26 = vadd.f32 %v7115_v6, %v7109_v58  ;;  %v1926_v58 = vrot.slane %v7276_v1, 1  ;;  %v1927_v6 = vrot.slane %v7280_v48, 1 }
 0x16d   : > { %v1562_v46 = vpop.f32.mrf.mxu0  ;;  %2230 = vmatmul.bf16.gmra.mxu3 %v1825_v18 }
 0x16e   : > { %v7288_v33 = vadd.f32 %v1562_v46, %v7068_v54  ;;  %v1773_v54 = vunpack.c.l.b16 %v5537_v14  ;;  %v1308_v46 = vadd.f32 %v7095_v34, %v7086_v22  ;;  %v1923_v14 = vrot.slane %v7251_v4, 1 }
 0x16f   : > { %v1924_v22 = vrot.slane %v7256_v16, 1 }
 0x170   : > { %1601 = vmatmul.bf16.gmra.mxu0 %v581_v49  ;;  %v7302_v53 = vpack.c.b16 %v1773_v54, %v1773_v54  ;;  %v1511_v8 = vadd.f32 %v7097_v35, %v1308_v46 }
 0x171   : > { %1660 = vmatmul.bf16.gmra.mxu1 %v622_v50  ;;  %2176 = vmatmul.bf16.gmra.mxu2 %v7298_v27  ;;  %v6348_v50 = vld [vmem:[#allocation3 + $0xf8] sm:$0xff]  ;;  %v1925_v60 = vsel %vm592_vm1, %v1923_v14, %v1924_v22  ;;  %v1928_v22 = vsel %vm592_vm1, %v1926_v58, %v1927_v6  ;;  %v1323_v6 = vadd.f32 %v7155_v17, %v7149_v10 }
 0x172   : > { %v1834_v28 = vshll.u32 %v7302_v53, 16  ;;  %3564 = vmatpush.bf16.msra.mxu1 %v6348_v50  ;;  %v7342_v50 = vld [vmem:[%s6847_s13 + $0x54] sm:$0xff] }
 0x174   : > { %v1836_v24 = vrot.slane %v1834_v28, 1 }
 0x175   : > { %v1564_v37 = vpop.f32.mrf.mxu0 }
 0x176   : > { %v7294_v12 = vadd.f32 %v1564_v37, %v1506_v21  ;;  %v1837_v49 = vsel %vm461_vm0, %v1832_v52, %v1836_v24  ;;  %v7320_v21 = vld [vmem:[%s6847_s13 + $0x48] sm:$0xff]  ;;  %v1516_v52 = vadd.f32 %v7117_v47, %v1313_v26  ;;  %v1851_v47 = vshrl.u32 %v7342_v50, 16  ;;  %v6346_v26 = vld [vmem:[#allocation3 + $0xe8] sm:$0xff] }
 0x177   : > { %v1841_v20 = vshll.u32 %v7320_v21, 16  ;;  %v1839_v54 = vshrl.u32 %v7320_v21, 16 }
 0x179   : > { %v1843_v35 = vrot.slane %v1841_v20, 1 }
 0x17b   : > { %v1844_v4 = vor.u32 %v1843_v35, %v1839_v54  ;;  %v1318_v54 = vadd.f32 %v7138_v44, %v7126_v32  ;;  %v1930_v32 = vrot.slane %v7302_v53, 1 }
 0x17d   : > { %v1567_v39 = vpop.f32.mrf.mxu0  ;;  %2235 = vmatmul.bf16.gmra.mxu3 %v1837_v49  ;;  %v6363_v49 = vld [vmem:[#allocation3 + $0x170] sm:$0xff] }
 0x17e   : > { %v7310_v0 = vadd.f32 %v1567_v39, %v7088_v23  ;;  %v5540_v23 = vld [vmem:[%s6847_s13 + $0x50] sm:$0x1]  ;;  %v6355_v39 = vld [vmem:[#allocation3 + $0x130] sm:$0xff]  ;;  %3663 = vmatpush.bf16.msra.mxu3 %v6363_v49 }
 0x17f   : > { %v1774_v37 = vunpack.c.l.b16 %v5540_v23  ;;  %3614 = vmatpush.bf16.msra.mxu2 %v6355_v39 }
 0x180   : > { %2279 = vmatmul.bf16.vlgmr.msra.gmra.mxu0 %v1922_v40  ;;  %v6347_v40 = vld [vmem:[#allocation3 + $0xf0] sm:$0xff] }
 0x181   : > { %v7324_v34 = vpack.c.b16 %v1774_v37, %v1774_v37  ;;  %2181 = vmatmul.bf16.gmra.mxu2 %v7320_v21  ;;  %3565 = vmatpush.bf16.msra.mxu1 %v6347_v40  ;;  %v1929_v40 = vrot.slane %v7298_v27, 1 }
 0x183   : > { %v1846_v15 = vshll.u32 %v7324_v34, 16  ;;  %v1931_v27 = vsel %vm592_vm1, %v1929_v40, %v1930_v32  ;;  %v6361_v40 = vld [vmem:[#allocation3 + $0x160] sm:$0xff] }
 0x185   : > { %v1569_v9 = vpop.f32.mrf.mxu0  ;;  %v1848_v16 = vrot.slane %v1846_v15, 1  ;;  %v6354_v15 = vld [vmem:[#allocation3 + $0x128] sm:$0xff]  ;;  %3566 = vmatpush.bf16.msra.mxu1 %v6346_v26 }
 0x186   : > { %v7316_v18 = vadd.f32 %v1569_v9, %v1511_v8  ;;  %v1853_v9 = vshll.u32 %v7342_v50, 16  ;;  %3615 = vmatpush.bf16.msra.mxu2 %v6354_v15 }
 0x187   : > { %v1849_v28 = vsel %vm461_vm0, %v1844_v4, %v1848_v16  ;;  %v5546_v16 = vld [vmem:[%s6847_s13 + $0x68] sm:$0x1] }
 0x188   : > { %v1855_v23 = vrot.slane %v1853_v9, 1  ;;  %v1776_v39 = vunpack.c.l.b16 %v5546_v16 }
 0x18a   : > { %v1856_v48 = vor.u32 %v1855_v23, %v1851_v47  ;;  %v7368_v44 = vpack.c.b16 %v1776_v39, %v1776_v39  ;;  %v1526_v47 = vadd.f32 %v7157_v19, %v1323_v6 }
 0x18d   : > { %v1572_v25 = vpop.f32.mrf.mxu0  ;;  %2240 = vmatmul.bf16.gmra.mxu3 %v1849_v28  ;;  %v7364_v28 = vld [vmem:[%s6847_s13 + $0x60] sm:$0xff] }
 0x18e   : > { %v7332_v61 = vadd.f32 %v1572_v25, %v7111_v59  ;;  %v5543_v59 = vld [vmem:[%s6847_s13 + $0x5c] sm:$0x1]  ;;  %v1521_v25 = vadd.f32 %v7140_v45, %v1318_v54  ;;  %v1863_v45 = vshrl.u32 %v7364_v28, 16  ;;  %v1932_v54 = vrot.slane %v7320_v21, 1 }
 0x18f   : > { %v1775_v62 = vunpack.c.l.b16 %v5543_v59  ;;  %v1870_v59 = vshll.u32 %v7368_v44, 16 }
 0x190   : > { %2284 = vmatmul.bf16.gmra.mxu0 %v1925_v60 }
 0x191   : > { %v7346_v8 = vpack.c.b16 %v1775_v62, %v1775_v62  ;;  %2186 = vmatmul.bf16.gmra.mxu2 %v7342_v50  ;;  %v1872_v58 = vrot.slane %v1870_v59, 1  ;;  %v6352_v59 = vld [vmem:[#allocation3 + $0x118] sm:$0xff] }
 0x193   : > { %v1858_v37 = vshll.u32 %v7346_v8, 16 }
 0x195   : > { %v1574_v24 = vpop.f32.mrf.mxu0  ;;  %v1860_v20 = vrot.slane %v1858_v37, 1 }
 0x196   : > { %v7338_v46 = vadd.f32 %v1574_v24, %v1516_v52  ;;  %v1865_v52 = vshll.u32 %v7364_v28, 16 }
 0x197   : > { %v1861_v35 = vsel %vm461_vm0, %v1856_v48, %v1860_v20  ;;  %v6345_v48 = vld [vmem:[#allocation3 + $0xe0] sm:$0xff]  ;;  %v7386_v20 = vld [vmem:[%s6847_s13 + $0x6c] sm:$0xff] }
 0x198   : > { %v1867_v24 = vrot.slane %v1865_v52, 1  ;;  %3567 = vmatpush.bf16.msra.mxu1 %v6345_v48  ;;  %v1877_v17 = vshll.u32 %v7386_v20, 16  ;;  %v1875_v19 = vshrl.u32 %v7386_v20, 16 }
 0x19a   : > { %v1868_v62 = vor.u32 %v1867_v24, %v1863_v45  ;;  %v1879_v15 = vrot.slane %v1877_v17, 1  ;;  %v5552_v24 = vld [vmem:[%s6847_s13 + $0x80] sm:$0x1]  ;;  %v6360_v17 = vld [vmem:[#allocation3 + $0x158] sm:$0xff] }
 0x19c   : > { %v1873_v9 = vsel %vm461_vm0, %v1868_v62, %v1872_v58  ;;  %v1880_v16 = vor.u32 %v1879_v15, %v1875_v19 }
 0x19d   : > { %v1577_v14 = vpop.f32.mrf.mxu0  ;;  %2245 = vmatmul.bf16.gmra.mxu3 %v1861_v35  ;;  %v1933_v35 = vrot.slane %v7324_v34, 1 }
 0x19e   : > { %v7354_v1 = vadd.f32 %v1577_v14, %v7128_v36  ;;  %v6362_v36 = vld [vmem:[#allocation3 + $0x168] sm:$0xff]  ;;  %v5549_v14 = vld [vmem:[%s6847_s13 + $0x74] sm:$0x1] }
 0x19f   : > { %3664 = vmatpush.bf16.msra.mxu3 %v6362_v36  ;;  %v1934_v21 = vsel %vm592_vm1, %v1932_v54, %v1933_v35  ;;  %v1328_v36 = vadd.f32 %v7178_v5, %v7172_v31  ;;  %v1936_v31 = vrot.slane %v7346_v8, 1  ;;  %v7412_v5 = vpop.f32.mrf.mxu2  ;;  %v7423_v8 = vpop.f32.mrf.mxu3  ;;  %v6344_v35 = vld [vmem:[#allocation3 + $0xd8] sm:$0xff] }
 0x1a0   : > { %2289 = vmatmul.bf16.gmra.mxu0 %v1928_v22  ;;  %v6353_v22 = vld [vmem:[#allocation3 + $0x120] sm:$0xff]  ;;  %3568 = vmatpush.bf16.msra.mxu1 %v6344_v35 }
 0x1a1   : > { %2191 = vmatmul.bf16.gmra.mxu2 %v7364_v28  ;;  %v1531_v32 = vadd.f32 %v7180_v7, %v1328_v36  ;;  %v7418_v7 = vpop.f32.mrf.mxu1 }
 0x1a2   : > { %3616 = vmatpush.bf16.msra.mxu2 %v6353_v22 }
 0x1a3   : > { %3665 = vmatpush.bf16.msra.mxu3 %v6361_v40 }
 0x1a5   : > { %v1579_v60 = vpop.f32.mrf.mxu0 }
 0x1a6   : > { %v7360_v4 = vadd.f32 %v1579_v60, %v1521_v25  ;;  %3617 = vmatpush.bf16.msra.mxu2 %v6352_v59 }
 0x1a7   : > { %3666 = vmatpush.bf16.msra.mxu3 %v6360_v17 }
 0x1a9   : > { %v7434_v15 = vpop.f32.mrf.mxu1 }
 0x1ad   : > { %v1582_v49 = vpop.f32.mrf.mxu0  ;;  %2250 = vmatmul.bf16.gmra.mxu3 %v1873_v9 }
 0x1ae   : > { %v7376_v53 = vadd.f32 %v1582_v49, %v7151_v11  ;;  %v1777_v11 = vunpack.c.l.b16 %v5549_v14  ;;  %v1778_v49 = vunpack.c.l.b16 %v5552_v24 }
 0x1b0   : > { %2294 = vmatmul.bf16.gmra.mxu0 %v1931_v27  ;;  %v7390_v10 = vpack.c.b16 %v1777_v11, %v1777_v11  ;;  %v1935_v27 = vrot.slane %v7342_v50, 1  ;;  %v7414_v62 = vpack.c.b16 %v1778_v49, %v1778_v49  ;;  %v1333_v11 = vadd.f32 %v7201_v55, %v7192_v42 }
 0x1b1   : > { %2196 = vmatmul.bf16.gmra.mxu2 %v7386_v20  ;;  %v1938_v55 = vrot.slane %v7364_v28, 1 }
 0x1b2   : > { %v1882_v25 = vshll.u32 %v7390_v10, 16  ;;  %v1937_v50 = vsel %vm592_vm1, %v1935_v27, %v1936_v31 }
 0x1b4   : > { %v1884_v26 = vrot.slane %v1882_v25, 1 }
 0x1b5   : > { %v1584_v23 = vpop.f32.mrf.mxu0 }
 0x1b6   : > { %v7382_v37 = vadd.f32 %v1584_v23, %v1526_v47  ;;  %v1885_v39 = vsel %vm461_vm0, %v1880_v16, %v1884_v26  ;;  %v1894_v47 = vshll.u32 %v7414_v62, 16 }
 0x1b8   : > { %v1896_v48 = vrot.slane %v1894_v47, 1  ;;  %v7431_v19 = vpop.f32.mrf.mxu2 }
 0x1bd   : > { %v1587_v60 = vpop.f32.mrf.mxu0  ;;  %2255 = vmatmul.bf16.gmra.mxu3 %v1885_v39  ;;  %v7443_v39 = vpop.f32.mrf.mxu1 }
 0x1be   : > { %v7398_v34 = vadd.f32 %v1587_v60, %v7174_v56  ;;  %v7408_v56 = vld [vmem:[%s6847_s13 + $0x78] sm:$0xff] }
 0x1bf   : > { %v1889_v58 = vshll.u32 %v7408_v56, 16  ;;  %v1887_v6 = vshrl.u32 %v7408_v56, 16 }
 0x1c0   : > { %2299 = vmatmul.bf16.gmra.mxu0 %v1934_v21  ;;  %v1939_v21 = vrot.slane %v7368_v44, 1  ;;  %v7440_v16 = vpop.f32.mrf.mxu2 }
 0x1c1   : > { %2201 = vmatmul.bf16.gmra.mxu2 %v7408_v56  ;;  %v1891_v9 = vrot.slane %v1889_v58, 1 }
 0x1c2   : > { %v1940_v36 = vsel %vm592_vm1, %v1938_v55, %v1939_v21  ;;  %v2534_v55 = vld [vmem:[#allocation2 + $0x8] sm:$0x1] }
 0x1c3   : > { %v1892_v22 = vor.u32 %v1891_v9, %v1887_v6 }
 0x1c5   : > { %v1589_v52 = vpop.f32.mrf.mxu0  ;;  %v1897_v54 = vsel %vm461_vm0, %v1892_v22, %v1896_v48  ;;  %v7466_v47 = vpop.f32.mrf.mxu1  ;;  %v1942_v22 = vrot.slane %v7390_v10, 1 }
 0x1c6   : > { %v7404_v45 = vadd.f32 %v1589_v52, %v1531_v32  ;;  %v5555_v32 = vld [vmem:[%s6847_s13 + $0x8c] sm:$0x1]  ;;  %v7452_v52 = vld [vmem:[%s6847_s13 + $0x84] sm:$0xff] }
 0x1c7   : > { %v1779_v24 = vunpack.c.l.b16 %v5555_v32  ;;  %v1901_v44 = vshll.u32 %v7452_v52, 16  ;;  %v1899_v59 = vshrl.u32 %v7452_v52, 16  ;;  %v6343_v32 = vld [vmem:[#allocation3 + $0xd0] sm:$0xff] }
 0x1c8   : > { %3569 = vmatpush.bf16.msra.mxu1 %v6343_v32 }
 0x1c9   : > { %v7455_v28 = vpack.c.b16 %v1779_v24, %v1779_v24  ;;  %v1903_v49 = vrot.slane %v1901_v44, 1  ;;  %v1944_v24 = vrot.slane %v7408_v56, 1  ;;  %v1945_v44 = vrot.slane %v7414_v62, 1 }
 0x1ca   : > { %v1617_v62 = vadd.f32 %v7434_v15, %v7264_v63 }
 0x1cb   : > { %v1906_v27 = vshll.u32 %v7455_v28, 16  ;;  %v1904_v6 = vor.u32 %v1903_v49, %v1899_v59  ;;  %v2505_v59 = vld [vmem:[#allocation2 + $0xc] sm:$0x1]  ;;  %v1946_v56 = vsel %vm592_vm1, %v1944_v24, %v1945_v44  ;;  %v6380_v44 = vld [vmem:[#allocation3 + $0x1b8] sm:$0xff] }
 0x1cc   : > { %4428 = vmatpush.bf16.msrb.mxu0 %v6380_v44  ;;  %v6378_v44 = vld [vmem:[#allocation3 + $0x1a8] sm:$0xff] }
 0x1cd   : > { %v1592_v23 = vpop.f32.mrf.mxu0  ;;  %2260 = vmatmul.bf16.gmra.mxu3 %v1897_v54  ;;  %v1908_v9 = vrot.slane %v1906_v27, 1  ;;  %v7491_v21 = vpop.f32.mrf.mxu1  ;;  %v2506_v27 = vsel %vm7471_vm4, 0, %v2505_v59  ;;  %v8523_v59 = vmov 0.0  }
 0x1ce   : > { %v7426_v14 = vadd.f32 %v1592_v23, %v7194_v43  ;;  %v1536_v43 = vadd.f32 %v7203_v57, %v1333_v11  ;;  %v2221_v42 = vpop.f32.mrf.mxu3  ;;  %v2502_v23 = vld [vmem:[#allocation2] sm:$0x1]  ;;  %2507 = vst [vmem:[#allocation2 + $0xc] sm:$0x1] %v2506_v27 }
 0x1cf   : > { %v1909_v11 = vsel %vm461_vm0, %v1904_v6, %v1908_v9  ;;  %v2503_v54 = vsel %vm7471_vm4, 0, %v2502_v23  ;;  %v2222_v49 = vadd.f32 %v2221_v42, %v7431_v19  ;;  %v7517_v42 = vld [vmem:[%s8513_s2] ss:$0 sm:$0xff] }
 0x1d0   : > { %2304 = vmatmul.bf16.gmra.mxu0 %v1937_v50  ;;  %v1941_v50 = vrot.slane %v7386_v20, 1  ;;  %2504 = vst [vmem:[#allocation2] sm:$0x1] %v2503_v54 }
 0x1d1   : > { %2206 = vmatmul.bf16.gmra.mxu2 %v7452_v52 }
 0x1d2   : > { %v1943_v17 = vsel %vm592_vm1, %v1941_v50, %v1942_v22  ;;  %v7509_v50 = vstv %s5740_s24  ;;  %v6359_v22 = vld [vmem:[#allocation3 + $0x150] sm:$0xff]  ;;  %s5059_s24 = sshll.u32 %s8318_s18, 4  ;;  %s5060_s24 = int_to_ptr.vmem [resolvable:$true] %s5059_s24 }
 0x1d3   : > { %3667 = vmatpush.bf16.msra.mxu3 %v6359_v22  ;;  %vm2429_vm7 = vcmp.ge.s32.totalorder %v7509_v50, 0  ;;  %vm2439_vm8 = vcmp.lt.s32.totalorder %v7509_v50, 16  ;;  %v1619_v22 = vadd.f32 %v7443_v39, %v7272_v13  ;;  %v2420_v39 = vadd.s32 1, %v7509_v50 }
 0x1d4   : > { %v7462_v31 = vpop.f32.mrf.mxu2  ;;  %vm2449_vm9 = vmand %vm2429_vm7, %vm2439_vm8 }
 0x1d5   : > { %v1594_v25 = vpop.f32.mrf.mxu0  ;;  %v7507_v23 = vpop.f32.mrf.mxu1  ;;  %vm2430_vm12 = vcmp.ge.s32.totalorder %v2420_v39, 0  ;;  %vm2440_vm13 = vcmp.lt.s32.totalorder %v2420_v39, 16 }
 0x1d6   : > { %v7436_v60 = vadd.f32 %v1594_v25, %v1536_v43  ;;  %v7448_v57 = vpop.f32.mrf.mxu3  ;;  %vm2450_vm14 = vmand %vm2430_vm12, %vm2440_vm13 }
 0x1dc   : > { %v7487_v43 = vpop.f32.mrf.mxu2 }
 0x1dd   : > { %v1597_v26 = vpop.f32.mrf.mxu0  ;;  %2265 = vmatmul.bf16.gmra.mxu3 %v1909_v11 }
 0x1de   : > { %v7446_v40 = vadd.f32 %v1597_v26, %v7219_v38  ;;  %v2535_v26 = vsel %vm7483_vm6, 0, %v2534_v55  ;;  %v6350_v55 = vld [vmem:[#allocation3 + $0x108] sm:$0xff] }
 0x1df   : > { %2536 = vst [vmem:[#allocation2 + $0x8] sm:$0x1] %v2535_v26  ;;  %v2224_v26 = vadd.f32 %v7448_v57, %v7440_v16 }
 0x1e0   : > { %2309 = vmatmul.bf16.gmra.mxu0 %v1940_v36  ;;  %v7464_v58 = vpop.f32.mrf.mxu3  ;;  %v6351_v36 = vld [vmem:[#allocation3 + $0x110] sm:$0xff] }
 0x1e1   : > { %3618 = vmatpush.bf16.msra.mxu2 %v6351_v36 }
 0x1e4   : > { %v7503_v6 = vpop.f32.mrf.mxu2 }
 0x1e5   : > { %v7460_v38 = vpop.f32.mrf.mxu0  ;;  %3619 = vmatpush.bf16.msra.mxu2 %v6350_v55  ;;  %v2227_v55 = vadd.f32 %v7464_v58, %v7462_v31 }
 0x1e8   : > { %v7489_v25 = vpop.f32.mrf.mxu3 }
 0x1ec   : > { %v7532_v32 = vpop.f32.mrf.mxu2 }
 0x1ed   : > { %v1602_v35 = vpop.f32.mrf.mxu0 }
 0x1ee   : > { %v7480_v20 = vadd.f32 %v1602_v35, %v7247_v51  ;;  %v7524_v35 = vld [vmem:[%s8514_s3] ss:$0 sm:$0xff] }
 0x1f0   : > { %2314 = vmatmul.bf16.gmra.mxu0 %v1943_v17  ;;  %v7505_v9 = vpop.f32.mrf.mxu3  ;;  %v2537_v17 = vld [vmem:[#allocation2 + $0x14] sm:$0x1] }
 0x1f1   : > { %v2538_v15 = vsel %vm7483_vm6, 0, %v2537_v17  ;;  %v1948_v17 = vrot.slane %v7455_v28, 1  ;;  %v6358_v28 = vld [vmem:[#allocation3 + $0x148] sm:$0xff] }
 0x1f2   : > { %2539 = vst [vmem:[#allocation2 + $0x14] sm:$0x1] %v2538_v15  ;;  %3668 = vmatpush.bf16.msra.mxu3 %v6358_v28  ;;  %v2229_v28 = vadd.f32 %v7489_v25, %v7487_v43  ;;  %v2792_v25 = vld [vmem:[#allocation2 + $0x8] sm:$0x1]  ;;  %v7942_v43 = vld [vmem:[%s8518_s7 + $0x30] sm:$0xff] }
 0x1f5   : > { %v7495_v51 = vpop.f32.mrf.mxu0 }
 0x1f8   : > { %v7534_v24 = vpop.f32.mrf.mxu3 }
 0x1fd   : > { %v2280_v11 = vpop.f32.mrf.mxu0 }
 0x1fe   : > { %v2281_v19 = vadd.f32 %v2280_v11, %v2222_v49  ;;  %v5741_v49 = vsel %vm2449_vm9, 1.0, %v8523_v59  ;;  %v7539_v11 = vpop.f32.mrf.mxu1 }
 0x200   : > { %v2330_v54 = vadd.f32 %v2281_v19, %v1617_v62  ;;  %2319 = vmatmul.bf16.gmra.mxu0 %v1946_v56  ;;  %v6379_v19 = vld [vmem:[#allocation3 + $0x1b0] sm:$0xff] }
 0x201   : > { %4429 = vmatpush.bf16.msrb.mxu0 %v6379_v19  ;;  %v7555_v19 = vpop.f32.mrf.mxu3 }
 0x202   : > { %v2354_v63 = vmul.f32 %v7517_v42, %v2330_v54  ;;  %v1947_v54 = vrot.slane %v7452_v52, 1 }
 0x204   : > { %v2378_v36 = vadd.f32 %v7524_v35, %v2354_v63  ;;  %v2508_v63 = vld [vmem:[#allocation2 + $0x18] sm:$0x1]  ;;  %v1949_v58 = vsel %vm592_vm1, %v1947_v54, %v1948_v17 }
 0x205   : > { %v2282_v27 = vpop.f32.mrf.mxu0  ;;  %v2509_v13 = vsel %vm7471_vm4, 0, %v2508_v63  ;;  %4430 = vmatpush.bf16.msrb.mxu0 %v6378_v44 }
 0x206   : > { %v2398_v56 = vmax.f32 %v2378_v36, 0.0  ;;  %v2283_v62 = vadd.f32 %v2282_v27, %v2224_v26  ;;  %2510 = vst [vmem:[#allocation2 + $0x18] sm:$0x1] %v2509_v13  ;;  %v6342_v36 = vld [vmem:[#allocation3 + $0xc8] sm:$0xff]  ;;  %v1622_v27 = vadd.f32 %v7466_v47, %v7288_v33  ;;  %v7563_v47 = vpop.f32.mrf.mxu1 }
 0x207   : > { %3570 = vmatpush.bf16.msra.mxu1 %v6342_v36  ;;  %v2788_v33 = vld [vmem:[#allocation2] sm:$0xf] }
 0x208   : > { %v2479_v16 = vmul.f32 %v5741_v49, %v2398_v56  ;;  %v2331_v57 = vadd.f32 %v2283_v62, %v1619_v22  ;;  %v2540_v13 = vld [vmem:[#allocation2 + $0x20] sm:$0x1] }
 0x209   : > { %v2541_v39 = vsel %vm7483_vm6, 0, %v2540_v13 }
 0x20a   : > { %v2564_v15 = vpack.c.bf16 %v2479_v16, %v2479_v16  ;;  %v2355_v59 = vmul.f32 %v7517_v42, %v2331_v57  ;;  %v7553_v57 = vpop.f32.mrf.mxu2  ;;  %2542 = vst [vmem:[#allocation2 + $0x20] sm:$0x1] %v2541_v39  ;;  %v2511_v39 = vld [vmem:[#allocation2 + $0x24] sm:$0x1] }
 0x20c   : > { %v2587_v26 = vshrl.u32 %v2564_v15, 16  ;;  %v2379_v52 = vadd.f32 %v7524_v35, %v2355_v59  ;;  %v2590_v56 = vshll.u32 %v2564_v15, 16  ;;  %v6341_v15 = vld [vmem:[#allocation3 + $0xc0] sm:$0xff] }
 0x20d   : > { %v2285_v31 = vpop.f32.mrf.mxu0  ;;  %3571 = vmatpush.bf16.msra.mxu1 %v6341_v15 }
 0x20e   : > { %v2589_v22 = vrot.slane %v2587_v26, 7  ;;  %v2399_v62 = vmax.f32 %v2379_v52, 0.0  ;;  %v2286_v16 = vadd.f32 %v2285_v31, %v2227_v55  ;;  %v6377_v55 = vld [vmem:[#allocation3 + $0x1a0] sm:$0xff]  ;;  %v1624_v31 = vadd.f32 %v7491_v21, %v7294_v12 }
 0x20f   : > { %4431 = vmatpush.bf16.msrb.mxu0 %v6377_v55 }
 0x210   : > { %v2592_v54 = vor.u32 %v2590_v56, %v2589_v22  ;;  %v2480_v17 = vmul.f32 %v5741_v49, %v2399_v62  ;;  %v2332_v63 = vadd.f32 %v2286_v16, %v1622_v27  ;;  %2324 = vmatmul.bf16.gmra.mxu0 %v1949_v58  ;;  %v6376_v27 = vld [vmem:[#allocation3 + $0x198] sm:$0xff]  ;;  %v8540_v58 = vmov 0.0  }
 0x211   : > { %v5742_v56 = vsel %vm2450_vm14, 1.0, %v8540_v58  ;;  %v2593_v15 = vrot.slane %v2589_v22, 4  ;;  %v2232_v22 = vadd.f32 %v7505_v9, %v7503_v6  ;;  %v2512_v6 = vsel %vm7471_vm4, 0, %v2511_v39 }
 0x212   : > { %v2789_v26 = vsel %vm7559_vm11, %v2592_v54, %v2788_v33  ;;  %v2565_v52 = vpack.c.bf16 %v2480_v17, %v2480_v17  ;;  %v2356_v36 = vmul.f32 %v7517_v42, %v2332_v63  ;;  %v6357_v63 = vld [vmem:[#allocation3 + $0x140] sm:$0xff]  ;;  %2513 = vst [vmem:[#allocation2 + $0x24] sm:$0x1] %v2512_v6  ;;  %v2234_v6 = vadd.f32 %v7534_v24, %v7532_v32 }
 0x213   : > { %2790 = vst [vmem:[#allocation2] sm:$0xf] %v2789_v26  ;;  %4432 = vmatpush.bf16.msrb.mxu0 %v6376_v27  ;;  %v6349_v26 = vld [vmem:[#allocation3 + $0x100] sm:$0xff]  ;;  %3669 = vmatpush.bf16.msra.mxu3 %v6357_v63  ;;  %v6374_v63 = vld [vmem:[#allocation3 + $0x188] sm:$0xff]  ;;  %v2237_v32 = vadd.f32 %v7555_v19, %v7553_v57  ;;  %v2422_v24 = vadd.s32 3, %v7509_v50 }
 0x214   : > { %v2595_v49 = vshrl.u32 %v2565_v52, 16  ;;  %v2380_v44 = vadd.f32 %v7524_v35, %v2356_v36  ;;  %v2598_v33 = vshll.u32 %v2565_v52, 16  ;;  %v7582_v36 = vpop.f32.mrf.mxu2  ;;  %v7584_v52 = vpop.f32.mrf.mxu3  ;;  %3620 = vmatpush.bf16.msra.mxu2 %v6349_v26 }
 0x215   : > { %v2287_v62 = vpop.f32.mrf.mxu0  ;;  %vm2432_vm8 = vcmp.ge.s32.totalorder %v2422_v24, 0  ;;  %vm2442_vm9 = vcmp.lt.s32.totalorder %v2422_v24, 16  ;;  %v2546_v24 = vld [vmem:[#allocation2 + $0x38] sm:$0x1] }
 0x216   : > { %v2597_v16 = vrot.slane %v2595_v49, 7  ;;  %v2400_v54 = vmax.f32 %v2380_v44, 0.0  ;;  %v2288_v17 = vadd.f32 %v2287_v62, %v2229_v28  ;;  %v6375_v49 = vld [vmem:[#allocation3 + $0x190] sm:$0xff]  ;;  %v7588_v28 = vpop.f32.mrf.mxu1  ;;  %vm2452_vm10 = vmand %vm2432_vm8, %vm2442_vm9 }
 0x217   : > { %4433 = vmatpush.bf16.msrb.mxu0 %v6375_v49  ;;  %v2543_v49 = vld [vmem:[#allocation2 + $0x2c] sm:$0x1] }
 0x218   : > { %v2600_v55 = vor.u32 %v2598_v33, %v2597_v16  ;;  %v2602_v13 = vrot.slane %v2597_v16, 4  ;;  %v2481_v12 = vmul.f32 %v5742_v56, %v2400_v54  ;;  %v2333_v21 = vadd.f32 %v2288_v17, %v1624_v31 }
 0x219   : > { %v2421_v16 = vadd.s32 2, %v7509_v50  ;;  %v1627_v54 = vadd.f32 %v7507_v23, %v7310_v0 }
 0x21a   : > { %v2601_v44 = vsel %vm7578_vm2, %v2593_v15, %v2600_v55  ;;  %v2793_v27 = vsel %vm7471_vm4, %v2602_v13, %v2792_v25  ;;  %v2566_v31 = vpack.c.bf16 %v2481_v12, %v2481_v12  ;;  %v2357_v62 = vmul.f32 %v7517_v42, %v2333_v21  ;;  %v2795_v12 = vld [vmem:[#allocation2 + $0xc] sm:$0xf] }
 0x21b   : > { %2791 = vst [vmem:[#allocation2 + $0x4] sm:$0xf] %v2601_v44  ;;  %vm2431_vm3 = vcmp.ge.s32.totalorder %v2421_v16, 0  ;;  %vm2441_vm5 = vcmp.lt.s32.totalorder %v2421_v16, 16  ;;  %4434 = vmatpush.bf16.msrb.mxu0 %v6374_v63  ;;  %v6373_v44 = vld [vmem:[#allocation3 + $0x180] sm:$0xff] }
 0x21c   : > { %2794 = vst [vmem:[#allocation2 + $0x8] sm:$0x1] %v2793_v27  ;;  %v2604_v9 = vshrl.u32 %v2566_v31, 16  ;;  %v2381_v33 = vadd.f32 %v7524_v35, %v2357_v62  ;;  %v2607_v25 = vshll.u32 %v2566_v31, 16  ;;  %vm2451_vm7 = vmand %vm2431_vm3, %vm2441_vm5  ;;  %v7604_v62 = vpop.f32.mrf.mxu2  ;;  %v7606_v31 = vpop.f32.mrf.mxu3 }
 0x21d   : > { %v2290_v17 = vpop.f32.mrf.mxu0 }
 0x21e   : > { %v2606_v15 = vrot.slane %v2604_v9, 7  ;;  %v2401_v55 = vmax.f32 %v2381_v33, 0.0  ;;  %v2291_v13 = vadd.f32 %v2290_v17, %v2232_v22  ;;  %v2544_v22 = vsel %vm7483_vm6, 0, %v2543_v49 }
 0x21f   : > { %4435 = vmatpush.bf16.msrb.mxu0 %v6373_v44  ;;  %2545 = vst [vmem:[#allocation2 + $0x2c] sm:$0x1] %v2544_v22  ;;  %v1629_v33 = vadd.f32 %v7539_v11, %v7316_v18 }
 0x220   : > { %v2609_v21 = vor.u32 %v2607_v25, %v2606_v15  ;;  %v2482_v26 = vmul.f32 %v5742_v56, %v2401_v55  ;;  %v2334_v39 = vadd.f32 %v2291_v13, %v1627_v54  ;;  %v7610_v56 = vpop.f32.mrf.mxu1  ;;  %v5743_v54 = vsel %vm2451_vm7, 1.0, %v8540_v58 }
 0x222   : > { %v2796_v27 = vsel %vm7559_vm11, %v2609_v21, %v2795_v12  ;;  %v2567_v0 = vpack.c.bf16 %v2482_v26, %v2482_v26  ;;  %v2358_v23 = vmul.f32 %v7517_v42, %v2334_v39  ;;  %v2610_v12 = vrot.slane %v2606_v15, 4  ;;  %v2799_v21 = vld [vmem:[#allocation2 + $0x14] sm:$0x1]  ;;  %v2514_v15 = vld [vmem:[#allocation2 + $0x30] sm:$0x1] }
 0x223   : > { %2797 = vst [vmem:[#allocation2 + $0xc] sm:$0xf] %v2796_v27 }
 0x224   : > { %v2612_v16 = vshrl.u32 %v2567_v0, 16  ;;  %v2382_v9 = vadd.f32 %v7524_v35, %v2358_v23  ;;  %v2615_v25 = vshll.u32 %v2567_v0, 16  ;;  %v2515_v23 = vsel %vm7471_vm4, 0, %v2514_v15  ;;  %v7629_v19 = vpop.f32.mrf.mxu2 }
 0x225   : > { %v2292_v17 = vpop.f32.mrf.mxu0  ;;  %2516 = vst [vmem:[#allocation2 + $0x30] sm:$0x1] %v2515_v23  ;;  %v5744_v23 = vsel %vm2452_vm10, 1.0, %v8540_v58 }
 0x226   : > { %v2614_v63 = vrot.slane %v2612_v16, 7  ;;  %v2402_v55 = vmax.f32 %v2382_v9, 0.0  ;;  %v2293_v13 = vadd.f32 %v2292_v17, %v2234_v6  ;;  %v7631_v16 = vpop.f32.mrf.mxu3  ;;  %v6324_v6 = vld [vmem:[#allocation3 + $0x78] sm:$0xff]  ;;  %v1632_v9 = vadd.f32 %v7563_v47, %v7332_v61 }
 0x227   : > { %3904 = vmatpush.bf16.msrb.mxu2 %v6324_v6  ;;  %v2242_v6 = vadd.f32 %v7606_v31, %v7604_v62  ;;  %v2423_v31 = vadd.s32 4, %v7509_v50 }
 0x228   : > { %v2617_v26 = vor.u32 %v2615_v25, %v2614_v63  ;;  %v2619_v39 = vrot.slane %v2614_v63, 4  ;;  %v2483_v49 = vmul.f32 %v5743_v54, %v2402_v55  ;;  %v2335_v44 = vadd.f32 %v2293_v13, %v1629_v33  ;;  %v7635_v17 = vpop.f32.mrf.mxu1 }
 0x229   : > { %vm2433_vm12 = vcmp.ge.s32.totalorder %v2423_v31, 0  ;;  %vm2443_vm13 = vcmp.lt.s32.totalorder %v2423_v31, 16  ;;  %v2244_v31 = vadd.f32 %v7631_v16, %v7629_v19 }
 0x22a   : > { %v2618_v18 = vsel %vm7578_vm2, %v2610_v12, %v2617_v26  ;;  %v2800_v11 = vsel %vm7471_vm4, %v2619_v39, %v2799_v21  ;;  %v2568_v27 = vpack.c.bf16 %v2483_v49, %v2483_v49  ;;  %v2359_v0 = vmul.f32 %v7517_v42, %v2335_v44  ;;  %v2802_v12 = vld [vmem:[#allocation2 + $0x18] sm:$0xf]  ;;  %vm7674_vm14 = vmand %vm2433_vm12, %vm2443_vm13 }
 0x22b   : > { %2798 = vst [vmem:[#allocation2 + $0x10] sm:$0xf] %v2618_v18  ;;  %v1634_v18 = vadd.f32 %v7588_v28, %v7338_v46 }
 0x22c   : > { %2801 = vst [vmem:[#allocation2 + $0x14] sm:$0x1] %v2800_v11  ;;  %v2621_v22 = vshrl.u32 %v2568_v27, 16  ;;  %v2383_v57 = vadd.f32 %v7524_v35, %v2359_v0  ;;  %v2624_v25 = vshll.u32 %v2568_v27, 16  ;;  %v6316_v27 = vld [vmem:[#allocation3 + $0x38] sm:$0xff] }
 0x22d   : > { %v2295_v33 = vpop.f32.mrf.mxu0  ;;  %3855 = vmatpush.bf16.msrb.mxu1 %v6316_v27 }
 0x22e   : > { %v2623_v63 = vrot.slane %v2621_v22, 7  ;;  %v2403_v55 = vmax.f32 %v2383_v57, 0.0  ;;  %v2296_v13 = vadd.f32 %v2295_v33, %v2237_v32  ;;  %v2239_v32 = vadd.f32 %v7584_v52, %v7582_v36 }
 0x22f   : > { %v2547_v36 = vsel %vm7483_vm6, 0, %v2546_v24 }
 0x230   : > { %v2626_v21 = vor.u32 %v2624_v25, %v2623_v63  ;;  %v2484_v26 = vmul.f32 %v5743_v54, %v2403_v55  ;;  %v2336_v39 = vadd.f32 %v2296_v13, %v1632_v9  ;;  %v6332_v54 = vld [vmem:[#allocation3 + $0xb8] sm:$0xff]  ;;  %v7650_v55 = vpop.f32.mrf.mxu2  ;;  %v7652_v13 = vpop.f32.mrf.mxu3  ;;  %2548 = vst [vmem:[#allocation2 + $0x38] sm:$0x1] %v2547_v36 }
 0x231   : > { %3953 = vmatpush.bf16.msrb.mxu3 %v6332_v54 }
 0x232   : > { %v2803_v49 = vsel %vm7559_vm11, %v2626_v21, %v2802_v12  ;;  %v2569_v61 = vpack.c.bf16 %v2484_v26, %v2484_v26  ;;  %v2360_v47 = vmul.f32 %v7517_v42, %v2336_v39  ;;  %v6333_v44 = vld [vmem:[#allocation2 + $0xc] sm:$0xff]  ;;  %v2627_v12 = vrot.slane %v2623_v63, 4  ;;  %v2806_v21 = vld [vmem:[#allocation2 + $0x20] sm:$0x1]  ;;  %v7655_v39 = vpop.f32.mrf.mxu1 }
 0x233   : > { %2804 = vst [vmem:[#allocation2 + $0x18] sm:$0xf] %v2803_v49  ;;  %v3141_v11 = vld [vmem:[#allocation2 + $0x14] sm:$0x1]  ;;  %3572 = vmatmul.bf16.vlgmr.msra.gmra.mxu1 %v6333_v44  ;;  %v3238_v46 = vshll.u32 %v6333_v44, 16  ;;  %v3236_v26 = vshrl.u32 %v6333_v44, 16 }
 0x234   : > { %v2629_v0 = vshrl.u32 %v2569_v61, 16  ;;  %v2384_v15 = vadd.f32 %v7524_v35, %v2360_v47  ;;  %v3219_v22 = vunpack.c.l.b16 %v3141_v11  ;;  %v2632_v57 = vshll.u32 %v2569_v61, 16 }
 0x235   : > { %v2297_v9 = vpop.f32.mrf.mxu0  ;;  %v3240_v62 = vrot.slane %v3238_v46, 1  ;;  %v3339_v11 = vrot.slane %v6333_v44, 1 }
 0x236   : > { %v2631_v52 = vrot.slane %v2629_v0, 7  ;;  %v2404_v28 = vmax.f32 %v2384_v15, 0.0  ;;  %v2298_v33 = vadd.f32 %v2297_v9, %v2239_v32  ;;  %v3227_v25 = vpack.c.b16 %v3219_v22, %v3219_v22  ;;  %v2517_v9 = vld [vmem:[#allocation2 + $0x3c] sm:$0x1] }
 0x237   : > { %v3241_v27 = vor.u32 %v3240_v62, %v3236_v26  ;;  %v2518_v44 = vsel %vm7471_vm4, 0, %v2517_v9  ;;  %v6315_v9 = vld [vmem:[#allocation3 + $0x30] sm:$0xff] }
 0x238   : > { %v2634_v49 = vor.u32 %v2632_v57, %v2631_v52  ;;  %v2636_v61 = vrot.slane %v2631_v52, 4  ;;  %v2485_v47 = vmul.f32 %v5744_v23, %v2404_v28  ;;  %v2337_v24 = vadd.f32 %v2298_v33, %v1634_v18  ;;  %v6323_v52 = vld [vmem:[#allocation3 + $0x70] sm:$0xff]  ;;  %2519 = vst [vmem:[#allocation2 + $0x3c] sm:$0x1] %v2518_v44  ;;  %3856 = vmatpush.bf16.msrb.mxu1 %v6315_v9 }
 0x239   : > { %v3340_v32 = vrot.slane %v3227_v25, 1  ;;  %v3243_v54 = vshll.u32 %v3227_v25, 16  ;;  %v1637_v28 = vadd.f32 %v7610_v56, %v7354_v1  ;;  %3905 = vmatpush.bf16.msrb.mxu2 %v6323_v52 }
 0x23a   : > { %v2635_v0 = vsel %vm7578_vm2, %v2627_v12, %v2634_v49  ;;  %v2807_v63 = vsel %vm7471_vm4, %v2636_v61, %v2806_v21  ;;  %v2570_v15 = vpack.c.bf16 %v2485_v47, %v2485_v47  ;;  %v2361_v22 = vmul.f32 %v7517_v42, %v2337_v24  ;;  %v2809_v49 = vld [vmem:[#allocation2 + $0x24] sm:$0xf]  ;;  %v7678_v56 = vpop.f32.mrf.mxu1 }
 0x23b   : > { %2805 = vst [vmem:[#allocation2 + $0x1c] sm:$0xf] %v2635_v0  ;;  %v3341_v57 = vsel %vm592_vm1, %v3339_v11, %v3340_v32  ;;  %v3245_v46 = vrot.slane %v3243_v54, 1  ;;  %v7669_v11 = vpop.f32.mrf.mxu2  ;;  %v7671_v32 = vpop.f32.mrf.mxu3 }
 0x23c   : > { %2808 = vst [vmem:[#allocation2 + $0x20] sm:$0x1] %v2807_v63  ;;  %v2638_v18 = vshrl.u32 %v2570_v15, 16  ;;  %v2385_v36 = vadd.f32 %v7524_v35, %v2361_v22  ;;  %3670 = vmatmul.bf16.vlgmr.msra.gmra.mxu3 %v3341_v57  ;;  %v2641_v21 = vshll.u32 %v2570_v15, 16  ;;  %v2549_v63 = vld [vmem:[#allocation2 + $0x44] sm:$0x1]  ;;  %v1639_v15 = vadd.f32 %v7635_v17, %v7360_v4 }
 0x23d   : > { %v3246_v33 = vsel %vm461_vm0, %v3241_v27, %v3245_v46  ;;  %v2300_v25 = vpop.f32.mrf.mxu0  ;;  %v6331_v57 = vld [vmem:[#allocation3 + $0xb0] sm:$0xff]  ;;  %v2247_v4 = vadd.f32 %v7652_v13, %v7650_v55  ;;  %v2550_v19 = vsel %vm7483_vm6, 0, %v2549_v63 }
 0x23e   : > { %v2640_v12 = vrot.slane %v2638_v18, 7  ;;  %v2405_v26 = vmax.f32 %v2385_v36, 0.0  ;;  %3621 = vmatmul.bf16.vlgmr.msra.gmra.mxu2 %v3246_v33  ;;  %v2301_v62 = vadd.f32 %v2300_v25, %v2242_v6  ;;  %v5745_v18 = vsel %vm7674_vm14, 1.0, %v8540_v58  ;;  %3954 = vmatpush.bf16.msrb.mxu3 %v6331_v57  ;;  %2551 = vst [vmem:[#allocation2 + $0x44] sm:$0x1] %v2550_v19 }
 0x23f   : > { %v1642_v19 = vadd.f32 %v7655_v39, %v7376_v53 }
 0x240   : > { %v2643_v61 = vor.u32 %v2641_v21, %v2640_v12  ;;  %v2486_v47 = vmul.f32 %v5744_v23, %v2405_v26  ;;  %v2338_v24 = vadd.f32 %v2301_v62, %v1637_v28  ;;  %v2644_v26 = vrot.slane %v2640_v12, 4  ;;  %v2813_v62 = vld [vmem:[#allocation2 + $0x2c] sm:$0x1] }
 0x242   : > { %v2810_v27 = vsel %vm7559_vm11, %v2643_v61, %v2809_v49  ;;  %v2571_v6 = vpack.c.bf16 %v2486_v47, %v2486_v47  ;;  %v2362_v54 = vmul.f32 %v7517_v42, %v2338_v24  ;;  %v6334_v0 = vld [vmem:[#allocation2 + $0x18] sm:$0xff]  ;;  %v2424_v47 = vadd.s32 5, %v7509_v50 }
 0x243   : > { %v6365_v23 = vld [vmem:[#allocation2 + $0x18] sm:$0xff]  ;;  %2811 = vst [vmem:[#allocation2 + $0x24] sm:$0xf] %v2810_v27  ;;  %v3144_v22 = vld [vmem:[#allocation2 + $0x20] sm:$0x1]  ;;  %3577 = vmatmul.bf16.gmra.mxu1 %v6334_v0  ;;  %v3250_v28 = vshll.u32 %v6334_v0, 16  ;;  %v2192_v9 = vpop.f32.mrf.mxu2  ;;  %v2251_v57 = vpop.f32.mrf.mxu3 }
 0x244   : > { %v2646_v46 = vshrl.u32 %v2571_v6, 16  ;;  %v2386_v44 = vadd.f32 %v7524_v35, %v2362_v54  ;;  %4436 = vmatmul.bf16.vlgmr.msrb.gmra.mxu0 %v6365_v23  ;;  %v3220_v36 = vunpack.c.l.b16 %v3144_v22  ;;  %v2649_v52 = vshll.u32 %v2571_v6, 16 }
 0x245   : > { %v2302_v17 = vpop.f32.mrf.mxu0  ;;  %v3248_v49 = vshrl.u32 %v6334_v0, 16  ;;  %v3252_v61 = vrot.slane %v3250_v28, 1  ;;  %v3342_v27 = vrot.slane %v6334_v0, 1  ;;  %v6322_v28 = vld [vmem:[#allocation3 + $0x68] sm:$0xff]  ;;  %vm2434_vm15 = vcmp.ge.s32.totalorder %v2424_v47, 0 }
 0x246   : > { %v2648_v16 = vrot.slane %v2646_v46, 7  ;;  %v2406_v33 = vmax.f32 %v2386_v44, 0.0  ;;  %v2303_v25 = vadd.f32 %v2302_v17, %v2244_v31  ;;  %v3228_v21 = vpack.c.b16 %v3220_v36, %v3220_v36  ;;  %v2520_v46 = vld [vmem:[#allocation2 + $0x48] sm:$0x1]  ;;  %v7704_v36 = vpop.f32.mrf.mxu1  ;;  %3906 = vmatpush.bf16.msrb.mxu2 %v6322_v28 }
 0x247   : > { %v3253_v54 = vor.u32 %v3252_v61, %v3248_v49  ;;  %v2521_v0 = vsel %vm7471_vm4, 0, %v2520_v46  ;;  %vm2444_vm3 = vcmp.lt.s32.totalorder %v2424_v47, 16  ;;  %v2816_v49 = vld [vmem:[#allocation2 + $0x30] sm:$0xf] }
 0x248   : > { %v2651_v24 = vor.u32 %v2649_v52, %v2648_v16  ;;  %v2653_v55 = vrot.slane %v2648_v16, 4  ;;  %v2487_v13 = vmul.f32 %v5745_v18, %v2406_v33  ;;  %v2339_v1 = vadd.f32 %v2303_v25, %v1639_v15  ;;  %2522 = vst [vmem:[#allocation2 + $0x48] sm:$0x1] %v2521_v0  ;;  %vm2454_vm5 = vmand %vm2434_vm15, %vm2444_vm3 }
 0x249   : > { %v3343_v6 = vrot.slane %v3228_v21, 1  ;;  %v3255_v23 = vshll.u32 %v3228_v21, 16 }
 0x24a   : > { %v2652_v63 = vsel %vm7578_vm2, %v2644_v26, %v2651_v24  ;;  %v2814_v31 = vsel %vm7471_vm4, %v2653_v55, %v2813_v62  ;;  %v2572_v12 = vpack.c.bf16 %v2487_v13, %v2487_v13  ;;  %v2363_v22 = vmul.f32 %v7517_v42, %v2339_v1 }
 0x24b   : > { %2812 = vst [vmem:[#allocation2 + $0x28] sm:$0xf] %v2652_v63  ;;  %v3344_v44 = vsel %vm592_vm1, %v3342_v27, %v3343_v6  ;;  %v3257_v15 = vrot.slane %v3255_v23, 1  ;;  %v2552_v27 = vld [vmem:[#allocation2 + $0x50] sm:$0x1]  ;;  %v1644_v6 = vadd.f32 %v7678_v56, %v7382_v37  ;;  %v6330_v23 = vld [vmem:[#allocation3 + $0xa8] sm:$0xff]  ;;  %v7721_v46 = vpop.f32.mrf.mxu2  ;;  %v2252_v56 = vadd.f32 %v2251_v57, %v2192_v9 }
 0x24c   : > { %2815 = vst [vmem:[#allocation2 + $0x2c] sm:$0x1] %v2814_v31  ;;  %v2655_v52 = vshrl.u32 %v2572_v12, 16  ;;  %v2387_v17 = vadd.f32 %v7524_v35, %v2363_v22  ;;  %3675 = vmatmul.bf16.gmra.mxu3 %v3344_v44  ;;  %v2658_v21 = vshll.u32 %v2572_v12, 16  ;;  %v7719_v12 = vsel %vm2454_vm5, 1.0, %v8540_v58  ;;  %v7723_v44 = vpop.f32.mrf.mxu3 }
 0x24d   : > { %v3258_v16 = vsel %vm461_vm0, %v3253_v54, %v3257_v15  ;;  %v2305_v33 = vpop.f32.mrf.mxu0  ;;  %3955 = vmatpush.bf16.msrb.mxu3 %v6330_v23 }
 0x24e   : > { %v2657_v25 = vrot.slane %v2655_v52, 7  ;;  %v2407_v26 = vmax.f32 %v2387_v17, 0.0  ;;  %3626 = vmatmul.bf16.gmra.mxu2 %v3258_v16  ;;  %v2306_v62 = vadd.f32 %v2305_v33, %v2247_v4  ;;  %v2249_v4 = vadd.f32 %v7671_v32, %v7669_v11  ;;  %v1648_v0 = vpop.f32.mrf.mxu1  ;;  %v2820_v33 = vld [vmem:[#allocation2 + $0x38] sm:$0x1] }
 0x24f   : > { %v2553_v32 = vsel %vm7483_vm6, 0, %v2552_v27 }
 0x250   : > { %v2660_v61 = vor.u32 %v2658_v21, %v2657_v25  ;;  %v2488_v24 = vmul.f32 %v5745_v18, %v2407_v26  ;;  %v2340_v55 = vadd.f32 %v2306_v62, %v1642_v19  ;;  %v6314_v18 = vld [vmem:[#allocation3 + $0x28] sm:$0xff]  ;;  %2554 = vst [vmem:[#allocation2 + $0x50] sm:$0x1] %v2553_v32  ;;  %v2661_v16 = vrot.slane %v2657_v25, 4 }
 0x251   : > { %3857 = vmatpush.bf16.msrb.mxu1 %v6314_v18  ;;  %v2425_v62 = vadd.s32 6, %v7509_v50 }
 0x252   : > { %v2817_v53 = vsel %vm7559_vm11, %v2660_v61, %v2816_v49  ;;  %v2573_v39 = vpack.c.bf16 %v2488_v24, %v2488_v24  ;;  %v2364_v13 = vmul.f32 %v7517_v42, %v2340_v55  ;;  %v6335_v1 = vld [vmem:[#allocation2 + $0x24] sm:$0xff] }
 0x253   : > { %v6366_v47 = vld [vmem:[#allocation2 + $0x24] sm:$0xff]  ;;  %2818 = vst [vmem:[#allocation2 + $0x30] sm:$0xf] %v2817_v53  ;;  %v3147_v54 = vld [vmem:[#allocation2 + $0x2c] sm:$0x1]  ;;  %3582 = vmatmul.bf16.gmra.mxu1 %v6335_v1  ;;  %v3262_v11 = vshll.u32 %v6335_v1, 16 }
 0x254   : > { %v2663_v63 = vshrl.u32 %v2573_v39, 16  ;;  %v2388_v31 = vadd.f32 %v7524_v35, %v2364_v13  ;;  %4441 = vmatmul.bf16.gmra.mxu0 %v6366_v47  ;;  %v3221_v22 = vunpack.c.l.b16 %v3147_v54  ;;  %v2666_v37 = vshll.u32 %v2573_v39, 16 }
 0x255   : > { %v2307_v15 = vpop.f32.mrf.mxu0  ;;  %v3260_v21 = vshrl.u32 %v6335_v1, 16  ;;  %v3264_v26 = vrot.slane %v3262_v11, 1  ;;  %v3345_v24 = vrot.slane %v6335_v1, 1  ;;  %vm2435_vm7 = vcmp.ge.s32.totalorder %v2425_v62, 0 }
 0x256   : > { %v2665_v52 = vrot.slane %v2663_v63, 7  ;;  %v2408_v17 = vmax.f32 %v2388_v31, 0.0  ;;  %v2308_v28 = vadd.f32 %v2307_v15, %v2249_v4  ;;  %v3229_v19 = vpack.c.b16 %v3221_v22, %v3221_v22  ;;  %v2523_v4 = vld [vmem:[#allocation2 + $0x54] sm:$0x1]  ;;  %v6321_v63 = vld [vmem:[#allocation3 + $0x60] sm:$0xff] }
 0x257   : > { %v3265_v53 = vor.u32 %v3264_v26, %v3260_v21  ;;  %v2524_v1 = vsel %vm7471_vm4, 0, %v2523_v4  ;;  %v1647_v31 = vadd.f32 %v7704_v36, %v7398_v34  ;;  %vm2445_vm8 = vcmp.lt.s32.totalorder %v2425_v62, 16  ;;  %3907 = vmatpush.bf16.msrb.mxu2 %v6321_v63 }
 0x258   : > { %v2668_v9 = vor.u32 %v2666_v37, %v2665_v52  ;;  %v2670_v57 = vrot.slane %v2665_v52, 4  ;;  %v2489_v49 = vmul.f32 %v7719_v12, %v2408_v17  ;;  %v2341_v61 = vadd.f32 %v2308_v28, %v1644_v6  ;;  %2525 = vst [vmem:[#allocation2 + $0x54] sm:$0x1] %v2524_v1  ;;  %v2197_v17 = vpop.f32.mrf.mxu2  ;;  %v2256_v28 = vpop.f32.mrf.mxu3  ;;  %vm2455_vm9 = vmand %vm2435_vm7, %vm2445_vm8 }
 0x259   : > { %v3346_v55 = vrot.slane %v3229_v19, 1  ;;  %v3267_v39 = vshll.u32 %v3229_v19, 16  ;;  %v2823_v19 = vld [vmem:[#allocation2 + $0x3c] sm:$0xf] }
 0x25a   : > { %v2669_v13 = vsel %vm7578_vm2, %v2661_v16, %v2668_v9  ;;  %v2821_v25 = vsel %vm7471_vm4, %v2670_v57, %v2820_v33  ;;  %v2574_v47 = vpack.c.bf16 %v2489_v49, %v2489_v49  ;;  %v2365_v27 = vmul.f32 %v7517_v42, %v2341_v61  ;;  %v7741_v16 = vpop.f32.mrf.mxu1  ;;  %v2555_v49 = vld [vmem:[#allocation2 + $0x5c] sm:$0x1] }
 0x25b   : > { %2819 = vst [vmem:[#allocation2 + $0x34] sm:$0xf] %v2669_v13  ;;  %v3347_v54 = vsel %vm592_vm1, %v3345_v24, %v3346_v55  ;;  %v3269_v18 = vrot.slane %v3267_v39, 1  ;;  %v1649_v61 = vadd.f32 %v1648_v0, %v7404_v45  ;;  %v2254_v24 = vadd.f32 %v7723_v44, %v7721_v46  ;;  %v6313_v55 = vld [vmem:[#allocation3 + $0x20] sm:$0xff] }
 0x25c   : > { %2822 = vst [vmem:[#allocation2 + $0x38] sm:$0x1] %v2821_v25  ;;  %v2672_v6 = vshrl.u32 %v2574_v47, 16  ;;  %v2389_v23 = vadd.f32 %v7524_v35, %v2365_v27  ;;  %3680 = vmatmul.bf16.gmra.mxu3 %v3347_v54  ;;  %v2675_v11 = vshll.u32 %v2574_v47, 16  ;;  %v7754_v13 = vsel %vm2455_vm9, 1.0, %v8540_v58  ;;  %3858 = vmatpush.bf16.msrb.mxu1 %v6313_v55 }
 0x25d   : > { %v3270_v22 = vsel %vm461_vm0, %v3265_v53, %v3269_v18  ;;  %v2310_v37 = vpop.f32.mrf.mxu0  ;;  %v6329_v53 = vld [vmem:[#allocation3 + $0xa0] sm:$0xff]  ;;  %v2257_v27 = vadd.f32 %v2256_v28, %v2197_v17  ;;  %v2556_v46 = vsel %vm7483_vm6, 0, %v2555_v49 }
 0x25e   : > { %v2674_v15 = vrot.slane %v2672_v6, 7  ;;  %v2409_v32 = vmax.f32 %v2389_v23, 0.0  ;;  %3631 = vmatmul.bf16.gmra.mxu2 %v3270_v22  ;;  %v2311_v52 = vadd.f32 %v2310_v37, %v2252_v56  ;;  %3956 = vmatpush.bf16.msrb.mxu3 %v6329_v53  ;;  %2557 = vst [vmem:[#allocation2 + $0x5c] sm:$0x1] %v2556_v46  ;;  %v2827_v6 = vld [vmem:[#allocation2 + $0x44] sm:$0x1] }
 0x25f   : > { %v6320_v53 = vld [vmem:[#allocation3 + $0x58] sm:$0xff]  ;;  %v7777_v46 = vld [vmem:[#allocation3 + $0x1f0] sm:$0xff] }
 0x260   : > { %v2677_v33 = vor.u32 %v2675_v11, %v2674_v15  ;;  %v2490_v34 = vmul.f32 %v7719_v12, %v2409_v32  ;;  %v2342_v36 = vadd.f32 %v2311_v52, %v1647_v31  ;;  %v2678_v1 = vrot.slane %v2674_v15, 4  ;;  %v2199_v52 = vpop.f32.mrf.mxu2  ;;  %v2258_v17 = vpop.f32.mrf.mxu3  ;;  %3908 = vmatpush.bf16.msrb.mxu2 %v6320_v53 }
 0x261   : > { %v2426_v31 = vadd.s32 7, %v7509_v50 }
 0x262   : > { %v2824_v21 = vsel %vm7559_vm11, %v2677_v33, %v2823_v19  ;;  %v2575_v26 = vpack.c.bf16 %v2490_v34, %v2490_v34  ;;  %v2366_v9 = vmul.f32 %v7517_v42, %v2342_v36  ;;  %v6336_v56 = vld [vmem:[#allocation2 + $0x30] sm:$0xff]  ;;  %v1653_v36 = vpop.f32.mrf.mxu1 }
 0x263   : > { %v6367_v57 = vld [vmem:[#allocation2 + $0x30] sm:$0xff]  ;;  %2825 = vst [vmem:[#allocation2 + $0x3c] sm:$0xf] %v2824_v21  ;;  %v3150_v12 = vld [vmem:[#allocation2 + $0x38] sm:$0x1]  ;;  %3587 = vmatmul.bf16.gmra.mxu1 %v6336_v56  ;;  %v3274_v45 = vshll.u32 %v6336_v56, 16 }
 0x264   : > { %v2680_v62 = vshrl.u32 %v2575_v26, 16  ;;  %v2390_v39 = vadd.f32 %v7524_v35, %v2366_v9  ;;  %4446 = vmatmul.bf16.gmra.mxu0 %v6367_v57  ;;  %v3222_v25 = vunpack.c.l.b16 %v3150_v12  ;;  %v2683_v47 = vshll.u32 %v2575_v26, 16  ;;  %v2526_v57 = vld [vmem:[#allocation2 + $0x60] sm:$0x1] }
 0x265   : > { %v2312_v4 = vpop.f32.mrf.mxu0  ;;  %v3272_v23 = vshrl.u32 %v6336_v56, 16  ;;  %v3276_v63 = vrot.slane %v3274_v45, 1  ;;  %v3348_v28 = vrot.slane %v6336_v56, 1  ;;  %v2527_v56 = vsel %vm7471_vm4, 0, %v2526_v57 }
 0x266   : > { %v2682_v44 = vrot.slane %v2680_v62, 7  ;;  %v2410_v0 = vmax.f32 %v2390_v39, 0.0  ;;  %v2313_v54 = vadd.f32 %v2312_v4, %v2254_v24  ;;  %v3230_v18 = vpack.c.b16 %v3222_v25, %v3222_v25  ;;  %v7768_v24 = vld [vmem:[#allocation3 + $0x1f8] sm:$0xff]  ;;  %2528 = vst [vmem:[#allocation2 + $0x60] sm:$0x1] %v2527_v56 }
 0x267   : > { %v3277_v33 = vor.u32 %v3276_v63, %v3272_v23  ;;  %v1652_v62 = vadd.f32 %v7741_v16, %v7426_v14  ;;  %vm2436_vm10 = vcmp.ge.s32.totalorder %v2426_v31, 0  ;;  %vm2446_vm12 = vcmp.lt.s32.totalorder %v2426_v31, 16  ;;  %4477 = vmatpush.bf16.msra.mxu0 %v7768_v24  ;;  %v2558_v63 = vld [vmem:[#allocation2 + $0x68] sm:$0x1] }
 0x268   : > { %v2685_v22 = vor.u32 %v2683_v47, %v2682_v44  ;;  %v2687_v37 = vrot.slane %v2682_v44, 4  ;;  %v2491_v11 = vmul.f32 %v7754_v13, %v2410_v0  ;;  %v2343_v32 = vadd.f32 %v2313_v54, %v1649_v61  ;;  %vm7785_vm13 = vmand %vm2436_vm10, %vm2446_vm12 }
 0x269   : > { %v3349_v19 = vrot.slane %v3230_v18, 1  ;;  %v3279_v34 = vshll.u32 %v3230_v18, 16  ;;  %v1279_v0 = vadd.f32 %v7217_v30, %v7215_v29  ;;  %v2202_v29 = vpop.f32.mrf.mxu2  ;;  %v2261_v30 = vpop.f32.mrf.mxu3 }
 0x26a   : > { %v2686_v15 = vsel %vm7578_vm2, %v2678_v1, %v2685_v22  ;;  %v2828_v21 = vsel %vm7471_vm4, %v2687_v37, %v2827_v6  ;;  %v2576_v26 = vpack.c.bf16 %v2491_v11, %v2491_v11  ;;  %v2367_v9 = vmul.f32 %v7517_v42, %v2343_v32  ;;  %v6312_v32 = vld [vmem:[#allocation3 + $0x18] sm:$0xff] }
 0x26b   : > { %2826 = vst [vmem:[#allocation2 + $0x40] sm:$0xf] %v2686_v15  ;;  %v3350_v49 = vsel %vm592_vm1, %v3348_v28, %v3349_v19  ;;  %v3281_v61 = vrot.slane %v3279_v34, 1  ;;  %4478 = vmatpush.bf16.msra.mxu0 %v7777_v46  ;;  %v1338_v31 = vadd.f32 %v7234_v2, %v1279_v0  ;;  %v1654_v22 = vadd.f32 %v1653_v36, %v7436_v60  ;;  %v6328_v28 = vld [vmem:[#allocation3 + $0x98] sm:$0xff]  ;;  %v1656_v19 = vpop.f32.mrf.mxu1  ;;  %v7803_v34 = vld [vmem:[%s8514_s3] ss:$0 sm:$0xff] }
 0x26c   : > { %2829 = vst [vmem:[#allocation2 + $0x44] sm:$0x1] %v2828_v21  ;;  %v2689_v12 = vshrl.u32 %v2576_v26, 16  ;;  %v2391_v55 = vadd.f32 %v7524_v35, %v2367_v9  ;;  %3685 = vmatmul.bf16.gmra.mxu3 %v3350_v49  ;;  %v2692_v47 = vshll.u32 %v2576_v26, 16  ;;  %v2830_v35 = vld [vmem:[#allocation2 + $0x48] sm:$0xf]  ;;  %v2259_v37 = vadd.f32 %v2258_v17, %v2199_v52  ;;  %3859 = vmatpush.bf16.msrb.mxu1 %v6312_v32 }
 0x26d   : > { %v3282_v42 = vsel %vm461_vm0, %v3277_v33, %v3281_v61  ;;  %v2315_v39 = vpop.f32.mrf.mxu0  ;;  %v7809_v2 = vsel %vm7785_vm13, 1.0, %v8540_v58  ;;  %v7811_v52 = vld [vmem:[#allocation3 + $0x1e8] sm:$0xff]  ;;  %v2262_v36 = vadd.f32 %v2261_v30, %v2202_v29  ;;  %3957 = vmatpush.bf16.msrb.mxu3 %v6328_v28  ;;  %v2559_v9 = vsel %vm7483_vm6, 0, %v2558_v63  ;;  %v2834_v49 = vld [vmem:[#allocation2 + $0x50] sm:$0x1]  ;;  %v6319_v28 = vld [vmem:[#allocation3 + $0x50] sm:$0xff] }
 0x26e   : > { %v7775_v25 = vrot.slane %v2689_v12, 7  ;;  %v2411_v4 = vmax.f32 %v2391_v55, 0.0  ;;  %3636 = vmatmul.bf16.gmra.mxu2 %v3282_v42  ;;  %v2316_v45 = vadd.f32 %v2315_v39, %v2257_v27  ;;  %2560 = vst [vmem:[#allocation2 + $0x68] sm:$0x1] %v2559_v9  ;;  %v2427_v42 = vadd.s32 8, %v7509_v50  ;;  %v7818_v39 = vld [vmem:[#allocation3 + $0x1e0] sm:$0xff] }
 0x26f   : > { %4479 = vmatpush.bf16.msra.mxu0 %v7811_v52  ;;  %v1541_v63 = vadd.f32 %v7236_v3, %v1338_v31  ;;  %3909 = vmatpush.bf16.msrb.mxu2 %v6319_v28 }
 0x270   : > { %v2694_v14 = vor.u32 %v2692_v47, %v7775_v25  ;;  %v2492_v16 = vmul.f32 %v7754_v13, %v2411_v4  ;;  %v2344_v44 = vadd.f32 %v2316_v45, %v1652_v62  ;;  %v7795_v13 = vld [vmem:[%s8513_s2] ss:$0 sm:$0xff]  ;;  %v2695_v55 = vrot.slane %v7775_v25, 4 }
 0x271   : > { %v2263_v32 = vpop.f32.mrf.mxu3  ;;  %vm2437_vm14 = vcmp.ge.s32.totalorder %v2427_v42, 0  ;;  %vm2447_vm15 = vcmp.lt.s32.totalorder %v2427_v42, 16  ;;  %v1600_v9 = vadd.f32 %v7460_v38, %v1541_v63 }
 0x272   : > { %v2831_v27 = vsel %vm7559_vm11, %v2694_v14, %v2830_v35  ;;  %v2577_v18 = vpack.c.bf16 %v2492_v16, %v2492_v16  ;;  %v2368_v1 = vmul.f32 %v7795_v13, %v2344_v44  ;;  %v6337_v6 = vld [vmem:[#allocation2 + $0x3c] sm:$0xff]  ;;  %vm7846_vm3 = vmand %vm2437_vm14, %vm2447_vm15 }
 0x273   : > { %v6368_v23 = vld [vmem:[#allocation2 + $0x3c] sm:$0xff]  ;;  %2832 = vst [vmem:[#allocation2 + $0x48] sm:$0xf] %v2831_v27  ;;  %v3153_v11 = vld [vmem:[#allocation2 + $0x44] sm:$0x1]  ;;  %3592 = vmatmul.bf16.gmra.mxu1 %v6337_v6  ;;  %v3286_v26 = vshll.u32 %v6337_v6, 16  ;;  %4480 = vmatpush.bf16.msra.mxu0 %v7818_v39 }
 0x274   : > { %v2697_v33 = vshrl.u32 %v2577_v18, 16  ;;  %v2392_v15 = vadd.f32 %v7803_v34, %v2368_v1  ;;  %4451 = vmatmul.bf16.gmra.mxu0 %v6368_v23  ;;  %v3223_v60 = vunpack.c.l.b16 %v3153_v11  ;;  %v2700_v17 = vshll.u32 %v2577_v18, 16  ;;  %v2529_v1 = vld [vmem:[#allocation2 + $0x6c] sm:$0x1]  ;;  %v7830_v23 = vld [vmem:[#allocation3 + $0x1d8] sm:$0xff]  ;;  %v2204_v11 = vpop.f32.mrf.mxu2 }
 0x275   : > { %v2317_v21 = vpop.f32.mrf.mxu0  ;;  %v3284_v53 = vshrl.u32 %v6337_v6, 16  ;;  %v3288_v62 = vrot.slane %v3286_v26, 1  ;;  %v3351_v14 = vrot.slane %v6337_v6, 1  ;;  %v2530_v6 = vsel %vm7471_vm4, 0, %v2529_v1 }
 0x276   : > { %v2699_v57 = vrot.slane %v2697_v33, 7  ;;  %v2412_v61 = vmax.f32 %v2392_v15, 0.0  ;;  %v2318_v56 = vadd.f32 %v2317_v21, %v2259_v37  ;;  %v3231_v12 = vpack.c.b16 %v3223_v60, %v3223_v60  ;;  %2531 = vst [vmem:[#allocation2 + $0x6c] sm:$0x1] %v2530_v6 }
 0x277   : > { %v3289_v44 = vor.u32 %v3288_v62, %v3284_v53  ;;  %v1657_v33 = vadd.f32 %v1656_v19, %v7446_v40  ;;  %4481 = vmatpush.bf16.msra.mxu0 %v7830_v23  ;;  %v7840_v40 = vld [vmem:[#allocation3 + $0x1d0] sm:$0xff]  ;;  %v2561_v62 = vld [vmem:[#allocation2 + $0x74] sm:$0x1] }
 0x278   : > { %v2702_v47 = vor.u32 %v2700_v17, %v2699_v57  ;;  %v2704_v4 = vrot.slane %v2699_v57, 4  ;;  %v2493_v45 = vmul.f32 %v7809_v2, %v2412_v61  ;;  %v2345_v35 = vadd.f32 %v2318_v56, %v1654_v22  ;;  %v1658_v17 = vpop.f32.mrf.mxu1  ;;  %v2837_v57 = vld [vmem:[#allocation2 + $0x54] sm:$0xf] }
 0x279   : > { %v3352_v16 = vrot.slane %v3231_v12, 1  ;;  %v3291_v0 = vshll.u32 %v3231_v12, 16  ;;  %v2562_v1 = vsel %vm7483_vm6, 0, %v2561_v62 }
 0x27a   : > { %v2703_v54 = vsel %vm7578_vm2, %v2695_v55, %v2702_v47  ;;  %v2835_v25 = vsel %vm7471_vm4, %v2704_v4, %v2834_v49  ;;  %v2578_v27 = vpack.c.bf16 %v2493_v45, %v2493_v45  ;;  %v2369_v18 = vmul.f32 %v7795_v13, %v2345_v35  ;;  %v6311_v4 = vld [vmem:[#allocation3 + $0x10] sm:$0xff]  ;;  %2563 = vst [vmem:[#allocation2 + $0x74] sm:$0x1] %v2562_v1 }
 0x27b   : > { %2833 = vst [vmem:[#allocation2 + $0x4c] sm:$0xf] %v2703_v54  ;;  %v3353_v29 = vsel %vm592_vm1, %v3351_v14, %v3352_v16  ;;  %v3293_v30 = vrot.slane %v3291_v0, 1  ;;  %4482 = vmatpush.bf16.msra.mxu0 %v7840_v40  ;;  %v1659_v47 = vadd.f32 %v1658_v17, %v1600_v9  ;;  %v6327_v45 = vld [vmem:[#allocation3 + $0x90] sm:$0xff]  ;;  %v2264_v14 = vadd.f32 %v2263_v32, %v2204_v11  ;;  %v2266_v54 = vpop.f32.mrf.mxu3 }
 0x27c   : > { %2836 = vst [vmem:[#allocation2 + $0x50] sm:$0x1] %v2835_v25  ;;  %v2706_v22 = vshrl.u32 %v2578_v27, 16  ;;  %v2393_v37 = vadd.f32 %v7803_v34, %v2369_v18  ;;  %3690 = vmatmul.bf16.gmra.mxu3 %v3353_v29  ;;  %v2709_v3 = vshll.u32 %v2578_v27, 16  ;;  %v2207_v0 = vpop.f32.mrf.mxu2  ;;  %v7857_v25 = vld [vmem:[#allocation3 + $0x1c8] sm:$0xff]  ;;  %3860 = vmatpush.bf16.msrb.mxu1 %v6311_v4 }
 0x27d   : > { %v3294_v15 = vsel %vm461_vm0, %v3289_v44, %v3293_v30  ;;  %v2320_v60 = vpop.f32.mrf.mxu0  ;;  %3958 = vmatpush.bf16.msrb.mxu3 %v6327_v45  ;;  %v2267_v11 = vadd.f32 %v2266_v54, %v2207_v0  ;;  %v6309_v0 = vld [vmem:[#allocation3] sm:$0xff] }
 0x27e   : > { %v7836_v21 = vrot.slane %v2706_v22, 7  ;;  %v2413_v31 = vmax.f32 %v2393_v37, 0.0  ;;  %3641 = vmatmul.bf16.gmra.mxu2 %v3294_v15  ;;  %v2321_v26 = vadd.f32 %v2320_v60, %v2262_v36  ;;  %v2841_v37 = vld [vmem:[#allocation2 + $0x5c] sm:$0x1] }
 0x27f   : > { %4483 = vmatpush.bf16.msra.mxu0 %v7857_v25 }
 0x280   : > { %v2711_v19 = vor.u32 %v2709_v3, %v7836_v21  ;;  %v2494_v49 = vmul.f32 %v7809_v2, %v2413_v31  ;;  %v2346_v61 = vadd.f32 %v2321_v26, %v1657_v33  ;;  %v1284_v2 = vadd.f32 %v7418_v7, %v7244_v41  ;;  %v7868_v33 = vld [vmem:[#allocation3 + $0x1c0] sm:$0xff]  ;;  %v1661_v15 = vpop.f32.mrf.mxu1  ;;  %v7871_v31 = vld [vmem:[#allocation3 + $0x238] sm:$0xff] }
 0x281   : > { %v7862_v41 = vsel %vm7846_vm3, 1.0, %v8540_v58  ;;  %v2712_v22 = vrot.slane %v7836_v21, 4  ;;  %v1662_v4 = vadd.f32 %v1661_v15, %v7480_v20 }
 0x282   : > { %v2838_v36 = vsel %vm7559_vm11, %v2711_v19, %v2837_v57  ;;  %v2579_v12 = vpack.c.bf16 %v2494_v49, %v2494_v49  ;;  %v2370_v38 = vmul.f32 %v7795_v13, %v2346_v61  ;;  %v6338_v55 = vld [vmem:[#allocation2 + $0x48] sm:$0xff] }
 0x283   : > { %v6369_v53 = vld [vmem:[#allocation2 + $0x48] sm:$0xff]  ;;  %2839 = vst [vmem:[#allocation2 + $0x54] sm:$0xf] %v2838_v36  ;;  %v3156_v42 = vld [vmem:[#allocation2 + $0x50] sm:$0x1]  ;;  %3597 = vmatmul.bf16.gmra.mxu1 %v6338_v55  ;;  %v3298_v18 = vshll.u32 %v6338_v55, 16  ;;  %4484 = vmatpush.bf16.msra.mxu0 %v7868_v33  ;;  %v1343_v36 = vadd.f32 %v7412_v5, %v1284_v2 }
 0x284   : > { %v2714_v35 = vshrl.u32 %v2579_v12, 16  ;;  %v2394_v16 = vadd.f32 %v7803_v34, %v2370_v38  ;;  %4456 = vmatmul.bf16.gmra.mxu0 %v6369_v53  ;;  %v3224_v44 = vunpack.c.l.b16 %v3156_v42  ;;  %v2717_v27 = vshll.u32 %v2579_v12, 16  ;;  %v6310_v42 = vld [vmem:[#allocation3 + $0x8] sm:$0xff]  ;;  %v2209_v20 = vpop.f32.mrf.mxu2 }
 0x285   : > { %v2322_v7 = vpop.f32.mrf.mxu0  ;;  %v3296_v32 = vshrl.u32 %v6338_v55, 16  ;;  %v3300_v28 = vrot.slane %v3298_v18, 1  ;;  %v3354_v26 = vrot.slane %v6338_v55, 1  ;;  %v2428_v55 = vadd.s32 9, %v7509_v50  ;;  %v6326_v2 = vld [vmem:[#allocation3 + $0x88] sm:$0xff]  ;;  %3861 = vmatpush.bf16.msrb.mxu1 %v6310_v42  ;;  %v6317_v18 = vld [vmem:[#allocation3 + $0x40] sm:$0xff] }
 0x286   : > { %v2716_v29 = vrot.slane %v2714_v35, 7  ;;  %v2414_v30 = vmax.f32 %v2394_v16, 0.0  ;;  %v2323_v6 = vadd.f32 %v2322_v7, %v2264_v14  ;;  %v3232_v63 = vpack.c.b16 %v3224_v44, %v3224_v44  ;;  %v7886_v35 = vld [vmem:[#allocation3 + $0x230] sm:$0xff]  ;;  %v2268_v7 = vpop.f32.mrf.mxu3  ;;  %3959 = vmatpush.bf16.msrb.mxu3 %v6326_v2 }
 0x287   : > { %v3301_v57 = vor.u32 %v3300_v28, %v3296_v32  ;;  %4526 = vmatpush.bf16.msrb.mxu0 %v7871_v31  ;;  %v1546_v54 = vadd.f32 %v7423_v8, %v1343_v36  ;;  %vm2438_vm6 = vcmp.ge.s32.totalorder %v2428_v55, 0  ;;  %vm2448_vm5 = vcmp.lt.s32.totalorder %v2428_v55, 16  ;;  %v2848_v55 = vld [vmem:[#allocation2 + $0x68] sm:$0x1] }
 0x288   : > { %v2719_v60 = vor.u32 %v2717_v27, %v2716_v29  ;;  %v2721_v17 = vrot.slane %v2716_v29, 4  ;;  %v2495_v10 = vmul.f32 %v7862_v41, %v2414_v30  ;;  %v2347_v3 = vadd.f32 %v2323_v6, %v1659_v47  ;;  %v6318_v47 = vld [vmem:[#allocation3 + $0x48] sm:$0xff]  ;;  %v1663_v8 = vpop.f32.mrf.mxu1  ;;  %vm7900_vm7 = vmand %vm2438_vm6, %vm2448_vm5 }
 0x289   : > { %v3355_v9 = vrot.slane %v3232_v63, 1  ;;  %v3303_v19 = vshll.u32 %v3232_v63, 16  ;;  %v2844_v27 = vld [vmem:[#allocation2 + $0x60] sm:$0xf]  ;;  %3910 = vmatpush.bf16.msrb.mxu2 %v6318_v47  ;;  %v1605_v6 = vadd.f32 %v7495_v51, %v1546_v54  ;;  %3862 = vmatpush.bf16.msrb.mxu1 %v6309_v0 }
 0x28a   : > { %v2720_v21 = vsel %vm7578_vm2, %v2712_v22, %v2719_v60  ;;  %v2842_v49 = vsel %vm7471_vm4, %v2721_v17, %v2841_v37  ;;  %v2580_v61 = vpack.c.bf16 %v2495_v10, %v2495_v10  ;;  %v2371_v56 = vmul.f32 %v7795_v13, %v2347_v3  ;;  %v6394_v63 = vld [vmem:[#allocation3 + $0x228] sm:$0xff]  ;;  %v6325_v22 = vld [vmem:[#allocation3 + $0x80] sm:$0xff] }
 0x28b   : > { %2840 = vst [vmem:[#allocation2 + $0x58] sm:$0xf] %v2720_v21  ;;  %v3356_v12 = vsel %vm592_vm1, %v3354_v26, %v3355_v9  ;;  %v3305_v38 = vrot.slane %v3303_v19, 1  ;;  %4527 = vmatpush.bf16.msrb.mxu0 %v7886_v35  ;;  %3960 = vmatpush.bf16.msrb.mxu3 %v6325_v22  ;;  %v1664_v26 = vadd.f32 %v1663_v8, %v1605_v6  ;;  %v6390_v6 = vld [vmem:[#allocation3 + $0x208] sm:$0xff] }
 0x28c   : > { %2843 = vst [vmem:[#allocation2 + $0x5c] sm:$0x1] %v2842_v49  ;;  %v2723_v53 = vshrl.u32 %v2580_v61, 16  ;;  %v2395_v62 = vadd.f32 %v7803_v34, %v2371_v56  ;;  %3695 = vmatmul.bf16.gmra.mxu3 %v3356_v12  ;;  %v2726_v50 = vshll.u32 %v2580_v61, 16  ;;  %v6393_v49 = vld [vmem:[#allocation3 + $0x220] sm:$0xff] }
 0x28d   : > { %v3306_v45 = vsel %vm461_vm0, %v3301_v57, %v3305_v38  ;;  %v2325_v5 = vpop.f32.mrf.mxu0  ;;  %3911 = vmatpush.bf16.msrb.mxu2 %v6317_v18  ;;  %v5750_v57 = vsel %vm7900_vm7, 1.0, %v8540_v58  ;;  %6406 = vmatpush.bf16.msra.mxu1 %v7768_v24 }
 0x28e   : > { %v7888_v14 = vrot.slane %v2723_v53, 7  ;;  %v2415_v16 = vmax.f32 %v2395_v62, 0.0  ;;  %3646 = vmatmul.bf16.gmra.mxu2 %v3306_v45  ;;  %v2326_v44 = vadd.f32 %v2325_v5, %v2267_v11 }
 0x28f   : > { %4528 = vmatpush.bf16.msrb.mxu0 %v6394_v63 }
 0x290   : > { %v2728_v1 = vor.u32 %v2726_v50, %v7888_v14  ;;  %v2496_v29 = vmul.f32 %v7862_v41, %v2415_v16  ;;  %v2348_v30 = vadd.f32 %v2326_v44, %v1662_v4  ;;  %v2269_v41 = vadd.f32 %v2268_v7, %v2209_v20  ;;  %v6391_v7 = vld [vmem:[#allocation3 + $0x210] sm:$0xff] }
 0x291   : > { %6414 = vmatpush.bf16.msra.mxu2 %v7871_v31  ;;  %v2729_v38 = vrot.slane %v7888_v14, 4  ;;  %v6392_v31 = vld [vmem:[#allocation3 + $0x218] sm:$0xff]  ;;  %6407 = vmatpush.bf16.msra.mxu1 %v7777_v46  ;;  %v2851_v46 = vld [vmem:[#allocation2 + $0x6c] sm:$0xf] }
 0x292   : > { %v2845_v37 = vsel %vm7559_vm11, %v2728_v1, %v2844_v27  ;;  %v2581_v11 = vpack.c.bf16 %v2496_v29, %v2496_v29  ;;  %v2372_v32 = vmul.f32 %v7795_v13, %v2348_v30  ;;  %v6339_v15 = vld [vmem:[#allocation2 + $0x54] sm:$0xff] }
 0x293   : > { %v6370_v60 = vld [vmem:[#allocation2 + $0x54] sm:$0xff]  ;;  %2846 = vst [vmem:[#allocation2 + $0x60] sm:$0xf] %v2845_v37  ;;  %v3159_v51 = vld [vmem:[#allocation2 + $0x5c] sm:$0x1]  ;;  %3602 = vmatmul.bf16.gmra.mxu1 %v6339_v15  ;;  %v3310_v21 = vshll.u32 %v6339_v15, 16  ;;  %4529 = vmatpush.bf16.msrb.mxu0 %v6393_v49 }
 0x294   : > { %v2731_v17 = vshrl.u32 %v2581_v11, 16  ;;  %v2396_v10 = vadd.f32 %v7803_v34, %v2372_v32  ;;  %4461 = vmatmul.bf16.gmra.mxu0 %v6370_v60  ;;  %v3225_v3 = vunpack.c.l.b16 %v3159_v51  ;;  %v2734_v9 = vshll.u32 %v2581_v11, 16 }
 0x295   : > { %v2327_v19 = vpop.f32.mrf.mxu0  ;;  %v3308_v53 = vshrl.u32 %v6339_v15, 16  ;;  %v3312_v62 = vrot.slane %v3310_v21, 1  ;;  %v3357_v45 = vrot.slane %v6339_v15, 1  ;;  %6415 = vmatpush.bf16.msra.mxu2 %v7886_v35  ;;  %6408 = vmatpush.bf16.msra.mxu1 %v7811_v52  ;;  %v7928_v52 = vld [vmem:[%s8518_s7 + $0x38] sm:$0xff]  ;;  %v2855_v15 = vld [vmem:[#allocation2 + $0x74] sm:$0x1] }
 0x296   : > { %v2733_v61 = vrot.slane %v2731_v17, 7  ;;  %v2416_v56 = vmax.f32 %v2396_v10, 0.0  ;;  %v2328_v36 = vadd.f32 %v2327_v19, %v2269_v41  ;;  %v3233_v12 = vpack.c.b16 %v3225_v3, %v3225_v3  ;;  %6422 = vmatpush.bf16.msra.mxu3 %v7928_v52  ;;  %v6389_v3 = vld [vmem:[#allocation3 + $0x200] sm:$0xff] }
 0x297   : > { %v3313_v2 = vor.u32 %v3312_v62, %v3308_v53  ;;  %4530 = vmatpush.bf16.msrb.mxu0 %v6392_v31 }
 0x298   : > { %v2736_v47 = vor.u32 %v2734_v9, %v2733_v61  ;;  %v2738_v42 = vrot.slane %v2733_v61, 4  ;;  %v2497_v58 = vmul.f32 %v5750_v57, %v2416_v56  ;;  %v2349_v4 = vadd.f32 %v2328_v36, %v1664_v26  ;;  %v2860_v36 = vld [vmem:[#allocation2 + $0x8] sm:$0x1] }
 0x299   : > { %v3358_v5 = vrot.slane %v3233_v12, 1  ;;  %v3315_v50 = vshll.u32 %v3233_v12, 16  ;;  %6416 = vmatpush.bf16.msra.mxu2 %v6394_v63  ;;  %6409 = vmatpush.bf16.msra.mxu1 %v7818_v39  ;;  %v2938_v48 = vunpack.c.l.b16 %v2860_v36 }
 0x29a   : > { %v2737_v24 = vsel %vm7578_vm2, %v2729_v38, %v2736_v47  ;;  %v2849_v14 = vsel %vm7471_vm4, %v2738_v42, %v2848_v55  ;;  %v2582_v16 = vpack.c.bf16 %v2497_v58, %v2497_v58  ;;  %v2373_v44 = vmul.f32 %v7795_v13, %v2349_v4  ;;  %v6301_v38 = vld [vmem:[#allocation2] sm:$0xff]  ;;  %6423 = vmatpush.bf16.msra.mxu3 %v7942_v43 }
 0x29b   : > { %2847 = vst [vmem:[#allocation2 + $0x64] sm:$0xf] %v2737_v24  ;;  %v3359_v0 = vsel %vm592_vm1, %v3357_v45, %v3358_v5  ;;  %v3317_v54 = vrot.slane %v3315_v50, 1  ;;  %4531 = vmatpush.bf16.msrb.mxu0 %v6391_v7  ;;  %v4005_v55 = vld [vmem:[#allocation2 + $0x20] sm:$0x1]  ;;  %v2946_v62 = vpack.c.b16 %v2938_v48, %v2938_v48  ;;  %v2957_v47 = vshll.u32 %v6301_v38, 16 }
 0x29c   : > { %2850 = vst [vmem:[#allocation2 + $0x68] sm:$0x1] %v2849_v14  ;;  %v2740_v27 = vshrl.u32 %v2582_v16, 16  ;;  %v2397_v20 = vadd.f32 %v7803_v34, %v2373_v44  ;;  %3700 = vmatmul.bf16.gmra.mxu3 %v3359_v0  ;;  %v2743_v1 = vshll.u32 %v2582_v16, 16  ;;  %v4083_v58 = vunpack.c.l.b16 %v4005_v55  ;;  %v6303_v55 = vld [vmem:[#allocation2 + $0x18] sm:$0xff] }
 0x29d   : > { %v3318_v35 = vsel %vm461_vm0, %v3313_v2, %v3317_v54  ;;  %6417 = vmatpush.bf16.msra.mxu2 %v6393_v49  ;;  %6410 = vmatpush.bf16.msra.mxu1 %v7830_v23  ;;  %v2959_v4 = vrot.slane %v2957_v47, 1  ;;  %v2962_v45 = vshll.u32 %v2946_v62, 16  ;;  %v3059_v5 = vrot.slane %v2946_v62, 1  ;;  %v2863_v54 = vld [vmem:[#allocation2 + $0x14] sm:$0x1] }
 0x29e   : > { %v2742_v18 = vrot.slane %v2740_v27, 7  ;;  %v2417_v29 = vmax.f32 %v2397_v20, 0.0  ;;  %3651 = vmatmul.bf16.gmra.mxu2 %v3318_v35  ;;  %v2955_v2 = vshrl.u32 %v6301_v38, 16  ;;  %v7959_v50 = vpack.c.b16 %v4083_v58, %v4083_v58  ;;  %v6137_v58 = vld [vmem:[%s6847_s13 + $0x20] sm:$0x1] }
 0x29f   : > { %4532 = vmatpush.bf16.msrb.mxu0 %v6390_v6  ;;  %v3058_v16 = vrot.slane %v6301_v38, 1  ;;  %v2964_v0 = vrot.slane %v2962_v45, 1 }
 0x2a0   : > { %v2745_v13 = vor.u32 %v2743_v1, %v2742_v18  ;;  %v2498_v30 = vmul.f32 %v5750_v57, %v2417_v29  ;;  %v2746_v39 = vrot.slane %v2742_v18, 4  ;;  %v2960_v44 = vor.u32 %v2959_v4, %v2955_v2  ;;  %v7975_v1 = vld [vmem:[%s8518_s7 + $0x10] sm:$0xff] }
 0x2a1   : > { %6418 = vmatpush.bf16.msra.mxu2 %v6392_v31  ;;  %6411 = vmatpush.bf16.msra.mxu1 %v7840_v40  ;;  %v7949_v40 = vld [vmem:[%s8518_s7 + $0x28] sm:$0xff]  ;;  %v7961_v31 = vld [vmem:[#allocation2 + $0x18] sm:$0xff]  ;;  %v3060_v27 = vsel %vm592_vm1, %v3058_v16, %v3059_v5  ;;  %v4107_v35 = vshll.u32 %v7959_v50, 16  ;;  %v2939_v18 = vunpack.c.l.b16 %v2863_v54  ;;  %v4204_v45 = vrot.slane %v7959_v50, 1 }
 0x2a2   : > { %v2852_v34 = vsel %vm7559_vm11, %v2745_v13, %v2851_v46  ;;  %v2583_v22 = vpack.c.bf16 %v2498_v30, %v2498_v30  ;;  %v6340_v8 = vld [vmem:[#allocation2 + $0x60] sm:$0xff]  ;;  %6424 = vmatpush.bf16.msra.mxu3 %v7949_v40  ;;  %v4102_v24 = vshll.u32 %v7961_v31, 16  ;;  %v2965_v29 = vsel %vm461_vm0, %v2960_v44, %v2964_v0 }
 0x2a3   : > { %v6371_v37 = vld [vmem:[#allocation2 + $0x60] sm:$0xff]  ;;  %2853 = vst [vmem:[#allocation2 + $0x6c] sm:$0xf] %v2852_v34  ;;  %v3162_v63 = vld [vmem:[#allocation2 + $0x68] sm:$0x1]  ;;  %3607 = vmatmul.bf16.gmra.mxu1 %v6340_v8  ;;  %v3322_v28 = vshll.u32 %v6340_v8, 16  ;;  %4533 = vmatpush.bf16.msrb.mxu0 %v6389_v3  ;;  %v2947_v34 = vpack.c.b16 %v2939_v18, %v2939_v18 }
 0x2a4   : > { %v2748_v11 = vshrl.u32 %v2583_v22, 16  ;;  %4466 = vmatmul.bf16.gmra.mxu0 %v6371_v37  ;;  %v3226_v32 = vunpack.c.l.b16 %v3162_v63  ;;  %v2751_v41 = vshll.u32 %v2583_v22, 16  ;;  %v3360_v51 = vrot.slane %v6340_v8, 1 }
 0x2a5   : > { %v3320_v17 = vshrl.u32 %v6340_v8, 16  ;;  %v3324_v10 = vrot.slane %v3322_v28, 1  ;;  %6419 = vmatpush.bf16.msra.mxu2 %v6391_v7  ;;  %6412 = vmatpush.bf16.msra.mxu1 %v7857_v25  ;;  %v7956_v25 = vld [vmem:[%s8518_s7 + $0x20] sm:$0xff]  ;;  %v4104_v20 = vrot.slane %v4102_v24, 1  ;;  %v6302_v7 = vld [vmem:[#allocation2 + $0xc] sm:$0xff]  ;;  %v4100_v46 = vshrl.u32 %v7961_v31, 16 }
 0x2a6   : > { %v2750_v59 = vrot.slane %v2748_v11, 7  ;;  %v3234_v60 = vpack.c.b16 %v3226_v32, %v3226_v32  ;;  %6425 = vmatpush.bf16.msra.mxu3 %v7956_v25  ;;  %v2969_v22 = vshll.u32 %v6302_v7, 16  ;;  %v7983_v8 = vld [vmem:[%s8518_s7 + $0x8] sm:$0xff]  ;;  %v4203_v5 = vrot.slane %v7961_v31, 1 }
 0x2a7   : > { %v3325_v21 = vor.u32 %v3324_v10, %v3320_v17  ;;  %v4105_v30 = vor.u32 %v4104_v20, %v4100_v46  ;;  %v3062_v17 = vrot.slane %v2947_v34, 1  ;;  %v6135_v10 = vld [vmem:[%s6847_s13 + $0x18] sm:$0xf]  ;;  %v2981_v2 = vshll.u32 %v6303_v55, 16 }
 0x2a8   : > { %v2753_v26 = vor.u32 %v2751_v41, %v2750_v59  ;;  %v2755_v9 = vrot.slane %v2750_v59, 4  ;;  %v3361_v57 = vrot.slane %v3234_v60, 1  ;;  %v3327_v19 = vshll.u32 %v3234_v60, 16 }
 0x2a9   : > { %6420 = vmatpush.bf16.msra.mxu2 %v6390_v6  ;;  %6413 = vmatpush.bf16.msra.mxu1 %v7868_v33  ;;  %v7967_v33 = vld [vmem:[%s8518_s7 + $0x18] sm:$0xff]  ;;  %v4109_v6 = vrot.slane %v4107_v35, 1  ;;  %v2971_v59 = vrot.slane %v2969_v22, 1  ;;  %v2974_v41 = vshll.u32 %v2947_v34, 16  ;;  %v4678_v0 = vshll.u32 %v6137_v58, 16 }
 0x2aa   : > { %v2754_v49 = vsel %vm7578_vm2, %v2746_v39, %v2753_v26  ;;  %v2856_v61 = vsel %vm7471_vm4, %v2755_v9, %v2855_v15  ;;  %v3362_v56 = vsel %vm592_vm1, %v3360_v51, %v3361_v57  ;;  %v3329_v23 = vrot.slane %v3327_v19, 1  ;;  %6426 = vmatpush.bf16.msra.mxu3 %v7967_v33  ;;  %v7992_v15 = vld [vmem:[%s8518_s7] sm:$0xff] }
 0x2ab   : > { %2854 = vst [vmem:[#allocation2 + $0x70] sm:$0xf] %v2754_v49  ;;  %v4110_v28 = vsel %vm461_vm0, %v4105_v30, %v4109_v6  ;;  %v2967_v39 = vshrl.u32 %v6302_v7, 16  ;;  %v3061_v26 = vrot.slane %v6302_v7, 1  ;;  %v2976_v57 = vrot.slane %v2974_v41, 1 }
 0x2ac   : > { %2857 = vst [vmem:[#allocation2 + $0x74] sm:$0x1] %v2856_v61  ;;  %3705 = vmatmul.bf16.gmra.mxu3 %v3362_v56  ;;  %v3330_v12 = vsel %vm461_vm0, %v3325_v21, %v3329_v23  ;;  %v2866_v49 = vld [vmem:[#allocation2 + $0x20] sm:$0x1]  ;;  %v4659_v61 = vshrl.u32 %v6135_v10, 16  ;;  %v4662_v56 = vshll.u32 %v6135_v10, 16  ;;  %v4205_v20 = vsel %vm592_vm1, %v4203_v5, %v4204_v45 }
 0x2ad   : > { %6421 = vmatpush.bf16.msra.mxu2 %v6389_v3  ;;  %v6136_v3 = vld [vmem:[%s6847_s13 + $0x1c] sm:$0xf]  ;;  %v2972_v9 = vor.u32 %v2971_v59, %v2967_v39  ;;  %vm4655_vm4 = vsmask.f32 3328  ;;  %vm4656_vm11 = vsmask.f32 7440 }
 0x2ae   : > { %3656 = vmatmul.bf16.gmra.mxu2 %v3330_v12  ;;  %6427 = vmatpush.bf16.msra.mxu3 %v7975_v1  ;;  %v4672_v23 = vshrl.u32 %v6136_v3, 16  ;;  %v4664_v62 = vrot.slane %v4662_v56, 5  ;;  %v2983_v50 = vrot.slane %v2981_v2, 1  ;;  %vm8022_vm2 = vmor %vm4655_vm4, %vm4656_vm11  ;;  %v3064_v30 = vrot.slane %v6303_v55, 1  ;;  %v2869_v59 = vld [vmem:[#allocation2 + $0x2c] sm:$0x1] }
 0x2af   : > { %v2977_v48 = vsel %vm461_vm0, %v2972_v9, %v2976_v57  ;;  %v6304_v10 = vld [vmem:[#allocation2 + $0x24] sm:$0xff]  ;;  %v2872_v45 = vld [vmem:[#allocation2 + $0x38] sm:$0x1]  ;;  %v6305_v5 = vld [vmem:[#allocation2 + $0x30] sm:$0xff] }
 0x2b0   : > { %v3573_v53 = vpop.f32.mrf.mxu1  ;;  %v2942_v2 = vunpack.c.l.b16 %v2872_v45  ;;  %v2878_v45 = vld [vmem:[#allocation2 + $0x50] sm:$0x1] }
 0x2b2   : > { %v6372_v42 = vld [vmem:[#allocation2 + $0x6c] sm:$0xff]  ;;  %6428 = vmatpush.bf16.msra.mxu3 %v7983_v8 }
 0x2b3   : > { %3863 = vmatmul.bf16.vlgmr.msrb.gmra.mxu1 %v6301_v38  ;;  %v3063_v38 = vsel %vm592_vm1, %v3061_v26, %v3062_v17 }
 0x2b4   : > { %4471 = vmatmul.bf16.gmra.mxu0 %v6372_v42  ;;  %v4674_v42 = vrot.slane %v4672_v23, 4 }
 0x2b6   : > { %6429 = vmatpush.bf16.msra.mxu3 %v7992_v15 }
 0x2b8   : > { %v3575_v14 = vpop.f32.mrf.mxu1 }
 0x2bc   : > { %3961 = vmatmul.bf16.vlgmr.msrb.gmra.mxu3 %v3060_v27 }
 0x2be   : > { %3912 = vmatmul.bf16.vlgmr.msrb.gmra.mxu2 %v2965_v29 }
 0x2bf   : > { %v3671_v13 = vpop.f32.mrf.mxu3 }
 0x2c0   : > { %v3578_v63 = vpop.f32.mrf.mxu1 }
 0x2c1   : > { %v3622_v37 = vpop.f32.mrf.mxu2  ;;  %v7985_v32 = vpop.f32.mrf.mxu0 }
 0x2c2   : > { %v3623_v11 = vadd.f32 %v3622_v37, %v3573_v53  ;;  %v2940_v53 = vunpack.c.l.b16 %v2866_v49  ;;  %v2993_v49 = vshll.u32 %v6304_v10, 16 }
 0x2c3   : > { %3868 = vmatmul.bf16.gmra.mxu1 %v6302_v7  ;;  %v4680_v7 = vrot.slane %v4678_v0, 5 }
 0x2c4   : > { %4485 = vmatmul.bf16.vlgmr.msra.gmra.mxu0 %v4110_v28  ;;  %v7994_v60 = vadd.f32 %v3671_v13, %v3623_v11  ;;  %v2948_v16 = vpack.c.b16 %v2940_v53, %v2940_v53  ;;  %v2979_v13 = vshrl.u32 %v6303_v55, 16 }
 0x2c5   : > { %4946 = vmatpush.bf16.msra.mxu0 %v7928_v52  ;;  %v4668_v52 = vshll.u32 %v6136_v3, 16  ;;  %v2941_v3 = vunpack.c.l.b16 %v2869_v59 }
 0x2c6   : > { %v2986_v31 = vshll.u32 %v2948_v16, 16  ;;  %v3065_v46 = vrot.slane %v2948_v16, 1  ;;  %v2984_v22 = vor.u32 %v2983_v50, %v2979_v13 }
 0x2c7   : > { %v7998_v51 = vpop.f32.mrf.mxu3  ;;  %v4670_v47 = vrot.slane %v4668_v52, 5 }
 0x2c8   : > { %v3580_v21 = vpop.f32.mrf.mxu1  ;;  %v2988_v37 = vrot.slane %v2986_v31, 1  ;;  %v3066_v41 = vsel %vm592_vm1, %v3064_v30, %v3065_v46 }
 0x2c9   : > { %v3624_v19 = vpop.f32.mrf.mxu2  ;;  %4947 = vmatpush.bf16.msra.mxu0 %v7942_v43  ;;  %v8005_v12 = vpop.f32.mrf.mxu0  ;;  %v4661_v43 = vrot.slane %v4659_v61, 4 }
 0x2ca   : > { %v8003_v36 = vadd.f32 %v3624_v19, %v3575_v14 }
 0x2cb   : > { %v4665_v44 = vor.u32 %v4664_v62, %v4661_v43  ;;  %v3067_v43 = vrot.slane %v6304_v10, 1 }
 0x2cc   : > { %3966 = vmatmul.bf16.gmra.mxu3 %v3063_v38  ;;  %v8049_v52 = vadd.f32 %v7998_v51, %v8003_v36 }
 0x2cd   : > { %4948 = vmatpush.bf16.msra.mxu0 %v7949_v40  ;;  %v4675_v40 = vor.u32 %v4674_v42, %v4670_v47  ;;  %v4666_v35 = vrot.slane %v4665_v44, 4  ;;  %v2950_v44 = vpack.c.b16 %v2942_v2, %v2942_v2  ;;  %v2944_v2 = vunpack.c.l.b16 %v2878_v45 }
 0x2ce   : > { %3917 = vmatmul.bf16.gmra.mxu2 %v2977_v48 }
 0x2cf   : > { %v8011_v4 = vpop.f32.mrf.mxu3  ;;  %v3010_v31 = vshll.u32 %v2950_v44, 16 }
 0x2d0   : > { %v3583_v14 = vpop.f32.mrf.mxu1 }
 0x2d1   : > { %v3627_v24 = vpop.f32.mrf.mxu2  ;;  %4949 = vmatpush.bf16.msra.mxu0 %v7956_v25  ;;  %v8018_v27 = vpop.f32.mrf.mxu0  ;;  %v4676_v25 = vrot.slane %v4675_v40, 4  ;;  %v3005_v40 = vshll.u32 %v6305_v5, 16 }
 0x2d2   : > { %v8016_v54 = vadd.f32 %v3627_v24, %v3578_v63 }
 0x2d3   : > { %3873 = vmatmul.bf16.gmra.mxu1 %v6303_v55  ;;  %v4681_v63 = vsel %vm8022_vm2, %v4676_v25, %v4680_v7  ;;  %v2991_v55 = vshrl.u32 %v6304_v10, 16  ;;  %v3007_v50 = vrot.slane %v3005_v40, 1  ;;  %v3071_v25 = vrot.slane %v2950_v44, 1 }
 0x2d4   : > { %4534 = vmatmul.bf16.vlgmr.msrb.gmra.mxu0 %v4205_v20  ;;  %v4867_v17 = vunpack.c.l.b16 %v4681_v63  ;;  %v3003_v7 = vshrl.u32 %v6305_v5, 16  ;;  %v8069_v46 = vadd.f32 %v8011_v4, %v8016_v54  ;;  %v2875_v63 = vld [vmem:[#allocation2 + $0x44] sm:$0x1]  ;;  %v2952_v44 = vpack.c.b16 %v2944_v2, %v2944_v2 }
 0x2d5   : > { %4950 = vmatpush.bf16.msra.mxu0 %v7967_v33  ;;  %v4671_v33 = vsel %vm8022_vm2, %v4666_v35, %v4670_v47 }
 0x2d6   : > { %v4866_v39 = vunpack.c.l.b16 %v4671_v33 }
 0x2d7   : > { %v8026_v29 = vpop.f32.mrf.mxu3 }
 0x2d8   : > { %v3585_v34 = vpop.f32.mrf.mxu1  ;;  %v4882_v9 = vpack.c.b16 %v4867_v17, %v4866_v39  ;;  %v6306_v39 = vld [vmem:[#allocation2 + $0x3c] sm:$0xff]  ;;  %v2943_v17 = vunpack.c.l.b16 %v2875_v63 }
 0x2d9   : > { %v3629_v6 = vpop.f32.mrf.mxu2  ;;  %4951 = vmatpush.bf16.msra.mxu0 %v7975_v1  ;;  %v8035_v28 = vpop.f32.mrf.mxu0  ;;  %v2989_v1 = vsel %vm461_vm0, %v2984_v22, %v2988_v37  ;;  %v3012_v22 = vrot.slane %v3010_v31, 1 }
 0x2da   : > { %v8033_v11 = vadd.f32 %v3629_v6, %v3580_v21  ;;  %v2949_v21 = vpack.c.b16 %v2941_v3, %v2941_v3  ;;  %v3070_v6 = vrot.slane %v6305_v5, 1  ;;  %v2951_v3 = vpack.c.b16 %v2943_v17, %v2943_v17  ;;  %v2881_v17 = vld [vmem:[#allocation2 + $0x5c] sm:$0x1] }
 0x2dc   : > { %3971 = vmatmul.bf16.gmra.mxu3 %v3066_v41  ;;  %v2998_v23 = vshll.u32 %v2949_v21, 16  ;;  %v3068_v48 = vrot.slane %v2949_v21, 1  ;;  %v3072_v59 = vsel %vm592_vm1, %v3070_v6, %v3071_v25  ;;  %v8081_v54 = vadd.f32 %v8026_v29, %v8033_v11 }
 0x2dd   : > { %4952 = vmatpush.bf16.msra.mxu0 %v7983_v8  ;;  %v2995_v8 = vrot.slane %v2993_v49, 1  ;;  %v3022_v49 = vshll.u32 %v2951_v3, 16 }
 0x2de   : > { %3922 = vmatmul.bf16.gmra.mxu2 %v2989_v1  ;;  %v3000_v47 = vrot.slane %v2998_v23, 1  ;;  %v3069_v51 = vsel %vm592_vm1, %v3067_v43, %v3068_v48  ;;  %v3074_v23 = vrot.slane %v2951_v3, 1  ;;  %v3015_v48 = vshrl.u32 %v6306_v39, 16  ;;  %v6308_v3 = vld [vmem:[#allocation2 + $0x54] sm:$0xff] }
 0x2df   : > { %v8040_v26 = vpop.f32.mrf.mxu3  ;;  %v2996_v62 = vor.u32 %v2995_v8, %v2991_v55  ;;  %v3024_v43 = vrot.slane %v3022_v49, 1 }
 0x2e0   : > { %v3588_v19 = vpop.f32.mrf.mxu1 }
 0x2e1   : > { %v3632_v57 = vpop.f32.mrf.mxu2  ;;  %4953 = vmatpush.bf16.msra.mxu0 %v7992_v15  ;;  %v8045_v56 = vpop.f32.mrf.mxu0  ;;  %v3001_v36 = vsel %vm461_vm0, %v2996_v62, %v3000_v47 }
 0x2e2   : > { %v8043_v61 = vadd.f32 %v3632_v57, %v3583_v14 }
 0x2e3   : > { %3878 = vmatmul.bf16.gmra.mxu1 %v6304_v10 }
 0x2e4   : > { %4954 = vmatmul.bf16.vlgmr.msra.gmra.mxu0 %v4882_v9  ;;  %v3017_v9 = vshll.u32 %v6306_v39, 16  ;;  %v8091_v55 = vadd.f32 %v8040_v26, %v8043_v61 }
 0x2e6   : > { %v3019_v21 = vrot.slane %v3017_v9, 1  ;;  %v2945_v9 = vunpack.c.l.b16 %v2881_v17 }
 0x2e7   : > { %v8051_v38 = vpop.f32.mrf.mxu3 }
 0x2e8   : > { %v3590_v15 = vpop.f32.mrf.mxu1  ;;  %v2953_v45 = vpack.c.b16 %v2945_v9, %v2945_v9 }
 0x2e9   : > { %v3634_v53 = vpop.f32.mrf.mxu2  ;;  %v8055_v58 = vpop.f32.mrf.mxu0 }
 0x2ea   : > { %v8053_v42 = vadd.f32 %v3634_v53, %v3585_v34  ;;  %v3008_v34 = vor.u32 %v3007_v50, %v3003_v7  ;;  %v3073_v53 = vrot.slane %v6306_v39, 1  ;;  %v3034_v7 = vshll.u32 %v2952_v44, 16 }
 0x2ec   : > { %3976 = vmatmul.bf16.gmra.mxu3 %v3069_v51  ;;  %v3013_v41 = vsel %vm461_vm0, %v3008_v34, %v3012_v22  ;;  %v3075_v51 = vsel %vm592_vm1, %v3073_v53, %v3074_v23  ;;  %v8103_v61 = vadd.f32 %v8051_v38, %v8053_v42  ;;  %v4008_v23 = vld [vmem:[#allocation2 + $0x2c] sm:$0x1] }
 0x2ed   : > { %v4084_v2 = vunpack.c.l.b16 %v4008_v23 }
 0x2ee   : > { %3927 = vmatmul.bf16.gmra.mxu2 %v3001_v36 }
 0x2ef   : > { %v8059_v24 = vpop.f32.mrf.mxu3 }
 0x2f0   : > { %v3593_v16 = vpop.f32.mrf.mxu1 }
 0x2f1   : > { %v3637_v14 = vpop.f32.mrf.mxu2  ;;  %v8063_v20 = vpop.f32.mrf.mxu0 }
 0x2f2   : > { %v8061_v0 = vadd.f32 %v3637_v14, %v3588_v19 }
 0x2f3   : > { %3883 = vmatmul.bf16.gmra.mxu1 %v6305_v5  ;;  %v6307_v5 = vld [vmem:[#allocation2 + $0x48] sm:$0xff] }
 0x2f4   : > { %v3029_v40 = vshll.u32 %v6307_v5, 16  ;;  %v3027_v6 = vshrl.u32 %v6307_v5, 16  ;;  %v8113_v38 = vadd.f32 %v8059_v24, %v8061_v0  ;;  %v3076_v22 = vrot.slane %v6307_v5, 1  ;;  %v6138_v24 = vld [vmem:[%s6847_s13 + $0x24] sm:$0xf] }
 0x2f5   : > { %v6139_v0 = vld [vmem:[%s6847_s13 + $0x28] sm:$0xf]  ;;  %v4683_v49 = vshrl.u32 %v6138_v24, 16 }
 0x2f6   : > { %v3031_v25 = vrot.slane %v3029_v40, 1 }
 0x2f7   : > { %v8065_v35 = vpop.f32.mrf.mxu3 }
 0x2f8   : > { %v3595_v30 = vpop.f32.mrf.mxu1  ;;  %v3032_v63 = vor.u32 %v3031_v25, %v3027_v6  ;;  %v6140_v6 = vld [vmem:[%s6847_s13 + $0x2c] sm:$0x1] }
 0x2f9   : > { %v3639_v13 = vpop.f32.mrf.mxu2  ;;  %v8073_v33 = vpop.f32.mrf.mxu0 }
 0x2fa   : > { %v8071_v37 = vadd.f32 %v3639_v13, %v3590_v15  ;;  %v3020_v15 = vor.u32 %v3019_v21, %v3015_v48  ;;  %v4686_v48 = vshll.u32 %v6138_v24, 16 }
 0x2fc   : > { %3981 = vmatmul.bf16.gmra.mxu3 %v3072_v59  ;;  %v3025_v36 = vsel %vm461_vm0, %v3020_v15, %v3024_v43  ;;  %v3036_v59 = vrot.slane %v3034_v7, 1  ;;  %v8127_v53 = vadd.f32 %v8065_v35, %v8071_v37  ;;  %v3080_v35 = vrot.slane %v2953_v45, 1 }
 0x2fd   : > { %v3039_v37 = vshrl.u32 %v6308_v3, 16 }
 0x2fe   : > { %3932 = vmatmul.bf16.gmra.mxu2 %v3013_v41 }
 0x2ff   : > { %v8077_v4 = vpop.f32.mrf.mxu3 }
 0x300   : > { %v3598_v10 = vpop.f32.mrf.mxu1 }
 0x301   : > { %v3642_v1 = vpop.f32.mrf.mxu2  ;;  %v8085_v19 = vpop.f32.mrf.mxu0 }
 0x302   : > { %v8083_v57 = vadd.f32 %v3642_v1, %v3593_v16 }
 0x303   : > { %3888 = vmatmul.bf16.gmra.mxu1 %v6306_v39 }
 0x307   : > { %v8087_v8 = vpop.f32.mrf.mxu3 }
 0x308   : > { %v3600_v11 = vpop.f32.mrf.mxu1 }
 0x309   : > { %v3644_v29 = vpop.f32.mrf.mxu2  ;;  %v8095_v47 = vpop.f32.mrf.mxu0 }
 0x30a   : > { %v8093_v62 = vadd.f32 %v3644_v29, %v3595_v30  ;;  %v3077_v30 = vrot.slane %v2952_v44, 1  ;;  %v4692_v29 = vshll.u32 %v6139_v0, 16  ;;  %v4688_v44 = vrot.slane %v4686_v48, 5 }
 0x30c   : > { %3986 = vmatmul.bf16.gmra.mxu3 %v3075_v51  ;;  %v3078_v1 = vsel %vm592_vm1, %v3076_v22, %v3077_v30  ;;  %v3041_v51 = vshll.u32 %v6308_v3, 16  ;;  %v4694_v40 = vrot.slane %v4692_v29, 5  ;;  %v3046_v30 = vshll.u32 %v2953_v45, 16 }
 0x30d   : > { %v8136_v22 = vpack.c.b16 %v4084_v2, %v4084_v2 }
 0x30e   : > { %3937 = vmatmul.bf16.gmra.mxu2 %v3025_v36  ;;  %v3043_v7 = vrot.slane %v3041_v51, 1  ;;  %v3048_v23 = vrot.slane %v3046_v30, 1 }
 0x30f   : > { %v8099_v26 = vpop.f32.mrf.mxu3  ;;  %v4119_v45 = vshll.u32 %v8136_v22, 16 }
 0x310   : > { %v3603_v16 = vpop.f32.mrf.mxu1 }
 0x311   : > { %v3647_v14 = vpop.f32.mrf.mxu2  ;;  %v8107_v31 = vpop.f32.mrf.mxu0 }
 0x312   : > { %v8105_v50 = vadd.f32 %v3647_v14, %v3598_v10  ;;  %v3037_v10 = vsel %vm461_vm0, %v3032_v63, %v3036_v59  ;;  %v4685_v14 = vrot.slane %v4683_v49, 4  ;;  %v8138_v63 = vld [vmem:[#allocation2 + $0x24] sm:$0xff]  ;;  %v3044_v49 = vor.u32 %v3043_v7, %v3039_v37 }
 0x313   : > { %3893 = vmatmul.bf16.gmra.mxu1 %v6307_v5  ;;  %v4121_v7 = vrot.slane %v4119_v45, 1  ;;  %v8163_v37 = vadd.f32 %v8087_v8, %v8093_v62 }
 0x314   : > { %v4689_v59 = vor.u32 %v4688_v44, %v4685_v14  ;;  %v3049_v2 = vsel %vm461_vm0, %v3044_v49, %v3048_v23  ;;  %v6141_v14 = vld [vmem:[%s6847_s13 + $0x30] sm:$0xf]  ;;  %v6142_v44 = vld [vmem:[%s6847_s13 + $0x34] sm:$0xf] }
 0x316   : > { %v4690_v51 = vrot.slane %v4689_v59, 4 }
 0x317   : > { %v8109_v13 = vpop.f32.mrf.mxu3 }
 0x318   : > { %v3605_v34 = vpop.f32.mrf.mxu1  ;;  %v4695_v30 = vsel %vm8022_vm2, %v4690_v51, %v4694_v40 }
 0x319   : > { %v3649_v42 = vpop.f32.mrf.mxu2  ;;  %v8117_v39 = vpop.f32.mrf.mxu0 }
 0x31a   : > { %v8115_v41 = vadd.f32 %v3649_v42, %v3600_v11  ;;  %8553 = vst [vmem:[#allocation12_spill] sm:$0xff] %v8117_v39  ;;  %v4696_v11 = vshrl.u32 %v6139_v0, 16  ;;  %v3079_v0 = vrot.slane %v6308_v3, 1  ;;  %v6146_v39 = vld [vmem:[%s6847_s13 + $0x44] sm:$0x1] }
 0x31c   : > { %3991 = vmatmul.bf16.gmra.mxu3 %v3078_v1  ;;  %v4698_v25 = vrot.slane %v4696_v11, 4  ;;  %v4702_v1 = vshll.u32 %v6140_v6, 16  ;;  %v3081_v11 = vsel %vm592_vm1, %v3079_v0, %v3080_v35  ;;  %v4011_v35 = vld [vmem:[#allocation2 + $0x38] sm:$0x1]  ;;  %v4720_v0 = vshrl.u32 %v6142_v44, 16 }
 0x31e   : > { %3942 = vmatmul.bf16.gmra.mxu2 %v3037_v10  ;;  %v4699_v17 = vor.u32 %v4698_v25, %v4694_v40  ;;  %v8143_v10 = vadd.f32 %v8077_v4, %v8083_v57  ;;  %v4704_v57 = vrot.slane %v4702_v1, 5  ;;  %v4710_v1 = vshll.u32 %v6141_v14, 16 }
 0x31f   : > { %v8123_v21 = vpop.f32.mrf.mxu3 }
 0x320   : > { %v3608_v43 = vpop.f32.mrf.mxu1  ;;  %v4700_v4 = vrot.slane %v4699_v17, 4  ;;  %v4707_v17 = vshrl.u32 %v6141_v14, 16  ;;  %v4712_v62 = vrot.slane %v4710_v1, 5  ;;  %v8177_v14 = vld [vmem:[#allocation2 + $0x30] sm:$0xff] }
 0x321   : > { %v3652_v15 = vpop.f32.mrf.mxu2  ;;  %v8131_v5 = vpop.f32.mrf.mxu0 }
 0x322   : > { %v8129_v36 = vadd.f32 %v3652_v15, %v3603_v16  ;;  %8554 = vst [vmem:[#allocation13_spill] sm:$0xff] %v8131_v5  ;;  %v4114_v16 = vshll.u32 %v8138_v63, 16  ;;  %v4705_v6 = vsel %vm8022_vm2, %v4700_v4, %v4704_v57  ;;  %v4709_v8 = vrot.slane %v4707_v17, 4  ;;  %v6143_v57 = vld [vmem:[%s6847_s13 + $0x38] sm:$0x1] }
 0x323   : > { %3898 = vmatmul.bf16.gmra.mxu1 %v6308_v3  ;;  %v4112_v3 = vshrl.u32 %v8138_v63, 16  ;;  %v4869_v45 = vunpack.c.l.b16 %v4705_v6  ;;  %v4722_v4 = vrot.slane %v4720_v0, 4  ;;  %v4207_v6 = vrot.slane %v8136_v22, 1 }
 0x324   : > { %v4116_v15 = vrot.slane %v4114_v16, 1  ;;  %v4726_v17 = vshll.u32 %v6143_v57, 16  ;;  %v4206_v0 = vrot.slane %v8138_v63, 1 }
 0x326   : > { %v4117_v25 = vor.u32 %v4116_v15, %v4112_v3  ;;  %v4868_v15 = vunpack.c.l.b16 %v4695_v30 }
 0x327   : > { %v8134_v42 = vpop.f32.mrf.mxu3 }
 0x328   : > { %v3610_v24 = vpop.f32.mrf.mxu1  ;;  %v4122_v40 = vsel %vm461_vm0, %v4117_v25, %v4121_v7  ;;  %v8182_v25 = vadd.f32 %v8099_v26, %v8105_v50  ;;  %v4124_v50 = vshrl.u32 %v8177_v14, 16 }
 0x329   : > { %v3654_v9 = vpop.f32.mrf.mxu2  ;;  %v8147_v29 = vpop.f32.mrf.mxu0 }
 0x32a   : > { %v8145_v48 = vadd.f32 %v3654_v9, %v3605_v34  ;;  %8555 = vst [vmem:[#allocation14_spill] sm:$0xff] %v8147_v29  ;;  %v4716_v9 = vshll.u32 %v6142_v44, 16  ;;  %v4883_v44 = vpack.c.b16 %v4869_v45, %v4868_v15  ;;  %v4728_v45 = vrot.slane %v4726_v17, 5 }
 0x32c   : > { %3996 = vmatmul.bf16.gmra.mxu3 %v3081_v11  ;;  %v4085_v11 = vunpack.c.l.b16 %v4011_v35  ;;  %v4718_v51 = vrot.slane %v4716_v9, 5  ;;  %v4713_v35 = vor.u32 %v4712_v62, %v4709_v8  ;;  %v6144_v8 = vld [vmem:[%s6847_s13 + $0x3c] sm:$0xf]  ;;  %v6145_v62 = vld [vmem:[%s6847_s13 + $0x40] sm:$0xf] }
 0x32d   : > { %v4731_v63 = vshrl.u32 %v6144_v8, 16  ;;  %v4744_v17 = vshrl.u32 %v6145_v62, 16 }
 0x32e   : > { %3947 = vmatmul.bf16.gmra.mxu2 %v3049_v2  ;;  %v8175_v3 = vpack.c.b16 %v4085_v11, %v4085_v11  ;;  %v4208_v11 = vsel %vm592_vm1, %v4206_v0, %v4207_v6  ;;  %v4714_v22 = vrot.slane %v4713_v35, 4 }
 0x32f   : > { %v8155_v34 = vpop.f32.mrf.mxu3  ;;  %v4746_v5 = vrot.slane %v4744_v17, 4 }
 0x330   : > { %v8165_v59 = vpop.f32.mrf.mxu1  ;;  %v4131_v26 = vshll.u32 %v8175_v3, 16  ;;  %v4719_v6 = vsel %vm8022_vm2, %v4714_v22, %v4718_v51 }
 0x331   : > { %v3657_v16 = vpop.f32.mrf.mxu2  ;;  %v8169_v23 = vpop.f32.mrf.mxu0 }
 0x332   : > { %v8167_v49 = vadd.f32 %v3657_v16, %v3608_v43  ;;  %8556 = vst [vmem:[#allocation15_spill] sm:$0xff] %v8169_v23  ;;  %v4126_v43 = vshll.u32 %v8177_v14, 16  ;;  %v4723_v16 = vor.u32 %v4722_v4, %v4718_v51  ;;  %v4133_v57 = vrot.slane %v4131_v26, 1 }
 0x333   : > { %4490 = vmatmul.bf16.vlgmr.msra.gmra.mxu1 %v4122_v40 }
 0x334   : > { %v4128_v40 = vrot.slane %v4126_v43, 1  ;;  %v4724_v15 = vrot.slane %v4723_v16, 4  ;;  %v4734_v43 = vshll.u32 %v6144_v8, 16  ;;  %v4740_v16 = vshll.u32 %v6145_v62, 16 }
 0x335   : > { %v8219_v62 = vadd.f32 %v8123_v21, %v8129_v36 }
 0x336   : > { %v4129_v4 = vor.u32 %v4128_v40, %v4124_v50  ;;  %v4729_v35 = vsel %vm8022_vm2, %v4724_v15, %v4728_v45  ;;  %v4736_v8 = vrot.slane %v4734_v43, 5  ;;  %v4742_v29 = vrot.slane %v4740_v16, 5  ;;  %v8214_v15 = vld [vmem:[#allocation2 + $0x3c] sm:$0xff] }
 0x337   : > { %v8173_v2 = vpop.f32.mrf.mxu3  ;;  %v4750_v43 = vshll.u32 %v6146_v39, 16  ;;  %v4209_v16 = vrot.slane %v8177_v14, 1  ;;  %v4017_v39 = vld [vmem:[#allocation2 + $0x50] sm:$0x1]  ;;  %v3865_v14 = vadd.f32 %v8165_v59, %v7994_v60 }
 0x338   : > { %v8184_v30 = vpop.f32.mrf.mxu1  ;;  %v4134_v26 = vsel %vm461_vm0, %v4129_v4, %v4133_v57  ;;  %v4087_v59 = vunpack.c.l.b16 %v4017_v39  ;;  %v8254_v39 = vld [vmem:[#allocation2 + $0x48] sm:$0xff] }
 0x339   : > { %v3659_v7 = vpop.f32.mrf.mxu2  ;;  %v8189_v9 = vpop.f32.mrf.mxu0 }
 0x33a   : > { %v8187_v1 = vadd.f32 %v3659_v7, %v3610_v24  ;;  %8557 = vst [vmem:[#allocation16_spill] sm:$0xff] %v8189_v9  ;;  %v4014_v7 = vld [vmem:[#allocation2 + $0x44] sm:$0x1] }
 0x33b   : > { %v4086_v50 = vunpack.c.l.b16 %v4014_v7  ;;  %v4210_v7 = vrot.slane %v8175_v3, 1 }
 0x33c   : > { %4959 = vmatmul.bf16.vlgmr.msra.gmra.mxu3 %v4883_v44  ;;  %v8201_v44 = vadd.f32 %v8109_v13, %v8115_v41  ;;  %v4870_v13 = vunpack.c.l.b16 %v4719_v6  ;;  %v4871_v41 = vunpack.c.l.b16 %v4729_v35 }
 0x33d   : > { %v8212_v22 = vpack.c.b16 %v4086_v50, %v4086_v50  ;;  %v4211_v36 = vsel %vm592_vm1, %v4209_v16, %v4210_v7  ;;  %v4136_v50 = vshrl.u32 %v8214_v15, 16 }
 0x33e   : > { %4539 = vmatmul.bf16.vlgmr.msra.gmra.mxu2 %v4208_v11  ;;  %v4733_v11 = vrot.slane %v4731_v63, 4  ;;  %v4747_v63 = vor.u32 %v4746_v5, %v4742_v29  ;;  %v4752_v5 = vrot.slane %v4750_v43, 5 }
 0x33f   : > { %v8197_v24 = vpop.f32.mrf.mxu3 }
 0x340   : > { %v3869_v23 = vpop.f32.mrf.mxu1  ;;  %v4737_v45 = vor.u32 %v4736_v8, %v4733_v11  ;;  %v4748_v3 = vrot.slane %v4747_v63, 4  ;;  %v6147_v11 = vld [vmem:[%s6847_s13 + $0x48] sm:$0xf]  ;;  %v6148_v8 = vld [vmem:[%s6847_s13 + $0x4c] sm:$0xf] }
 0x341   : > { %v3913_v9 = vpop.f32.mrf.mxu2  ;;  %v3870_v0 = vadd.f32 %v3869_v23, %v8069_v46  ;;  %v4486_v40 = vpop.f32.mrf.mxu0  ;;  %v4138_v46 = vshll.u32 %v8214_v15, 16  ;;  %v4884_v23 = vpack.c.b16 %v4871_v41, %v4870_v13  ;;  %v4764_v43 = vshll.u32 %v6148_v8, 16 }
 0x342   : > { %v4738_v21 = vrot.slane %v4737_v45, 4  ;;  %v4758_v45 = vshll.u32 %v6147_v11, 16  ;;  %v4753_v63 = vsel %vm8022_vm2, %v4748_v3, %v4752_v5  ;;  %v4768_v16 = vshrl.u32 %v6148_v8, 16 }
 0x343   : > { %4495 = vmatmul.bf16.gmra.mxu1 %v4134_v26  ;;  %v4140_v17 = vrot.slane %v4138_v46, 1  ;;  %v4143_v26 = vshll.u32 %v8212_v22, 16  ;;  %v4873_v5 = vunpack.c.l.b16 %v4753_v63 }
 0x344   : > { %v4743_v46 = vsel %vm8022_vm2, %v4738_v21, %v4742_v29  ;;  %v3914_v29 = vadd.f32 %v3913_v9, %v3865_v14  ;;  %v4487_v21 = vadd.f32 %v4486_v40, %v7985_v32  ;;  %v4150_v9 = vshll.u32 %v8254_v39, 16  ;;  %v6149_v32 = vld [vmem:[%s6847_s13 + $0x50] sm:$0x1] }
 0x345   : > { %v4141_v13 = vor.u32 %v4140_v17, %v4136_v50  ;;  %v4145_v41 = vrot.slane %v4143_v26, 1  ;;  %v8241_v17 = vadd.f32 %v8134_v42, %v8145_v48  ;;  %v4760_v42 = vrot.slane %v4758_v45, 5 }
 0x346   : > { %v3963_v40 = vadd.f32 %v8197_v24, %v3914_v29  ;;  %v3867_v45 = vadd.f32 %v8184_v30, %v8049_v52  ;;  %v8270_v24 = vld [vmem:[%s8516_s5] ss:$0 sm:$0xff] }
 0x347   : > { %v8210_v51 = vpop.f32.mrf.mxu3  ;;  %v4146_v50 = vsel %vm461_vm0, %v4141_v13, %v4145_v41  ;;  %v4213_v41 = vrot.slane %v8212_v22, 1  ;;  %v4774_v22 = vshll.u32 %v6149_v32, 16 }
 0x348   : > { %v3871_v57 = vpop.f32.mrf.mxu1 }
 0x349   : > { %v8221_v4 = vpop.f32.mrf.mxu2  ;;  %v3872_v6 = vadd.f32 %v3871_v57, %v8081_v54  ;;  %v8225_v35 = vpop.f32.mrf.mxu0 }
 0x34a   : > { %v3916_v30 = vadd.f32 %v8221_v4, %v3867_v45  ;;  %v8288_v4 = vld [vmem:[%s8517_s6] ss:$0 sm:$0xff] }
 0x34c   : > { %4964 = vmatmul.bf16.gmra.mxu3 %v4884_v23  ;;  %v4755_v23 = vshrl.u32 %v6147_v11, 16  ;;  %v4872_v11 = vunpack.c.l.b16 %v4743_v46 }
 0x34e   : > { %4544 = vmatmul.bf16.gmra.mxu2 %v4211_v36  ;;  %v4757_v8 = vrot.slane %v4755_v23, 4  ;;  %v4885_v14 = vpack.c.b16 %v4873_v5, %v4872_v11  ;;  %v8263_v23 = vadd.f32 %v8155_v34, %v8167_v49  ;;  %v4152_v49 = vrot.slane %v4150_v9, 1  ;;  %v4020_v9 = vld [vmem:[#allocation2 + $0x5c] sm:$0x1] }
 0x34f   : > { %v3967_v54 = vpop.f32.mrf.mxu3  ;;  %v4776_v5 = vrot.slane %v4774_v22, 5 }
 0x350   : > { %v3874_v7 = vpop.f32.mrf.mxu1  ;;  %v4761_v46 = vor.u32 %v4760_v42, %v4757_v8  ;;  %v6150_v8 = vld [vmem:[%s6847_s13 + $0x54] sm:$0xf]  ;;  %v6151_v42 = vld [vmem:[%s6847_s13 + $0x58] sm:$0xf] }
 0x351   : > { %v3918_v57 = vpop.f32.mrf.mxu2  ;;  %v8244_v36 = vadd.f32 %v3874_v7, %v8091_v55  ;;  %v4535_v60 = vpop.f32.mrf.mxu0  ;;  %v4770_v55 = vrot.slane %v4768_v16, 4  ;;  %v4779_v32 = vshrl.u32 %v6150_v8, 16 }
 0x352   : > { %v3919_v26 = vadd.f32 %v3918_v57, %v3870_v0  ;;  %v4536_v48 = vadd.f32 %v4535_v60, %v4487_v21  ;;  %v8250_v0 = vrot.slane %v4764_v43, 5  ;;  %v8252_v57 = vpack.c.b16 %v4087_v59, %v4087_v59 }
 0x353   : > { %4500 = vmatmul.bf16.gmra.mxu1 %v4146_v50  ;;  %v4489_v60 = vadd.f32 %v8225_v35, %v8005_v12 }
 0x354   : > { %v8248_v3 = vadd.f32 %v3967_v54, %v3919_v26  ;;  %v4212_v54 = vrot.slane %v8214_v15, 1  ;;  %v4575_v7 = vadd.f32 %v4536_v48, %v3963_v40  ;;  %v4771_v15 = vor.u32 %v4770_v55, %v8250_v0 }
 0x355   : > { %v4155_v52 = vshll.u32 %v8252_v57, 16  ;;  %v3965_v48 = vadd.f32 %v8210_v51, %v3916_v30  ;;  %v4782_v40 = vshll.u32 %v6150_v8, 16 }
 0x356   : > { %v4214_v29 = vsel %vm592_vm1, %v4212_v54, %v4213_v41  ;;  %v4595_v50 = vmul.f32 %v8270_v24, %v4575_v7  ;;  %v4772_v11 = vrot.slane %v4771_v15, 4  ;;  %v4788_v54 = vshll.u32 %v6151_v42, 16 }
 0x357   : > { %v3969_v13 = vpop.f32.mrf.mxu3  ;;  %v4157_v35 = vrot.slane %v4155_v52, 1  ;;  %v4792_v41 = vshrl.u32 %v6151_v42, 16 }
 0x358   : > { %v3876_v43 = vpop.f32.mrf.mxu1  ;;  %v4615_v51 = vadd.f32 %v8288_v4, %v4595_v50 }
 0x359   : > { %v3920_v63 = vpop.f32.mrf.mxu2  ;;  %v8274_v26 = vadd.f32 %v3876_v43, %v8103_v61  ;;  %v4537_v34 = vpop.f32.mrf.mxu0  ;;  %v4148_v61 = vshrl.u32 %v8254_v39, 16 }
 0x35a   : > { %v3921_v16 = vadd.f32 %v3920_v63, %v3872_v6  ;;  %v4762_v6 = vrot.slane %v4761_v46, 4  ;;  %v4538_v21 = vadd.f32 %v4537_v34, %v4489_v60  ;;  %v4777_v63 = vsel %vm8022_vm2, %v4772_v11, %v4776_v5 }
 0x35b   : > { %v4153_v12 = vor.u32 %v4152_v49, %v4148_v61  ;;  %v4781_v34 = vrot.slane %v4779_v32, 4  ;;  %v4784_v49 = vrot.slane %v4782_v40, 5  ;;  %v4875_v30 = vunpack.c.l.b16 %v4777_v63 }
 0x35c   : > { %v8280_v59 = vadd.f32 %v3969_v13, %v3921_v16  ;;  %4969 = vmatmul.bf16.gmra.mxu3 %v4885_v14  ;;  %v4767_v13 = vsel %vm8022_vm2, %v4762_v6, %v8250_v0  ;;  %v8299_v14 = vadd.f32 %v8173_v2, %v8187_v1  ;;  %v4576_v46 = vadd.f32 %v4538_v21, %v3965_v48  ;;  %v6152_v6 = vld [vmem:[%s6847_s13 + $0x5c] sm:$0x1] }
 0x35d   : > { %v4158_v22 = vsel %vm461_vm0, %v4153_v12, %v4157_v35  ;;  %v4088_v2 = vunpack.c.l.b16 %v4020_v9  ;;  %v4874_v16 = vunpack.c.l.b16 %v4767_v13  ;;  %v4790_v60 = vrot.slane %v4788_v54, 5 }
 0x35e   : > { %4549 = vmatmul.bf16.gmra.mxu2 %v4214_v29  ;;  %v4794_v29 = vrot.slane %v4792_v41, 4  ;;  %v4785_v5 = vor.u32 %v4784_v49, %v4781_v34  ;;  %v4798_v8 = vshll.u32 %v6152_v6, 16  ;;  %v4216_v9 = vrot.slane %v8252_v57, 1 }
 0x35f   : > { %v3972_v55 = vpop.f32.mrf.mxu3  ;;  %v8313_v21 = vpack.c.b16 %v4088_v2, %v4088_v2  ;;  %v4886_v12 = vpack.c.b16 %v4875_v30, %v4874_v16  ;;  %v6153_v2 = vld [vmem:[%s6847_s13 + $0x60] sm:$0xf]  ;;  %v4023_v30 = vld [vmem:[#allocation2 + $0x68] sm:$0x1] }
 0x360   : > { %v3879_v7 = vpop.f32.mrf.mxu1  ;;  %v4795_v35 = vor.u32 %v4794_v29, %v4790_v60  ;;  %v4803_v34 = vshrl.u32 %v6153_v2, 16  ;;  %v4806_v29 = vshll.u32 %v6153_v2, 16 }
 0x361   : > { %v3923_v45 = vpop.f32.mrf.mxu2  ;;  %v3880_v0 = vadd.f32 %v3879_v7, %v8113_v38  ;;  %v4955_v15 = vpop.f32.mrf.mxu0  ;;  %v8315_v38 = vld [vmem:[#allocation2 + $0x54] sm:$0xff]  ;;  %v4167_v41 = vshll.u32 %v8313_v21, 16  ;;  %v4786_v7 = vrot.slane %v4785_v5, 4 }
 0x362   : > { %v3924_v43 = vadd.f32 %v3923_v45, %v8244_v36  ;;  %v4995_v1 = vadd.f32 %v4955_v15, %v4615_v51  ;;  %v4596_v36 = vmul.f32 %v8270_v24, %v4576_v46  ;;  %v4162_v50 = vshll.u32 %v8315_v38, 16 }
 0x363   : > { %4505 = vmatmul.bf16.gmra.mxu1 %v4158_v22  ;;  %v4215_v45 = vrot.slane %v8254_v39, 1  ;;  %v4160_v57 = vshrl.u32 %v8315_v38, 16  ;;  %v4796_v63 = vrot.slane %v4795_v35, 4  ;;  %v4169_v22 = vrot.slane %v4167_v41, 1 }
 0x364   : > { %v8309_v52 = vadd.f32 %v3972_v55, %v3924_v43  ;;  %v5011_v61 = vmax.f32 %v4995_v1, 0.0  ;;  %v4616_v55 = vadd.f32 %v8288_v4, %v4596_v36  ;;  %v4164_v54 = vrot.slane %v4162_v50, 1  ;;  %v6154_v1 = vld [vmem:[%s6847_s13 + $0x64] sm:$0xf] }
 0x365   : > { %v4791_v39 = vsel %vm8022_vm2, %v4786_v7, %v4790_v60  ;;  %v4816_v36 = vshrl.u32 %v6154_v1, 16  ;;  %v4805_v60 = vrot.slane %v4803_v34, 4 }
 0x366   : > { %5027 = vst [vmem:[%s8318_s18] sm:$0xff] %v5011_v61  ;;  %v4165_v15 = vor.u32 %v4164_v54, %v4160_v57  ;;  %v4812_v61 = vshll.u32 %v6154_v1, 16  ;;  %v4876_v35 = vunpack.c.l.b16 %v4791_v39 }
 0x367   : > { %v3974_v11 = vpop.f32.mrf.mxu3 }
 0x368   : > { %v3881_v48 = vpop.f32.mrf.mxu1 }
 0x369   : > { %v3925_v42 = vpop.f32.mrf.mxu2  ;;  %v3882_v40 = vadd.f32 %v3881_v48, %v8127_v53  ;;  %v4957_v13 = vpop.f32.mrf.mxu0  ;;  %v4217_v53 = vsel %vm592_vm1, %v4215_v45, %v4216_v9  ;;  %v4814_v9 = vrot.slane %v4812_v61, 5 }
 0x36a   : > { %v3926_v32 = vadd.f32 %v3925_v42, %v8274_v26  ;;  %v4996_v46 = vadd.f32 %v4957_v13, %v4616_v55  ;;  %v4800_v26 = vrot.slane %v4798_v8, 5  ;;  %v4089_v42 = vunpack.c.l.b16 %v4023_v30  ;;  %v6155_v13 = vld [vmem:[%s6847_s13 + $0x68] sm:$0x1] }
 0x36b   : > { %v4808_v55 = vrot.slane %v4806_v29, 5  ;;  %v4822_v57 = vshll.u32 %v6155_v13, 16 }
 0x36c   : > { %v8327_v51 = vadd.f32 %v3974_v11, %v3926_v32  ;;  %4974 = vmatmul.bf16.gmra.mxu3 %v4886_v12  ;;  %v5012_v43 = vmax.f32 %v4996_v46, 0.0  ;;  %v4801_v49 = vsel %vm8022_vm2, %v4796_v63, %v4800_v26  ;;  %v4170_v12 = vsel %vm461_vm0, %v4165_v15, %v4169_v22  ;;  %v8345_v46 = vld [vmem:[#allocation2 + $0x60] sm:$0xff] }
 0x36d   : > { %v4877_v8 = vunpack.c.l.b16 %v4801_v49  ;;  %v4818_v32 = vrot.slane %v4816_v36, 4  ;;  %v8343_v41 = vpack.c.b16 %v4089_v42, %v4089_v42  ;;  %v4809_v45 = vor.u32 %v4808_v55, %v4805_v60 }
 0x36e   : > { %4554 = vmatmul.bf16.gmra.mxu2 %v4217_v53  ;;  %5028 = vst [vmem:[%s8318_s18 + $0x8] sm:$0xff] %v5012_v43  ;;  %v4219_v43 = vrot.slane %v8313_v21, 1  ;;  %v4218_v22 = vrot.slane %v8315_v38, 1  ;;  %v4824_v49 = vrot.slane %v4822_v57, 5  ;;  %v4172_v29 = vshrl.u32 %v8345_v46, 16 }
 0x36f   : > { %v3977_v16 = vpop.f32.mrf.mxu3  ;;  %v4819_v7 = vor.u32 %v4818_v32, %v4814_v9  ;;  %v4179_v1 = vshll.u32 %v8343_v41, 16  ;;  %v4810_v39 = vrot.slane %v4809_v45, 4  ;;  %v6156_v21 = vld [vmem:[%s6847_s13 + $0x6c] sm:$0xf] }
 0x370   : > { %v3884_v50 = vpop.f32.mrf.mxu1  ;;  %v4220_v30 = vsel %vm592_vm1, %v4218_v22, %v4219_v43  ;;  %v6531_v22 = vld [vmem:[#allocation2 + $0x6c] sm:$0xff] }
 0x371   : > { %v3928_v6 = vpop.f32.mrf.mxu2  ;;  %v3885_v5 = vadd.f32 %v3884_v50, %v8143_v10  ;;  %v4174_v10 = vshll.u32 %v8345_v46, 16  ;;  %v4820_v34 = vrot.slane %v4819_v7, 4  ;;  %v4181_v36 = vrot.slane %v4179_v1, 1  ;;  %v4026_v50 = vld [vmem:[#allocation2 + $0x74] sm:$0x1] }
 0x372   : > { %v3929_v11 = vadd.f32 %v3928_v6, %v3880_v0  ;;  %v4887_v0 = vpack.c.b16 %v4877_v8, %v4876_v35  ;;  %v4815_v38 = vsel %vm8022_vm2, %v4810_v39, %v4814_v9  ;;  %v4827_v35 = vshrl.u32 %v6156_v21, 16 }
 0x373   : > { %4510 = vmatmul.bf16.gmra.mxu1 %v4170_v12  ;;  %v4176_v2 = vrot.slane %v4174_v10, 1  ;;  %v4825_v6 = vsel %vm8022_vm2, %v4820_v34, %v4824_v49  ;;  %v4830_v8 = vshll.u32 %v6156_v21, 16  ;;  %v4878_v9 = vunpack.c.l.b16 %v4815_v38 }
 0x374   : > { %v8340_v48 = vadd.f32 %v3977_v16, %v3929_v11  ;;  %v4829_v45 = vrot.slane %v4827_v35, 4  ;;  %v4224_v18 = vrot.slane %v6531_v22, 1 }
 0x375   : > { %v4832_v7 = vrot.slane %v4830_v8, 5 }
 0x377   : > { %v3979_v54 = vpop.f32.mrf.mxu3  ;;  %v4833_v34 = vor.u32 %v4832_v7, %v4829_v45 }
 0x378   : > { %v3886_v26 = vpop.f32.mrf.mxu1 }
 0x379   : > { %v3930_v63 = vpop.f32.mrf.mxu2  ;;  %v3887_v15 = vadd.f32 %v3886_v26, %v8163_v37  ;;  %v4177_v37 = vor.u32 %v4176_v2, %v4172_v29  ;;  %v6158_v26 = vld [vmem:[%s6847_s13 + $0x74] sm:$0x1]  ;;  %v4186_v2 = vshll.u32 %v6531_v22, 16 }
 0x37a   : > { %v3931_v53 = vadd.f32 %v3930_v63, %v3882_v40  ;;  %v6157_v40 = vld [vmem:[%s6847_s13 + $0x70] sm:$0xf]  ;;  %s6405_s13 = sshll.u32 %s6644_s30, 4 }
 0x37b   : > { %v4836_v42 = vshll.u32 %v6157_v40, 16  ;;  %v4840_v60 = vshrl.u32 %v6157_v40, 16  ;;  %v4182_v13 = vsel %vm461_vm0, %v4177_v37, %v4181_v36  ;;  %v4221_v40 = vrot.slane %v8345_v46, 1  ;;  %s5056_s23 = sadd.s32 %s6405_s13, %s6194_s14  ;;  %s6582_s14 = scalar_lea.hbm %s8519_s8, 512 }
 0x37c   : > { %v8352_v16 = vadd.f32 %v3979_v54, %v3931_v53  ;;  %4979 = vmatmul.bf16.gmra.mxu3 %v4887_v0  ;;  %v4090_v54 = vunpack.c.l.b16 %v4026_v50  ;;  %v4879_v0 = vunpack.c.l.b16 %v4825_v6  ;;  %v4184_v6 = vshrl.u32 %v6531_v22, 16  ;;  %s6195_s21 = sshll.u32 %s5056_s23, 3 }
 0x37d   : > { %v4838_v57 = vrot.slane %v4836_v42, 5  ;;  %v4842_v63 = vrot.slane %v4840_v60, 4  ;;  %s5058_s22 = scalar_lea.hbm %s8519_s8, %s6195_s21 }
 0x37e   : > { %4559 = vmatmul.bf16.gmra.mxu2 %v4220_v30  ;;  %v4098_v53 = vpack.c.b16 %v4090_v54, %v4090_v54  ;;  %v4846_v30 = vshll.u32 %v6158_v26, 16  ;;  %s5061_s11 = sshll.u32 %s5058_s22, 4  ;;  %s5062_s11 = int_to_ptr.hbm [resolvable:$true] %s5061_s11 }
 0x37f   : > { %v3982_v61 = vpop.f32.mrf.mxu3  ;;  %v4843_v49 = vor.u32 %v4842_v63, %v4838_v57  ;;  %s6576_s25 = sshra.s32 %s5062_s11, 4  ;;  %s6577_s25 = int_to_ptr.hbm [resolvable:$true] %s6576_s25 }
 0x380   : > { %v3889_v12 = vpop.f32.mrf.mxu1  ;;  %v4191_v37 = vshll.u32 %v4098_v53, 16  ;;  %s6578_s26 = scalar_lea.hbm %s6577_s25, 128  ;;  %p6583_p6 = scmp.lt.s32.totalorder %s6577_s25, %s8519_s8 }
 0x381   : > { %v3933_v11 = vpop.f32.mrf.mxu2  ;;  %v3890_v32 = vadd.f32 %v3889_v12, %v8182_v25  ;;  %v4888_v25 = vpack.c.b16 %v4879_v0, %v4878_v9  ;;  %v4844_v50 = vrot.slane %v4843_v49, 4  ;;  %p6579_p2 = scmp.ne.s32.totalorder %s6577_s25, %s6578_s26  ;;  %p6584_p7 = scmp.lt.s32.totalorder %s6582_s14, %s6578_s26 }
 0x382   : > { %v3934_v55 = vadd.f32 %v3933_v11, %v3885_v5  ;;  %v4222_v5 = vrot.slane %v8343_v41, 1  ;;  %v4834_v41 = vrot.slane %v4833_v34, 4  ;;  %v4848_v11 = vrot.slane %v4846_v30, 5 }
 0x383   : > { %4515 = vmatmul.bf16.gmra.mxu1 %v4182_v13  ;;  %v4193_v8 = vrot.slane %v4191_v37, 1  ;;  %p6580_p4 = pnand %p6579_p2, %p6765_p3  ;;  %p6585_p9 = por %p6584_p7, %p6583_p6 }
 0x384   : > { %v8364_v10 = vadd.f32 %v3982_v61, %v3934_v55  ;;  %v4188_v61 = vrot.slane %v4186_v2, 1  ;;  %v4223_v38 = vsel %vm592_vm1, %v4221_v40, %v4222_v5  ;;  %v4849_v46 = vsel %vm8022_vm2, %v4844_v50, %v4848_v11 }
 0x385   : > { %v4881_v0 = vunpack.c.l.b16 %v4849_v46  ;;  %p6581_p5 = pneg %p6580_p4 }
 0x386   : > { %v4189_v35 = vor.u32 %v4188_v61, %v4184_v6 }
 0x387   : > { %v3984_v43 = vpop.f32.mrf.mxu3  ;;  %p6586_p10 = pnand %p6585_p9, %p6581_p5 }
 0x388   : > { %v3891_v39 = vpop.f32.mrf.mxu1  ;;  %v4194_v13 = vsel %vm461_vm0, %v4189_v35, %v4193_v8 }
 0x389   : > { %v3935_v1 = vpop.f32.mrf.mxu2  ;;  %v3892_v21 = vadd.f32 %v3891_v39, %v8201_v44  ;;  %v4839_v44 = vsel %vm8022_vm2, %v4834_v41, %v4838_v57 }
 0x38a   : > { %v3936_v29 = vadd.f32 %v3935_v1, %v3887_v15  ;;  %v4880_v9 = vunpack.c.l.b16 %v4839_v44 }
 0x38c   : > { %v8370_v36 = vadd.f32 %v3984_v43, %v3936_v29  ;;  %4984 = vmatmul.bf16.gmra.mxu3 %v4888_v25  ;;  %v4889_v7 = vpack.c.b16 %v4881_v0, %v4880_v9  ;;  %v4225_v43 = vrot.slane %v4098_v53, 1 }
 0x38e   : > { %4564 = vmatmul.bf16.gmra.mxu2 %v4223_v38 }
 0x38f   : > { %v3987_v12 = vpop.f32.mrf.mxu3 }
 0x390   : > { %v3894_v42 = vpop.f32.mrf.mxu1 }
 0x391   : > { %v3938_v15 = vpop.f32.mrf.mxu2  ;;  %v3895_v55 = vadd.f32 %v3894_v42, %v8219_v62  ;;  %v4226_v62 = vsel %vm592_vm1, %v4224_v18, %v4225_v43 }
 0x392   : > { %v3939_v60 = vadd.f32 %v3938_v15, %v3890_v32 }
 0x393   : > { %4520 = vmatmul.bf16.gmra.mxu1 %v4194_v13 }
 0x394   : > { %v8379_v54 = vadd.f32 %v3987_v12, %v3939_v60 }
 0x397   : > { %v3989_v45 = vpop.f32.mrf.mxu3 }
 0x398   : > { %v3896_v26 = vpop.f32.mrf.mxu1 }
 0x399   : > { %v3940_v63 = vpop.f32.mrf.mxu2  ;;  %v3897_v57 = vadd.f32 %v3896_v26, %v8241_v17 }
 0x39a   : > { %v3941_v2 = vadd.f32 %v3940_v63, %v3892_v21 }
 0x39c   : > { %v8382_v5 = vadd.f32 %v3989_v45, %v3941_v2  ;;  %4989 = vmatmul.bf16.gmra.mxu3 %v4889_v7 }
 0x39e   : > { %4569 = vmatmul.bf16.gmra.mxu2 %v4226_v62 }
 0x39f   : > { %v3992_v32 = vpop.f32.mrf.mxu3 }
 0x3a0   : > { %v3899_v1 = vpop.f32.mrf.mxu1 }
 0x3a1   : > { %v3943_v25 = vpop.f32.mrf.mxu2  ;;  %v3900_v34 = vadd.f32 %v3899_v1, %v8263_v23 }
 0x3a2   : > { %v3944_v39 = vadd.f32 %v3943_v25, %v3895_v55 }
 0x3a4   : > { %v8386_v49 = vadd.f32 %v3992_v32, %v3944_v39 }
 0x3a7   : > { %v3994_v30 = vpop.f32.mrf.mxu3 }
 0x3a8   : > { %v3901_v29 = vpop.f32.mrf.mxu1 }
 0x3a9   : > { %v3945_v53 = vpop.f32.mrf.mxu2  ;;  %v3902_v17 = vadd.f32 %v3901_v29, %v8299_v14 }
 0x3aa   : > { %v3946_v21 = vadd.f32 %v3945_v53, %v3897_v57 }
 0x3ac   : > { %v8389_v22 = vadd.f32 %v3994_v30, %v3946_v21 }
 0x3af   : > { %v3997_v40 = vpop.f32.mrf.mxu3 }
 0x3b0   : > { %v4491_v37 = vpop.f32.mrf.mxu1 }
 0x3b1   : > { %v3948_v61 = vpop.f32.mrf.mxu2  ;;  %v4492_v8 = vadd.f32 %v4491_v37, %v8018_v27 }
 0x3b2   : > { %v3949_v38 = vadd.f32 %v3948_v61, %v3900_v34 }
 0x3b4   : > { %v8391_v6 = vadd.f32 %v3997_v40, %v3949_v38 }
 0x3b7   : > { %v3999_v41 = vpop.f32.mrf.mxu3 }
 0x3b8   : > { %v4493_v11 = vpop.f32.mrf.mxu1 }
 0x3b9   : > { %v3950_v50 = vpop.f32.mrf.mxu2  ;;  %v4494_v55 = vadd.f32 %v4493_v11, %v8035_v28 }
 0x3ba   : > { %v3951_v23 = vadd.f32 %v3950_v50, %v3902_v17 }
 0x3bc   : > { %v8393_v12 = vadd.f32 %v3999_v41, %v3951_v23 }
 0x3bf   : > { %v4960_v35 = vpop.f32.mrf.mxu3 }
 0x3c0   : > { %v4496_v14 = vpop.f32.mrf.mxu1 }
 0x3c1   : > { %v4540_v15 = vpop.f32.mrf.mxu2 }
 0x3c2   : > { %v4541_v42 = vadd.f32 %v4540_v15, %v4492_v8 }
 0x3c4   : > { %v4577_v44 = vadd.f32 %v4541_v42, %v8248_v3  ;;  %v4497_v3 = vadd.f32 %v4496_v14, %v8045_v56 }
 0x3c6   : > { %v4597_v46 = vmul.f32 %v8270_v24, %v4577_v44 }
 0x3c7   : > { %v4962_v60 = vpop.f32.mrf.mxu3 }
 0x3c8   : > { %v4617_v13 = vadd.f32 %v8288_v4, %v4597_v46  ;;  %v4498_v0 = vpop.f32.mrf.mxu1 }
 0x3c9   : > { %v4542_v9 = vpop.f32.mrf.mxu2  ;;  %v4499_v39 = vadd.f32 %v4498_v0, %v8055_v58 }
 0x3ca   : > { %v4997_v45 = vadd.f32 %v4960_v35, %v4617_v13  ;;  %v4543_v7 = vadd.f32 %v4542_v9, %v4494_v55 }
 0x3cc   : > { %v5013_v63 = vmax.f32 %v4997_v45, 0.0  ;;  %v4578_v27 = vadd.f32 %v4543_v7, %v8280_v59 }
 0x3ce   : > { %5029 = vst [vmem:[%s8318_s18 + $0x10] sm:$0xff] %v5013_v63  ;;  %v4598_v26 = vmul.f32 %v8270_v24, %v4578_v27 }
 0x3cf   : > { %v4965_v43 = vpop.f32.mrf.mxu3 }
 0x3d0   : > { %v4618_v2 = vadd.f32 %v8288_v4, %v4598_v26  ;;  %v4501_v28 = vpop.f32.mrf.mxu1 }
 0x3d1   : > { %v4545_v57 = vpop.f32.mrf.mxu2  ;;  %v4502_v61 = vadd.f32 %v4501_v28, %v8063_v20 }
 0x3d2   : > { %v4998_v18 = vadd.f32 %v4962_v60, %v4618_v2  ;;  %v4546_v62 = vadd.f32 %v4545_v57, %v4497_v3 }
 0x3d4   : > { %v5014_v32 = vmax.f32 %v4998_v18, 0.0  ;;  %v4579_v25 = vadd.f32 %v4546_v62, %v8309_v52 }
 0x3d6   : > { %5030 = vst [vmem:[%s8318_s18 + $0x18] sm:$0xff] %v5014_v32  ;;  %v4599_v1 = vmul.f32 %v8270_v24, %v4579_v25 }
 0x3d7   : > { %v4967_v59 = vpop.f32.mrf.mxu3 }
 0x3d8   : > { %v4619_v34 = vadd.f32 %v8288_v4, %v4599_v1  ;;  %v4503_v56 = vpop.f32.mrf.mxu1 }
 0x3d9   : > { %v4547_v30 = vpop.f32.mrf.mxu2  ;;  %v4504_v8 = vadd.f32 %v4503_v56, %v8073_v33 }
 0x3da   : > { %v4999_v53 = vadd.f32 %v4965_v43, %v4619_v34  ;;  %v4548_v29 = vadd.f32 %v4547_v30, %v4499_v39 }
 0x3dc   : > { %v5015_v21 = vmax.f32 %v4999_v53, 0.0  ;;  %v4580_v17 = vadd.f32 %v4548_v29, %v8327_v51  ;;  %v8558_v53 = vld [vmem:[#allocation12_spill] sm:$0xff] }
 0x3de   : > { %5031 = vst [vmem:[%s8318_s18 + $0x20] sm:$0xff] %v5015_v21  ;;  %v4600_v40 = vmul.f32 %v8270_v24, %v4580_v17 }
 0x3df   : > { %v4970_v52 = vpop.f32.mrf.mxu3 }
 0x3e0   : > { %v4620_v37 = vadd.f32 %v8288_v4, %v4600_v40  ;;  %v4506_v58 = vpop.f32.mrf.mxu1 }
 0x3e1   : > { %v4550_v38 = vpop.f32.mrf.mxu2  ;;  %v4507_v13 = vadd.f32 %v4506_v58, %v8085_v19 }
 0x3e2   : > { %v5000_v41 = vadd.f32 %v4967_v59, %v4620_v37  ;;  %v4551_v50 = vadd.f32 %v4550_v38, %v4502_v61 }
 0x3e4   : > { %v5016_v11 = vmax.f32 %v5000_v41, 0.0  ;;  %v4581_v23 = vadd.f32 %v4551_v50, %v8340_v48 }
 0x3e6   : > { %5032 = vst [vmem:[%s8318_s18 + $0x28] sm:$0xff] %v5016_v11  ;;  %v4601_v35 = vmul.f32 %v8270_v24, %v4581_v23 }
 0x3e7   : > { %v4972_v51 = vpop.f32.mrf.mxu3 }
 0x3e8   : > { %v4621_v15 = vadd.f32 %v8288_v4, %v4601_v35  ;;  %v4508_v20 = vpop.f32.mrf.mxu1 }
 0x3e9   : > { %v4552_v14 = vpop.f32.mrf.mxu2  ;;  %v4509_v43 = vadd.f32 %v4508_v20, %v8095_v47 }
 0x3ea   : > { %v5001_v42 = vadd.f32 %v4970_v52, %v4621_v15  ;;  %v4553_v44 = vadd.f32 %v4552_v14, %v4504_v8 }
 0x3ec   : > { %v5017_v46 = vmax.f32 %v5001_v42, 0.0  ;;  %v4582_v60 = vadd.f32 %v4553_v44, %v8352_v16 }
 0x3ee   : > { %5033 = vst [vmem:[%s8318_s18 + $0x30] sm:$0xff] %v5017_v46  ;;  %v4602_v55 = vmul.f32 %v8270_v24, %v4582_v60 }
 0x3ef   : > { %v4975_v48 = vpop.f32.mrf.mxu3 }
 0x3f0   : > { %v4622_v9 = vadd.f32 %v8288_v4, %v4602_v55  ;;  %v4511_v7 = vpop.f32.mrf.mxu1 }
 0x3f1   : > { %v4555_v0 = vpop.f32.mrf.mxu2  ;;  %v4512_v25 = vadd.f32 %v4511_v7, %v8107_v31 }
 0x3f2   : > { %v5002_v33 = vadd.f32 %v4972_v51, %v4622_v9  ;;  %v4556_v45 = vadd.f32 %v4555_v0, %v4507_v13  ;;  %v8561_v0 = vld [vmem:[#allocation15_spill] sm:$0xff] }
 0x3f4   : > { %v5018_v63 = vmax.f32 %v5002_v33, 0.0  ;;  %v4583_v27 = vadd.f32 %v4556_v45, %v8364_v10 }
 0x3f6   : > { %5034 = vst [vmem:[%s8318_s18 + $0x38] sm:$0xff] %v5018_v63  ;;  %v4603_v26 = vmul.f32 %v8270_v24, %v4583_v27 }
 0x3f7   : > { %v4977_v16 = vpop.f32.mrf.mxu3 }
 0x3f8   : > { %v4623_v3 = vadd.f32 %v8288_v4, %v4603_v26  ;;  %v4513_v62 = vpop.f32.mrf.mxu1 }
 0x3f9   : > { %v4557_v2 = vpop.f32.mrf.mxu2  ;;  %v4514_v29 = vadd.f32 %v4513_v62, %v8558_v53 }
 0x3fa   : > { %v5003_v19 = vadd.f32 %v4975_v48, %v4623_v3  ;;  %v4558_v57 = vadd.f32 %v4557_v2, %v4509_v43  ;;  %v8562_v2 = vld [vmem:[#allocation16_spill] sm:$0xff] }
 0x3fc   : > { %v5019_v28 = vmax.f32 %v5003_v19, 0.0  ;;  %v4584_v18 = vadd.f32 %v4558_v57, %v8370_v36 }
 0x3fe   : > { %5035 = vst [vmem:[%s8318_s18 + $0x40] sm:$0xff] %v5019_v28  ;;  %v4604_v32 = vmul.f32 %v8270_v24, %v4584_v18 }
 0x3ff   : > { %v4980_v10 = vpop.f32.mrf.mxu3 }
 0x400   : > { %v4624_v1 = vadd.f32 %v8288_v4, %v4604_v32  ;;  %v4516_v36 = vpop.f32.mrf.mxu1 }
 0x401   : > { %v4560_v59 = vpop.f32.mrf.mxu2 }
 0x402   : > { %v5004_v47 = vadd.f32 %v4977_v16, %v4624_v1  ;;  %v4561_v39 = vadd.f32 %v4560_v59, %v4512_v25 }
 0x404   : > { %v5020_v34 = vmax.f32 %v5004_v47, 0.0  ;;  %v4585_v30 = vadd.f32 %v4561_v39, %v8379_v54  ;;  %v8559_v54 = vld [vmem:[#allocation13_spill] sm:$0xff] }
 0x405   : > { %v4517_v58 = vadd.f32 %v4516_v36, %v8559_v54 }
 0x406   : > { %5036 = vst [vmem:[%s8318_s18 + $0x48] sm:$0xff] %v5020_v34  ;;  %v4605_v56 = vmul.f32 %v8270_v24, %v4585_v30 }
 0x407   : > { %v4982_v40 = vpop.f32.mrf.mxu3 }
 0x408   : > { %v4625_v21 = vadd.f32 %v8288_v4, %v4605_v56  ;;  %v4518_v50 = vpop.f32.mrf.mxu1 }
 0x409   : > { %v4562_v17 = vpop.f32.mrf.mxu2 }
 0x40a   : > { %v5005_v31 = vadd.f32 %v4980_v10, %v4625_v21  ;;  %v4563_v52 = vadd.f32 %v4562_v17, %v4514_v29 }
 0x40c   : > { %v5021_v61 = vmax.f32 %v5005_v31, 0.0  ;;  %v4586_v37 = vadd.f32 %v4563_v52, %v8382_v5  ;;  %v8560_v5 = vld [vmem:[#allocation14_spill] sm:$0xff] }
 0x40d   : > { %v4519_v20 = vadd.f32 %v4518_v50, %v8560_v5 }
 0x40e   : > { %5037 = vst [vmem:[%s8318_s18 + $0x50] sm:$0xff] %v5021_v61  ;;  %v4606_v38 = vmul.f32 %v8270_v24, %v4586_v37 }
 0x40f   : > { %v4985_v51 = vpop.f32.mrf.mxu3 }
 0x410   : > { %v4626_v41 = vadd.f32 %v8288_v4, %v4606_v38  ;;  %v4521_v55 = vpop.f32.mrf.mxu1 }
 0x411   : > { %v4565_v11 = vpop.f32.mrf.mxu2  ;;  %v4522_v33 = vadd.f32 %v4521_v55, %v8561_v0 }
 0x412   : > { %v5006_v23 = vadd.f32 %v4982_v40, %v4626_v41  ;;  %v4566_v35 = vadd.f32 %v4565_v11, %v4517_v58 }
 0x414   : > { %v5022_v8 = vmax.f32 %v5006_v23, 0.0  ;;  %v4587_v15 = vadd.f32 %v4566_v35, %v8386_v49 }
 0x416   : > { %5038 = vst [vmem:[%s8318_s18 + $0x58] sm:$0xff] %v5022_v8  ;;  %v4607_v14 = vmul.f32 %v8270_v24, %v4587_v15 }
 0x417   : > { %v4987_v9 = vpop.f32.mrf.mxu3 }
 0x418   : > { %v4627_v42 = vadd.f32 %v8288_v4, %v4607_v14  ;;  %v4523_v43 = vpop.f32.mrf.mxu1 }
 0x419   : > { %v4567_v44 = vpop.f32.mrf.mxu2  ;;  %v4524_v19 = vadd.f32 %v4523_v43, %v8562_v2 }
 0x41a   : > { %v5007_v46 = vadd.f32 %v4985_v51, %v4627_v42  ;;  %v4568_v60 = vadd.f32 %v4567_v44, %v4519_v20 }
 0x41c   : > { %v5023_v48 = vmax.f32 %v5007_v46, 0.0  ;;  %v4588_v13 = vadd.f32 %v4568_v60, %v8389_v22 }
 0x41e   : > { %5039 = vst [vmem:[%s8318_s18 + $0x60] sm:$0xff] %v5023_v48  ;;  %v4608_v49 = vmul.f32 %v8270_v24, %v4588_v13 }
 0x41f   : > { %v4990_v3 = vpop.f32.mrf.mxu3 }
 0x420   : > { %v4628_v45 = vadd.f32 %v8288_v4, %v4608_v49 }
 0x421   : > { %v4570_v7 = vpop.f32.mrf.mxu2 }
 0x422   : > { %v5008_v63 = vadd.f32 %v4987_v9, %v4628_v45  ;;  %v4571_v27 = vadd.f32 %v4570_v7, %v4522_v33 }
 0x424   : > { %v5024_v26 = vmax.f32 %v5008_v63, 0.0  ;;  %v4589_v16 = vadd.f32 %v4571_v27, %v8391_v6 }
 0x426   : > { %5040 = vst [vmem:[%s8318_s18 + $0x68] sm:$0xff] %v5024_v26  ;;  %v4609_v22 = vmul.f32 %v8270_v24, %v4589_v16 }
 0x427   : > { %v4992_v1 = vpop.f32.mrf.mxu3 }
 0x428   : > { %v4629_v57 = vadd.f32 %v8288_v4, %v4609_v22 }
 0x429   : > { %v4572_v28 = vpop.f32.mrf.mxu2 }
 0x42a   : > { %v5009_v18 = vadd.f32 %v4990_v3, %v4629_v57  ;;  %v4573_v62 = vadd.f32 %v4572_v28, %v4524_v19 }
 0x42c   : > { %v5025_v6 = vmax.f32 %v5009_v18, 0.0  ;;  %v4590_v32 = vadd.f32 %v4573_v62, %v8393_v12 }
 0x42e   : > { %5041 = vst [vmem:[%s8318_s18 + $0x70] sm:$0xff] %v5025_v6  ;;  %v4610_v10 = vmul.f32 %v8270_v24, %v4590_v32 }
 0x430   : > { %v4630_v25 = vadd.f32 %v8288_v4, %v4610_v10 }
 0x432   : > { %v5010_v59 = vadd.f32 %v4992_v1, %v4630_v25 }
 0x434   : > { %v5026_v47 = vmax.f32 %v5010_v59, 0.0 }
 0x436   : > { %5042 = vst [vmem:[%s8318_s18 + $0x78] sm:$0xff] %v5026_v47 }
 0x437   : > { %6589 = shalt.err (!%p6586_p10)
}
 0x438   : > { %s6666_s17 = smov 128   ;;  %s6667_s18 = smov 8  }
 0x439   : > { %6435 = dma.vmem_to_hbm [thread:$0]  (%p6765_p3), %s5060_s24, 2048, %s5062_s11, %s5044_s16, %s6666_s17, %s6666_s17, %s6667_s18  }
 0x43a PF: > { %p6447_p11 = scmp.ge.s32.totalorder %s6660_s12, 2  ;;  %s5076_s30 = sand.u32 1, %s6632_s27  }
 0x43b   : > { %s5077_s9 = scalar_lea.sflag [#allocation5], %s5076_s30 }
 0x43c   : > { %p6442_p12 = pnand %p6447_p11, %p6774_p8 }
 0x43e   : > { %p6443_p13 = pneg %p6442_p12 }
 0x440   : > { %6627 = dma.done.wait (%p6443_p13), %s5077_s9, 2048  }
 0x441   : > { %6629 = vsyncadd (%p6443_p13), %s5077_s9, 4294965248  ;;  %s22_s12 = sadd.s32 1, %s6660_s12   ;;  %s8563_s9 = sld [smem:[#allocation9_spill]] }
 0x442   : > { %p19_p0 = scmp.ge.s32.totalorder %s22_s12, 6   ;;  %s8564_s19 = sld [smem:[#allocation10_spill]] }
 0x443   : > { %s8565_s11 = sld [smem:[#allocation11_spill]]  ;;  %s8566_s27 = smov %s6636_s28 }
 0x444   : > { %s8567_s28 = smov %s6640_s29  ;;  %s8568_s29 = smov %s6795_s15 }
 0x445   : > { %s8569_s30 = smov %s6652_s10  ;;  %21 = sbr.rel (!%p19_p0) target bundleno = 8 (0x8), region = 101 }
 0x448   : > { %s8570_s10 = smov %s8564_s19 }
 0x44a   :  { %5083 = vsyncpa [#allocation4], 1 }
 0x44b   :  { %5085 = vsyncpa [#allocation4 + $0x1], 1 }
 0x44c   :  { %5086 = vsyncpa [#allocation5], 1 }
 0x44d   :  { %5088 = vsyncpa [#allocation5 + $0x1], 1 }

</bundles_post_ra>
